<compile_context>
chip_gen: v7x
topology: tpu7x:2x2x1
jax: 0.10.0
libtpu: 0.0.40
codegen_flags: <defaults>
</compile_context>

<pallas_src>
import functools

import jax
import jax.numpy as jnp
from jax import lax
from jax.experimental import pallas as pl
from jax.experimental.pallas import tpu as pltpu

# ---- model dims (from the PyTorch module) -----------------------------------
PATCH = 14
KDIM = 3 * PATCH * PATCH      # 588  (C * kh * kw, Conv2d flatten order)
KPAD = 640                    # 588 zero-padded to a multiple of 128 lanes
EMBED = 1024                  # DINOv2 ViT-L feature dim
HIDDEN = EMBED // 3           # 341
HIDDEN_PAD = 384              # padded to a multiple of 128 (zero-filled, inert)
OUT_DIM = 1
OUT_PAD = 128                 # padded output lanes; sliced back to OUT_DIM
EPS = 1e-8


def _round_up(x, m):
    return (x + m - 1) // m * m


def _classifier_kernel(patches_ref, wp_ref, bp_ref, w1_ref, b1_ref,
                       w2_ref, b2_ref, logits_ref, feat_ref, acc_ref,
                       *, inv_num_patches):
    # patches: [B_TILE, P_TILE, KPAD] bf16     wp: [KPAD, EMBED] f32
    # bp: [1, EMBED]   w1: [EMBED, HIDDEN_PAD]   b1: [1, HIDDEN_PAD]
    # w2: [HIDDEN_PAD, OUT_PAD]   b2: [1, OUT_PAD]
    # acc: [B_TILE, KPAD] f32 scratch — running sum over patch tokens.
    p = pl.program_id(1)

    @pl.when(p == 0)
    def _():
        acc_ref[...] = jnp.zeros_like(acc_ref)

    # Sum the im2col rows of this patch chunk (bf16 stream, f32 accumulation).
    acc_ref[...] += jnp.sum(patches_ref[...].astype(jnp.float32), axis=1)

    @pl.when(p == pl.num_programs(1) - 1)
    def _():
        # --- backbone stand-in: mean over patch tokens, fused through the
        # (linear) patch-embed conv:  mean_p(patches @ Wp + bp)
        #                          == mean_p(patches) @ Wp + bp
        # TODO(synk): replace with the 24-block ViT-L transformer (nonlinear —
        # this fusion must then be reverted).
        pooled = acc_ref[...] * inv_num_patches                 # [B_TILE, KPAD]
        x = jnp.dot(pooled, wp_ref[...],
                    preferred_element_type=jnp.float32) + bp_ref[...]

        # --- feat = F.normalize(x, dim=1, eps=1e-8):  x / max(||x||, eps) ---
        sq = jnp.sum(x * x, axis=1, keepdims=True)
        inv_norm = jnp.minimum(lax.rsqrt(sq), 1.0 / EPS)        # EUP rsqrt
        feat_ref[...] = x * inv_norm

        # --- classifier on the *unnormalized* x (matches PyTorch forward) ---
        h = jnp.dot(x, w1_ref[...],
                    preferred_element_type=jnp.float32) + b1_ref[...]
        h = jnp.maximum(h, 0.0)
        logits_ref[...] = jnp.dot(h, w2_ref[...],
                                  preferred_element_type=jnp.float32) + b2_ref[...]


def classifier_forward(x_nchw, params):
    """x_nchw: [B, 3, H, W] float32, H and W multiples of 14."""
    B, C, H, W = x_nchw.shape
    assert C == 3 and H % PATCH == 0 and W % PATCH == 0
    ph, pw = H // PATCH, W // PATCH
    P = ph * pw

    # im2col (glue, plain JAX): [B, P, 588] with (C, kh, kw) flatten order,
    # exactly matching Conv2d(k=14, s=14) weight layout.
    patches = x_nchw.reshape(B, C, ph, PATCH, pw, PATCH)
    patches = patches.transpose(0, 2, 4, 1, 3, 5).reshape(B, P, KDIM)

    # Tile sizes: patch-stream block <= ~5 MiB bf16, so the double-buffered
    # working set (plus resident weights) stays well under v7x's 32 MiB scoped
    # VMEM and inside the explicit limit below on v5e/v6e.
    B_TILE = B if B <= 8 else 8
    B_pad = B if B <= 8 else _round_up(B, 8)
    P_TILE = min(_round_up(P, 16), 512)     # 16-multiple for bf16 sublane packing
    P_pad = _round_up(P, P_TILE)

    # Zero-pad (padded rows/lanes contribute nothing to the patch sum) and cast
    # the big streamed operand to bf16 — halves HBM traffic; math stays f32.
    patches = jnp.pad(
        patches, ((0, B_pad - B), (0, P_pad - P), (0, KPAD - KDIM)))
    patches = patches.astype(jnp.bfloat16)

    wp, bp, w1, b1, w2, b2 = (params[k] for k in
                              ("wp", "bp", "w1", "b1", "w2", "b2"))

    grid = (B_pad // B_TILE, P_pad // P_TILE)
    kernel = functools.partial(_classifier_kernel, inv_num_patches=1.0 / P)

    const = lambda shape: pl.BlockSpec(shape, lambda b, p: (0,) * len(shape))
    logits_pad, feat_pad = pl.pallas_call(
        kernel,
        grid_spec=pltpu.PrefetchScalarGridSpec(
            num_scalar_prefetch=0,
            grid=grid,
            in_specs=[
                pl.BlockSpec((B_TILE, P_TILE, KPAD), lambda b, p: (b, p, 0)),
                const((KPAD, EMBED)),
                const((1, EMBED)),
                const((EMBED, HIDDEN_PAD)),
                const((1, HIDDEN_PAD)),
                const((HIDDEN_PAD, OUT_PAD)),
                const((1, OUT_PAD)),
            ],
            out_specs=[
                pl.BlockSpec((B_TILE, OUT_PAD), lambda b, p: (b, 0)),
                pl.BlockSpec((B_TILE, EMBED), lambda b, p: (b, 0)),
            ],
            scratch_shapes=[pltpu.VMEM((B_TILE, KPAD), jnp.float32)],
        ),
        out_shape=[
            jax.ShapeDtypeStruct((B_pad, OUT_PAD), jnp.float32),
            jax.ShapeDtypeStruct((B_pad, EMBED), jnp.float32),
        ],
        compiler_params=pltpu.CompilerParams(
            # batch axis "parallel" -> sharded across v7x's 2 TensorCores;
            # patch (reduction) axis "arbitrary" and last.
            dimension_semantics=("parallel", "arbitrary"),
            vmem_limit_bytes=48 * 1024 * 1024),
    )(patches, wp, bp, w1, b1, w2, b2)

    return logits_pad[:B, :OUT_DIM], feat_pad[:B]


def init_params(key):
    k = jax.random.split(key, 6)

    # Patch-embed Conv2d(3 -> 1024, k=14, s=14) as [588, 1024]; K zero-padded
    # to 640 (padded lanes multiply zero-padded pooled entries -> exact).
    wp = jnp.zeros((KPAD, EMBED), jnp.float32)
    wp = wp.at[:KDIM, :].set(
        jax.random.normal(k[0], (KDIM, EMBED), jnp.float32) * 0.02)
    bp = jax.random.normal(k[1], (1, EMBED), jnp.float32) * 0.02

    # Linear(1024 -> 341), zero-padded to 384 hidden units (ReLU(0)=0 -> inert)
    w1 = jnp.zeros((EMBED, HIDDEN_PAD), jnp.float32)
    w1 = w1.at[:, :HIDDEN].set(
        jax.random.normal(k[2], (EMBED, HIDDEN), jnp.float32) * 0.02)
    b1 = jnp.zeros((1, HIDDEN_PAD), jnp.float32)
    b1 = b1.at[:, :HIDDEN].set(
        jax.random.normal(k[3], (1, HIDDEN), jnp.float32) * 0.02)

    # Linear(341 -> 1), zero-padded to 128 output lanes (sliced off afterwards)
    w2 = jnp.zeros((HIDDEN_PAD, OUT_PAD), jnp.float32)
    w2 = w2.at[:HIDDEN, :OUT_DIM].set(
        jax.random.normal(k[4], (HIDDEN, OUT_DIM), jnp.float32) * 0.02)
    b2 = jnp.zeros((1, OUT_PAD), jnp.float32)
    b2 = b2.at[:, :OUT_DIM].set(
        jax.random.normal(k[5], (1, OUT_DIM), jnp.float32) * 0.02)

    return dict(wp=wp, bp=bp, w1=w1, b1=b1, w2=w2, b2=b2)


if __name__ == "__main__":
    key = jax.random.PRNGKey(0)
    k_img, k_par = jax.random.split(key)
    # Small image consistent with ViT-L/14: 3 channels, H=W=28 -> 4 patches.
    x = jax.random.normal(k_img, (2, 3, 28, 28), jnp.float32)
    params = init_params(k_par)

    logits, feat = classifier_forward(x, params)
    jax.block_until_ready((logits, feat))

    assert logits.shape == (2, OUT_DIM)
    assert feat.shape == (2, EMBED)
    # feat rows are unit-norm (up to the eps clamp)
    norms = jnp.sqrt(jnp.sum(feat * feat, axis=1))
    assert bool(jnp.all(jnp.abs(norms - 1.0) < 1e-3))
    print("KERNEL_OK")
</pallas_src>

<mosaic_0001>
module attributes {stable_mosaic.version = 11 : i64} {
  func.func @_classifier_kernel(%arg0: i32, %arg1: i32, %arg2: memref<2x16x640xbf16, #tpu.memory_space<vmem>>, %arg3: memref<640x1024xf32, #tpu.memory_space<vmem>>, %arg4: memref<1x1024xf32, #tpu.memory_space<vmem>>, %arg5: memref<1024x384xf32, #tpu.memory_space<vmem>>, %arg6: memref<1x384xf32, #tpu.memory_space<vmem>>, %arg7: memref<384x128xf32, #tpu.memory_space<vmem>>, %arg8: memref<1x128xf32, #tpu.memory_space<vmem>>, %arg9: memref<2x128xf32, #tpu.memory_space<vmem>>, %arg10: memref<2x1024xf32, #tpu.memory_space<vmem>>, %arg11: memref<2x640xf32, #tpu.memory_space<vmem>>) attributes {dimension_semantics = [#tpu.dimension_semantics<parallel>, #tpu.dimension_semantics<arbitrary>], iteration_bounds = array<i64: 1, 1>, scalar_prefetch = 0 : i64, scratch_operands = 1 : i64, tpu.core_type = #tpu.core_type<tc>, window_params = [{transform_indices = @transform_0, window_bounds = array<i64: 2, 16, 640>}, {pipeline_mode = #tpu.pipeline_mode<synchronous>, transform_indices = @transform_1, window_bounds = array<i64: 640, 1024>}, {pipeline_mode = #tpu.pipeline_mode<synchronous>, transform_indices = @transform_2, window_bounds = array<i64: 1, 1024>}, {pipeline_mode = #tpu.pipeline_mode<synchronous>, transform_indices = @transform_3, window_bounds = array<i64: 1024, 384>}, {pipeline_mode = #tpu.pipeline_mode<synchronous>, transform_indices = @transform_4, window_bounds = array<i64: 1, 384>}, {pipeline_mode = #tpu.pipeline_mode<synchronous>, transform_indices = @transform_5, window_bounds = array<i64: 384, 128>}, {pipeline_mode = #tpu.pipeline_mode<synchronous>, transform_indices = @transform_6, window_bounds = array<i64: 1, 128>}, {transform_indices = @transform_7, window_bounds = array<i64: 2, 128>}, {transform_indices = @transform_8, window_bounds = array<i64: 2, 1024>}]} {
    %c0_i32 = arith.constant 0 : i32
    %0 = arith.cmpi eq, %arg1, %c0_i32 : i32
    %1 = arith.extui %0 : i1 to i32
    %c0_i32_0 = arith.constant 0 : i32
    %2 = arith.cmpi ne, %1, %c0_i32_0 : i32
    scf.if %2 {
      %cst_9 = arith.constant 0.000000e+00 : f32
      %12 = vector.broadcast %cst_9 : f32 to vector<2x640xf32>
      %c0_10 = arith.constant 0 : index
      %c0_11 = arith.constant 0 : index
      %13 = vector.load %arg11[%c0_10, %c0_11] : memref<2x640xf32, #tpu.memory_space<vmem>>, vector<2x640xf32>
      tpu.vector_store %arg11[%c0_10, %c0_11], %12 {strides = array<i32>} : memref<2x640xf32, #tpu.memory_space<vmem>>, vector<2x640xf32>,
    } else {
    }
    %c0 = arith.constant 0 : index
    %c0_1 = arith.constant 0 : index
    %3 = vector.load %arg11[%c0, %c0_1] : memref<2x640xf32, #tpu.memory_space<vmem>>, vector<2x640xf32>
    %c0_2 = arith.constant 0 : index
    %c0_3 = arith.constant 0 : index
    %c0_4 = arith.constant 0 : index
    %4 = vector.load %arg2[%c0_2, %c0_3, %c0_4] : memref<2x16x640xbf16, #tpu.memory_space<vmem>>, vector<2x16x640xbf16>
    %5 = arith.extf %4 : vector<2x16x640xbf16> to vector<2x16x640xf32>
    %cst = arith.constant dense<0.000000e+00> : vector<2x640xf32>
    %6 = vector.multi_reduction <add>, %5, %cst [1] : vector<2x16x640xf32> to vector<2x640xf32>
    %7 = arith.addf %3, %6 : vector<2x640xf32>
    %c0_5 = arith.constant 0 : index
    %c0_6 = arith.constant 0 : index
    %8 = vector.load %arg11[%c0_5, %c0_6] : memref<2x640xf32, #tpu.memory_space<vmem>>, vector<2x640xf32>
    tpu.vector_store %arg11[%c0_5, %c0_6], %7 {strides = array<i32>} : memref<2x640xf32, #tpu.memory_space<vmem>>, vector<2x640xf32>,
    %c0_i32_7 = arith.constant 0 : i32
    %9 = arith.cmpi eq, %arg1, %c0_i32_7 : i32
    %10 = arith.extui %9 : i1 to i32
    %c0_i32_8 = arith.constant 0 : i32
    %11 = arith.cmpi ne, %10, %c0_i32_8 : i32
    scf.if %11 {
      %c0_9 = arith.constant 0 : index
      %c0_10 = arith.constant 0 : index
      %12 = vector.load %arg11[%c0_9, %c0_10] : memref<2x640xf32, #tpu.memory_space<vmem>>, vector<2x640xf32>
      %cst_11 = arith.constant 2.500000e-01 : f32
      %13 = vector.broadcast %cst_11 : f32 to vector<2x640xf32>
      %14 = arith.mulf %12, %13 : vector<2x640xf32>
      %c0_12 = arith.constant 0 : index
      %c0_13 = arith.constant 0 : index
      %15 = vector.load %arg3[%c0_12, %c0_13] : memref<640x1024xf32, #tpu.memory_space<vmem>>, vector<640x1024xf32>
      %cst_14 = arith.constant dense<0.000000e+00> : vector<2x1024xf32>
      %16 = tpu.matmul %14, %15, %cst_14 {dimension_numbers = #tpu.dot_dimension_numbers<[1], [0], [0], [1], [0, 0, 1, 1], [], []>} : vector<2x640xf32>, vector<640x1024xf32>, vector<2x1024xf32> -> vector<2x1024xf32>
      %c0_15 = arith.constant 0 : index
      %c0_16 = arith.constant 0 : index
      %17 = vector.load %arg4[%c0_15, %c0_16] : memref<1x1024xf32, #tpu.memory_space<vmem>>, vector<1x1024xf32>
      %18 = vector.broadcast %17 : vector<1x1024xf32> to vector<2x1024xf32>
      %19 = arith.addf %16, %18 : vector<2x1024xf32>
      %20 = arith.mulf %19, %19 : vector<2x1024xf32>
      %cst_17 = arith.constant dense<0.000000e+00> : vector<2xf32>
      %21 = vector.multi_reduction <add>, %20, %cst_17 [1] : vector<2x1024xf32> to vector<2xf32>
      %22 = vector.shape_cast %21 : vector<2xf32> to vector<2x1xf32>
      %23 = math.rsqrt %22 : vector<2x1xf32>
      %cst_18 = arith.constant 1.000000e+08 : f32
      %24 = vector.broadcast %cst_18 : f32 to vector<2x1xf32>
      %25 = arith.minimumf %23, %24 : vector<2x1xf32>
      %26 = vector.broadcast %25 : vector<2x1xf32> to vector<2x1024xf32>
      %27 = arith.mulf %19, %26 : vector<2x1024xf32>
      %c0_19 = arith.constant 0 : index
      %c0_20 = arith.constant 0 : index
      %28 = vector.load %arg10[%c0_19, %c0_20] : memref<2x1024xf32, #tpu.memory_space<vmem>>, vector<2x1024xf32>
      tpu.vector_store %arg10[%c0_19, %c0_20], %27 {strides = array<i32>} : memref<2x1024xf32, #tpu.memory_space<vmem>>, vector<2x1024xf32>,
      %c0_21 = arith.constant 0 : index
      %c0_22 = arith.constant 0 : index
      %29 = vector.load %arg5[%c0_21, %c0_22] : memref<1024x384xf32, #tpu.memory_space<vmem>>, vector<1024x384xf32>
      %cst_23 = arith.constant dense<0.000000e+00> : vector<2x384xf32>
      %30 = tpu.matmul %19, %29, %cst_23 {dimension_numbers = #tpu.dot_dimension_numbers<[1], [0], [0], [1], [0, 0, 1, 1], [], []>} : vector<2x1024xf32>, vector<1024x384xf32>, vector<2x384xf32> -> vector<2x384xf32>
      %c0_24 = arith.constant 0 : index
      %c0_25 = arith.constant 0 : index
      %31 = vector.load %arg6[%c0_24, %c0_25] : memref<1x384xf32, #tpu.memory_space<vmem>>, vector<1x384xf32>
      %32 = vector.broadcast %31 : vector<1x384xf32> to vector<2x384xf32>
      %33 = arith.addf %30, %32 : vector<2x384xf32>
      %cst_26 = arith.constant 0.000000e+00 : f32
      %34 = vector.broadcast %cst_26 : f32 to vector<2x384xf32>
      %35 = arith.maximumf %33, %34 : vector<2x384xf32>
      %c0_27 = arith.constant 0 : index
      %c0_28 = arith.constant 0 : index
      %36 = vector.load %arg7[%c0_27, %c0_28] : memref<384x128xf32, #tpu.memory_space<vmem>>, vector<384x128xf32>
      %cst_29 = arith.constant dense<0.000000e+00> : vector<2x128xf32>
      %37 = tpu.matmul %35, %36, %cst_29 {dimension_numbers = #tpu.dot_dimension_numbers<[1], [0], [0], [1], [0, 0, 1, 1], [], []>} : vector<2x384xf32>, vector<384x128xf32>, vector<2x128xf32> -> vector<2x128xf32>
      %c0_30 = arith.constant 0 : index
      %c0_31 = arith.constant 0 : index
      %38 = vector.load %arg8[%c0_30, %c0_31] : memref<1x128xf32, #tpu.memory_space<vmem>>, vector<1x128xf32>
      %39 = vector.broadcast %38 : vector<1x128xf32> to vector<2x128xf32>
      %40 = arith.addf %37, %39 : vector<2x128xf32>
      %c0_32 = arith.constant 0 : index
      %c0_33 = arith.constant 0 : index
      %41 = vector.load %arg9[%c0_32, %c0_33] : memref<2x128xf32, #tpu.memory_space<vmem>>, vector<2x128xf32>
      tpu.vector_store %arg9[%c0_32, %c0_33], %40 {strides = array<i32>} : memref<2x128xf32, #tpu.memory_space<vmem>>, vector<2x128xf32>,
    } else {
    }
    return
  }
  func.func @transform_0(%arg0: i32, %arg1: i32) -> (i32, i32, i32) {
    %c0_i32 = arith.constant 0 : i32
    %c0_i32_0 = arith.constant 0 : i32
    return %arg0, %arg1, %c0_i32 : i32, i32, i32
  }
  func.func @transform_1(%arg0: i32, %arg1: i32) -> (i32, i32) {
    %c0_i32 = arith.constant 0 : i32
    %c0_i32_0 = arith.constant 0 : i32
    %c0_i32_1 = arith.constant 0 : i32
    return %c0_i32, %c0_i32_0 : i32, i32
  }
  func.func @transform_2(%arg0: i32, %arg1: i32) -> (i32, i32) {
    %c0_i32 = arith.constant 0 : i32
    %c0_i32_0 = arith.constant 0 : i32
    %c0_i32_1 = arith.constant 0 : i32
    return %c0_i32, %c0_i32_0 : i32, i32
  }
  func.func @transform_3(%arg0: i32, %arg1: i32) -> (i32, i32) {
    %c0_i32 = arith.constant 0 : i32
    %c0_i32_0 = arith.constant 0 : i32
    %c0_i32_1 = arith.constant 0 : i32
    return %c0_i32, %c0_i32_0 : i32, i32
  }
  func.func @transform_4(%arg0: i32, %arg1: i32) -> (i32, i32) {
    %c0_i32 = arith.constant 0 : i32
    %c0_i32_0 = arith.constant 0 : i32
    %c0_i32_1 = arith.constant 0 : i32
    return %c0_i32, %c0_i32_0 : i32, i32
  }
  func.func @transform_5(%arg0: i32, %arg1: i32) -> (i32, i32) {
    %c0_i32 = arith.constant 0 : i32
    %c0_i32_0 = arith.constant 0 : i32
    %c0_i32_1 = arith.constant 0 : i32
    return %c0_i32, %c0_i32_0 : i32, i32
  }
  func.func @transform_6(%arg0: i32, %arg1: i32) -> (i32, i32) {
    %c0_i32 = arith.constant 0 : i32
    %c0_i32_0 = arith.constant 0 : i32
    %c0_i32_1 = arith.constant 0 : i32
    return %c0_i32, %c0_i32_0 : i32, i32
  }
  func.func @transform_7(%arg0: i32, %arg1: i32) -> (i32, i32) {
    %c0_i32 = arith.constant 0 : i32
    %c0_i32_0 = arith.constant 0 : i32
    return %arg0, %c0_i32 : i32, i32
  }
  func.func @transform_8(%arg0: i32, %arg1: i32) -> (i32, i32) {
    %c0_i32 = arith.constant 0 : i32
    %c0_i32_0 = arith.constant 0 : i32
    return %arg0, %c0_i32 : i32, i32
  }
}

</mosaic_0001>

<bundles_post_ra>
// kernel: tpu_custom_call.1
= control target key start
LH: loop header
LB: loop body
LE: loop exit
PB: predicated region body
PF: predicated region fallthrough
CT: control target
= control target key end

     0   :  { %14 = vsyncpa [#allocation4], 0  ;;  %s5119_s0 = inlined_call_operand.hbm [shape: bf16[2,16,640], index: 0, kind: input, shape index: {}]   ;;  %s5120_s1 = inlined_call_operand.hbm [shape: f32[640,1024], index: 1, kind: input, shape index: {}]   ;;  %s5121_s2 = inlined_call_operand.hbm [shape: f32[1,1024], index: 2, kind: input, shape index: {}]   ;;  %s5122_s3 = inlined_call_operand.hbm [shape: f32[1024,384], index: 3, kind: input, shape index: {}]   ;;  %s5123_s4 = inlined_call_operand.hbm [shape: f32[1,384], index: 4, kind: input, shape index: {}]   ;;  %s5124_s5 = inlined_call_operand.hbm [shape: f32[384,128], index: 5, kind: input, shape index: {}]   ;;  %s5125_s6 = inlined_call_operand.hbm [shape: f32[1,128], index: 6, kind: input, shape index: {}]   ;;  %s5126_s7 = inlined_call_operand.hbm [shape: f32[2,128], index: 7, kind: output, shape index: {0}]   ;;  %s5127_s8 = inlined_call_operand.hbm [shape: f32[2,1024], index: 8, kind: output, shape index: {1}]  }
   0x1   :  { %15 = vsyncpa [#allocation7], 0 }
   0x2   :  { %16 = vsyncpa [#allocation10], 0 }
   0x3   :  { %17 = vsyncpa [#allocation13], 0 }
   0x4   :  { %18 = vsyncpa [#allocation5], 0 }
   0x5   :  { %19 = vsyncpa [#allocation17], 0  ;;  %s4737_s27 = smov [#allocation6]   ;;  %s4527_s9 = scalar_lea.hbm %s5120_s1, 81920 }
   0x6   :  { %s37_s28 = sshll.u32 %s4737_s27, 4  ;;  %p4528_p0 = scmp.ne.s32.totalorder %s5120_s1, %s4527_s9  ;;  %s38_s28 = int_to_ptr.vmem [resolvable:$true] %s37_s28 }
   0x7   :  { %p4531_p1 = scmp.lt.u32.totalorder %s4527_s9, %s5120_s1 }
   0x9   :  { %p4533_p2 = pnand %p4531_p1, %p4528_p0 }
   0xb   :  { %4536 = shalt.err (!%p4533_p2)
}
   0xc   :  { %s4537_s14 = scalar_lea.vmem %s38_s28, 81920  ;;  %p4542_p4 = scmp.lt.s32.totalorder %s38_s28, %s38_s28 }
   0xd   :  { %p4538_p3 = scmp.ne.s32.totalorder %s38_s28, %s4537_s14  ;;  %p4543_p5 = scmp.lt.s32.totalorder %s4537_s14, %s4537_s14 }
   0xf   :  { %p4544_p6 = por %p4543_p5, %p4542_p4 }
  0x11   :  { %p4545_p7 = pnand %p4544_p6, %p4538_p3 }
  0x13   :  { %4548 = shalt.err (!%p4545_p7)
}
  0x14   :  { %s4738_s15 = smov 1024   ;;  %s4739_s16 = smov 64  }
  0x15   :  { %43 = dma.hbm_to_vmem [thread:$0]  %s5120_s1, 81920, %s38_s28, [#allocation7], %s4738_s15, %s4738_s15, %s4739_s16  }
  0x16   :  { %s4740_s19 = smov [#allocation9]   ;;  %s4549_s23 = scalar_lea.hbm %s5122_s3, 49152 }
  0x17   :  { %s59_s20 = sshll.u32 %s4740_s19, 4  ;;  %p4550_p8 = scmp.ne.s32.totalorder %s5122_s3, %s4549_s23  ;;  %s60_s20 = int_to_ptr.vmem [resolvable:$true] %s59_s20 }
  0x18   :  { %p4553_p9 = scmp.lt.u32.totalorder %s4549_s23, %s5122_s3 }
  0x1a   :  { %p4555_p10 = pnand %p4553_p9, %p4550_p8 }
  0x1c   :  { %4558 = shalt.err (!%p4555_p10)
}
  0x1d   :  { %s4559_s29 = scalar_lea.vmem %s60_s20, 49152  ;;  %p4564_p12 = scmp.lt.s32.totalorder %s60_s20, %s60_s20 }
  0x1e   :  { %p4560_p11 = scmp.ne.s32.totalorder %s60_s20, %s4559_s29  ;;  %p4565_p13 = scmp.lt.s32.totalorder %s4559_s29, %s4559_s29 }
  0x20   :  { %p4566_p0 = por %p4565_p13, %p4564_p12 }
  0x22   :  { %p4567_p1 = pnand %p4566_p0, %p4560_p11 }
  0x24   :  { %4570 = shalt.err (!%p4567_p1)
}
  0x25   :  { %s4741_s1 = smov 384   ;;  %s4742_s28 = smov 24  }
  0x26   :  { %65 = dma.hbm_to_vmem [thread:$0]  %s5122_s3, 49152, %s60_s20, [#allocation10], %s4741_s1, %s4741_s1, %s4742_s28  }
  0x27   :  { %s4743_s10 = smov [#allocation12]   ;;  %s4571_s14 = scalar_lea.hbm %s5124_s5, 6144 }
  0x28   :  { %s81_s11 = sshll.u32 %s4743_s10, 4  ;;  %p4572_p2 = scmp.ne.s32.totalorder %s5124_s5, %s4571_s14  ;;  %s82_s11 = int_to_ptr.vmem [resolvable:$true] %s81_s11 }
  0x29   :  { %p4575_p3 = scmp.lt.u32.totalorder %s4571_s14, %s5124_s5 }
  0x2b   :  { %p4577_p4 = pnand %p4575_p3, %p4572_p2 }
  0x2d   :  { %4580 = shalt.err (!%p4577_p4)
}
  0x2e   :  { %s4581_s19 = scalar_lea.vmem %s82_s11, 6144  ;;  %p4586_p6 = scmp.lt.s32.totalorder %s82_s11, %s82_s11 }
  0x2f   :  { %p4582_p5 = scmp.ne.s32.totalorder %s82_s11, %s4581_s19  ;;  %p4587_p7 = scmp.lt.s32.totalorder %s4581_s19, %s4581_s19 }
  0x31   :  { %p4588_p8 = por %p4587_p7, %p4586_p6 }
  0x33   :  { %p4589_p9 = pnand %p4588_p8, %p4582_p5 }
  0x35   :  { %4592 = shalt.err (!%p4589_p9)
}
  0x36   :  { %s4744_s3 = smov 128   ;;  %s4745_s20 = smov 8  }
  0x37   :  { %87 = dma.hbm_to_vmem [thread:$0]  %s5124_s5, 6144, %s82_s11, [#allocation13], %s4744_s3, %s4744_s3, %s4745_s20  }
  0x38   :  { %s4746_s23 = smov [#allocation3]   ;;  %s4593_s27 = scalar_lea.hbm %s5119_s0, 1280 }
  0x39   :  { %s25_s24 = sshll.u32 %s4746_s23, 4  ;;  %p4594_p10 = scmp.ne.s32.totalorder %s5119_s0, %s4593_s27  ;;  %s26_s24 = int_to_ptr.vmem [resolvable:$true] %s25_s24 }
  0x3a   :  { %p4597_p11 = scmp.lt.u32.totalorder %s4593_s27, %s5119_s0 }
  0x3c   :  { %p4599_p12 = pnand %p4597_p11, %p4594_p10 }
  0x3e   :  { %4602 = shalt.err (!%p4599_p12)
}
  0x3f   :  { %s4603_s9 = scalar_lea.vmem %s26_s24, 1280  ;;  %p4608_p0 = scmp.lt.s32.totalorder %s26_s24, %s26_s24 }
  0x40   :  { %p4604_p13 = scmp.ne.s32.totalorder %s26_s24, %s4603_s9  ;;  %p4609_p1 = scmp.lt.s32.totalorder %s4603_s9, %s4603_s9 }
  0x42   :  { %p4610_p2 = por %p4609_p1, %p4608_p0 }
  0x44   :  { %p4611_p3 = pnand %p4610_p2, %p4604_p13 }
  0x46   :  { %4614 = shalt.err (!%p4611_p3)
}
  0x47   :  { %s4747_s5 = smov 320   ;;  %s4748_s10 = smov 20  }
  0x48   :  { %31 = dma.hbm_to_vmem [thread:$0]  %s5119_s0, 1280, %s26_s24, [#allocation4], %s4747_s5, %s4747_s5, %s4748_s10  }
  0x49   :  { %s4749_s13 = smov [#allocation8]   ;;  %s4750_s15 = smov [#allocation11]  }
  0x4a   :  { %s50_s14 = sshll.u32 %s4749_s13, 4  ;;  %s72_s16 = sshll.u32 %s4750_s15, 4  ;;  %s51_s14 = int_to_ptr.vmem [resolvable:$true] %s50_s14  ;;  %s73_s16 = int_to_ptr.vmem [resolvable:$true] %s72_s16 }
  0x4b   :  { %s4615_s19 = scalar_lea.hbm %s5121_s2, 128 }
  0x4c   :  { %p4616_p4 = scmp.ne.s32.totalorder %s5121_s2, %s4615_s19  ;;  %p4619_p5 = scmp.lt.u32.totalorder %s4615_s19, %s5121_s2 }
  0x4e   :  { %p4621_p6 = pnand %p4619_p5, %p4616_p4 }
  0x50   :  { %4624 = shalt.err (!%p4621_p6)
}
  0x51   :  { %s4625_s0 = scalar_lea.vmem %s51_s14, 128  ;;  %p4630_p8 = scmp.lt.s32.totalorder %s51_s14, %s51_s14 }
  0x52   :  { %p4626_p7 = scmp.ne.s32.totalorder %s51_s14, %s4625_s0  ;;  %p4631_p9 = scmp.lt.s32.totalorder %s4625_s0, %s4625_s0 }
  0x54   :  { %p4632_p10 = por %p4631_p9, %p4630_p8 }
  0x56   :  { %p4633_p11 = pnand %p4632_p10, %p4626_p7 }
  0x58   :  { %4636 = shalt.err (!%p4633_p11)
}
  0x59   :  { %53 = dma.hbm_to_vmem [thread:$0]  %s5121_s2, 128, %s51_s14, [#allocation7]  }
  0x5a   :  { %s4637_s27 = scalar_lea.hbm %s5123_s4, 48 }
  0x5b   :  { %p4638_p12 = scmp.ne.s32.totalorder %s5123_s4, %s4637_s27  ;;  %p4641_p13 = scmp.lt.u32.totalorder %s4637_s27, %s5123_s4 }
  0x5d   :  { %p4643_p0 = pnand %p4641_p13, %p4638_p12 }
  0x5f   :  { %4646 = shalt.err (!%p4643_p0)
}
  0x60   :  { %s4647_s9 = scalar_lea.vmem %s73_s16, 48  ;;  %s4651_s5 = scalar_lea.vmem %s73_s16, 64 }
  0x61   :  { %p4648_p1 = scmp.ne.s32.totalorder %s73_s16, %s4647_s9  ;;  %p4652_p2 = scmp.lt.s32.totalorder %s73_s16, %s73_s16 }
  0x62   :  { %p4653_p3 = scmp.lt.s32.totalorder %s4651_s5, %s4647_s9 }
  0x64   :  { %p4654_p4 = por %p4653_p3, %p4652_p2 }
  0x66   :  { %p4655_p5 = pnand %p4654_p4, %p4648_p1 }
  0x68   :  { %4658 = shalt.err (!%p4655_p5)
}
  0x69   :  { %75 = dma.hbm_to_vmem [thread:$0]  %s5123_s4, 48, %s73_s16, [#allocation10]  }
  0x6a   :  { %s4751_s11 = smov [#allocation14]   ;;  %s4659_s15 = scalar_lea.hbm %s5125_s6, 16 }
  0x6b   :  { %s94_s12 = sshll.u32 %s4751_s11, 4  ;;  %p4660_p6 = scmp.ne.s32.totalorder %s5125_s6, %s4659_s15  ;;  %s95_s12 = int_to_ptr.vmem [resolvable:$true] %s94_s12 }
  0x6c   :  { %p4663_p7 = scmp.lt.u32.totalorder %s4659_s15, %s5125_s6 }
  0x6e   :  { %p4665_p8 = pnand %p4663_p7, %p4660_p6 }
  0x70   :  { %4668 = shalt.err (!%p4665_p8)
}
  0x71   :  { %s4669_s20 = scalar_lea.vmem %s95_s12, 16  ;;  %s4673_s4 = scalar_lea.vmem %s95_s12, 32 }
  0x72   :  { %p4670_p9 = scmp.ne.s32.totalorder %s95_s12, %s4669_s20  ;;  %p4674_p10 = scmp.lt.s32.totalorder %s95_s12, %s95_s12 }
  0x73   :  { %p4675_p11 = scmp.lt.s32.totalorder %s4673_s4, %s4669_s20 }
  0x75   :  { %p4676_p12 = por %p4675_p11, %p4674_p10 }
  0x77   :  { %p4677_p13 = pnand %p4676_p12, %p4670_p9 }
  0x79   :  { %4680 = shalt.err (!%p4677_p13)
}
  0x7a   :  { %97 = dma.hbm_to_vmem [thread:$0]  %s5125_s6, 16, %s95_s12, [#allocation13]  }
  0x7b   :  { %4725 = dma.done.wait [#allocation4], 1280  }
  0x7c   :  { %4726 = vsyncadd [#allocation4], 4294966016 }
  0x7d   :  { %4727 = dma.done.wait [#allocation7], 82048  }
  0x7e   :  { %4728 = vsyncadd [#allocation7], 4294885248 }
  0x7f   :  { %4729 = dma.done.wait [#allocation10], 49200  }
  0x80   :  { %4730 = vsyncadd [#allocation10], 4294918096 }
  0x81   :  { %4731 = dma.done.wait [#allocation13], 6160  }
  0x82   :  { %4732 = vsyncadd [#allocation13], 4294961136  ;;  %v4752_v0 = vmov 0.0   ;;  %v321_v1 = vld [vmem:[#allocation6 + $0x8] sm:$0xff]  ;;  %v320_v3 = vld [vmem:[#allocation6] sm:$0xff]  ;;  %vm292_vm0 = vcmask 1041409  }
  0x83   :  { %124 = vst [vmem:[#allocation2 + $0x8] sm:$0x3] %v4752_v0  ;;  %1239 = vmatprep.mubr.f32.mxu1 %v4752_v0  ;;  %v329_v2 = vld [vmem:[#allocation6 + $0x48] sm:$0xff]  ;;  %v328_v5 = vld [vmem:[#allocation6 + $0x40] sm:$0xff]  ;;  %vm294_vm1 = vcmask 1043459   ;;  %vm296_vm2 = vcmask 1045509  }
  0x84   :  { %v3391_v4 = vpack.c.bf16 %v329_v2, %v321_v1  ;;  %v833_v6 = vld [vmem:[#allocation6 + $0x1008] sm:$0xff]  ;;  %v3393_v8 = vpack.c.bf16 %v328_v5, %v320_v3  ;;  %v832_v12 = vld [vmem:[#allocation6 + $0x1000] sm:$0xff]  ;;  %vm298_vm3 = vcmask 1047559   ;;  %vm1893_vm4 = vcmask 1041408   ;;  %s4756_s6 = smov [#allocation16]  }
  0x85   :  { %v841_v7 = vld [vmem:[#allocation6 + $0x1048] sm:$0xff]  ;;  %v840_v14 = vld [vmem:[#allocation6 + $0x1040] sm:$0xff]  ;;  %vm4755_vm5 = vmmov 0   ;;  %s3147_s22 = sshll.u32 %s4756_s6, 4  ;;  %s3148_s22 = int_to_ptr.vmem [resolvable:$true] %s3147_s22 }
  0x86   :  { %v3519_v9 = vpack.c.bf16 %v841_v7, %v833_v6  ;;  %v337_v10 = vld [vmem:[#allocation6 + $0x88] sm:$0xff]  ;;  %3392 = vmatprep.subr.bf16.mxu0 %v3391_v4  ;;  %v336_v15 = vld [vmem:[#allocation6 + $0x80] sm:$0xff]  ;;  %v3521_v17 = vpack.c.bf16 %v840_v14, %v832_v12  ;;  %s4681_s0 = scalar_lea.vmem %s3148_s22, 256  ;;  %p4686_p1 = scmp.lt.s32.totalorder %s3148_s22, %s3148_s22 }
  0x87   :  { %v345_v11 = vld [vmem:[#allocation6 + $0xc8] sm:$0xff]  ;;  %v344_v16 = vld [vmem:[#allocation6 + $0xc0] sm:$0xff]  ;;  %3394 = vmatpush1.bf16.msra.mxu0 %v3393_v8  ;;  %p4682_p0 = scmp.ne.s32.totalorder %s3148_s22, %s4681_s0  ;;  %p4687_p2 = scmp.lt.s32.totalorder %s4681_s0, %s4681_s0 }
  0x88   :  { %v3395_v13 = vpack.c.bf16 %v345_v11, %v337_v10  ;;  %3520 = vmatprep.subr.bf16.mxu1 %v3519_v9  ;;  %v3397_v18 = vpack.c.bf16 %v344_v16, %v336_v15  ;;  %v849_v19 = vld [vmem:[#allocation6 + $0x1088] sm:$0xff]  ;;  %v848_v24 = vld [vmem:[#allocation6 + $0x1080] sm:$0xff] }
  0x89   :  { %v857_v20 = vld [vmem:[#allocation6 + $0x10c8] sm:$0xff]  ;;  %v856_v25 = vld [vmem:[#allocation6 + $0x10c0] sm:$0xff]  ;;  %3522 = vmatpush1.bf16.msra.mxu1 %v3521_v17  ;;  %p4688_p3 = por %p4687_p2, %p4686_p1 }
  0x8a   :  { %v353_v21 = vld [vmem:[#allocation6 + $0x108] sm:$0xff]  ;;  %3396 = vmatprep.subr.bf16.mxu0 %v3395_v13  ;;  %v3523_v22 = vpack.c.bf16 %v857_v20, %v849_v19  ;;  %v3525_v27 = vpack.c.bf16 %v856_v25, %v848_v24  ;;  %v352_v28 = vld [vmem:[#allocation6 + $0x100] sm:$0xff] }
  0x8b   :  { %v361_v23 = vld [vmem:[#allocation6 + $0x148] sm:$0xff]  ;;  %v360_v29 = vld [vmem:[#allocation6 + $0x140] sm:$0xff]  ;;  %3398 = vmatpush1.bf16.msra.mxu0 %v3397_v18  ;;  %p4689_p4 = pnand %p4688_p3, %p4682_p0 }
  0x8c   :  { %v3399_v26 = vpack.c.bf16 %v361_v23, %v353_v21  ;;  %v865_v30 = vld [vmem:[#allocation6 + $0x1108] sm:$0xff]  ;;  %3524 = vmatprep.subr.bf16.mxu1 %v3523_v22  ;;  %v3401_v34 = vpack.c.bf16 %v360_v29, %v352_v28  ;;  %v864_v36 = vld [vmem:[#allocation6 + $0x1100] sm:$0xff] }
  0x8d   :  { %v873_v31 = vld [vmem:[#allocation6 + $0x1148] sm:$0xff]  ;;  %v872_v37 = vld [vmem:[#allocation6 + $0x1140] sm:$0xff]  ;;  %3526 = vmatpush1.bf16.msra.mxu1 %v3525_v27 }
  0x8e   :  { %v369_v32 = vld [vmem:[#allocation6 + $0x188] sm:$0xff]  ;;  %v3527_v35 = vpack.c.bf16 %v873_v31, %v865_v30  ;;  %v368_v38 = vld [vmem:[#allocation6 + $0x180] sm:$0xff]  ;;  %3400 = vmatprep.subr.bf16.mxu0 %v3399_v26  ;;  %v3529_v43 = vpack.c.bf16 %v872_v37, %v864_v36  ;;  %v128_v36 = vld [vmem:[#allocation3 + $0x8] sm:$0xff] }
  0x8f   :  { %v377_v33 = vld [vmem:[#allocation6 + $0x1c8] sm:$0xff]  ;;  %v376_v40 = vld [vmem:[#allocation6 + $0x1c0] sm:$0xff]  ;;  %3402 = vmatpush1.bf16.msra.mxu0 %v3401_v34 }
  0x90   :  { %v3403_v39 = vpack.c.bf16 %v377_v33, %v369_v32  ;;  %v881_v41 = vld [vmem:[#allocation6 + $0x1188] sm:$0xff]  ;;  %3528 = vmatprep.subr.bf16.mxu1 %v3527_v35  ;;  %v880_v47 = vld [vmem:[#allocation6 + $0x1180] sm:$0xff]  ;;  %v3405_v49 = vpack.c.bf16 %v376_v40, %v368_v38  ;;  %v127_v35 = vld [vmem:[#allocation3] sm:$0xff] }
  0x91   :  { %v889_v42 = vld [vmem:[#allocation6 + $0x11c8] sm:$0xff]  ;;  %v888_v48 = vld [vmem:[#allocation6 + $0x11c0] sm:$0xff]  ;;  %3530 = vmatpush1.bf16.msra.mxu1 %v3529_v43  ;;  %v133_v40 = vld [vmem:[#allocation3 + $0x28] sm:$0xff]  ;;  %v141_v43 = vunpack.c.l.bf16 %v128_v36 }
  0x92   :  { %v385_v44 = vld [vmem:[#allocation6 + $0x208] sm:$0xff]  ;;  %v3531_v46 = vpack.c.bf16 %v889_v42, %v881_v41  ;;  %3404 = vmatprep.subr.bf16.mxu0 %v3403_v39  ;;  %v384_v53 = vld [vmem:[#allocation6 + $0x200] sm:$0xff]  ;;  %v3533_v56 = vpack.c.bf16 %v888_v48, %v880_v47  ;;  %v139_v41 = vunpack.c.l.bf16 %v127_v35  ;;  %v140_v42 = vunpack.c.h.bf16 %v127_v35 }
  0x93   :  { %v393_v45 = vld [vmem:[#allocation6 + $0x248] sm:$0xff]  ;;  %v392_v54 = vld [vmem:[#allocation6 + $0x240] sm:$0xff]  ;;  %3406 = vmatpush1.bf16.msra.mxu0 %v3405_v49 }
  0x94   :  { %v897_v50 = vld [vmem:[#allocation6 + $0x1208] sm:$0xff]  ;;  %v3407_v52 = vpack.c.bf16 %v393_v45, %v385_v44  ;;  %v896_v58 = vld [vmem:[#allocation6 + $0x1200] sm:$0xff]  ;;  %3532 = vmatprep.subr.bf16.mxu1 %v3531_v46  ;;  %v3409_v1 = vpack.c.bf16 %v392_v54, %v384_v53  ;;  %v142_v44 = vunpack.c.h.bf16 %v128_v36 }
  0x95   :  { %v905_v51 = vld [vmem:[#allocation6 + $0x1248] sm:$0xff]  ;;  %v904_v59 = vld [vmem:[#allocation6 + $0x1240] sm:$0xff]  ;;  %3534 = vmatpush1.bf16.msra.mxu1 %v3533_v56  ;;  %v150_v56 = vunpack.c.h.bf16 %v133_v40 }
  0x96   :  { %v401_v55 = vld [vmem:[#allocation6 + $0x288] sm:$0xff]  ;;  %v3535_v60 = vpack.c.bf16 %v905_v51, %v897_v50  ;;  %v400_v61 = vld [vmem:[#allocation6 + $0x280] sm:$0xff]  ;;  %3408 = vmatprep.subr.bf16.mxu0 %v3407_v52  ;;  %v3537_v9 = vpack.c.bf16 %v904_v59, %v896_v58  ;;  %v4911_v52 = vld [vmem:[#allocation3 + $0x44] sm:$0xff] }
  0x97   :  { %v409_v57 = vld [vmem:[#allocation6 + $0x2c8] sm:$0xff]  ;;  %v408_v62 = vld [vmem:[#allocation6 + $0x2c0] sm:$0xff]  ;;  %3410 = vmatpush1.bf16.msra.mxu0 %v3409_v1  ;;  %v156_v1 = vunpack.c.l.bf16 %v4911_v52 }
  0x98   :  { %v913_v63 = vld [vmem:[#allocation6 + $0x1288] sm:$0xff]  ;;  %v3411_v5 = vpack.c.bf16 %v409_v57, %v401_v55  ;;  %v912_v6 = vld [vmem:[#allocation6 + $0x1280] sm:$0xff]  ;;  %3536 = vmatprep.subr.bf16.mxu1 %v3535_v60  ;;  %v3413_v17 = vpack.c.bf16 %v408_v62, %v400_v61  ;;  %v149_v55 = vunpack.c.l.bf16 %v133_v40 }
  0x99   :  { %v921_v2 = vld [vmem:[#allocation6 + $0x12c8] sm:$0xff]  ;;  %v920_v7 = vld [vmem:[#allocation6 + $0x12c0] sm:$0xff]  ;;  %3538 = vmatpush1.bf16.msra.mxu1 %v3537_v9 }
  0x9a   :  { %v417_v3 = vld [vmem:[#allocation6 + $0x308] sm:$0xff]  ;;  %v4889_v8 = vld [vmem:[#allocation6 + $0x300] sm:$0xff]  ;;  %v3539_v13 = vpack.c.bf16 %v921_v2, %v913_v63  ;;  %3412 = vmatprep.subr.bf16.mxu0 %v3411_v5  ;;  %v3541_v22 = vpack.c.bf16 %v920_v7, %v912_v6 }
  0x9b   :  { %v425_v4 = vld [vmem:[#allocation6 + $0x348] sm:$0xff]  ;;  %v424_v10 = vld [vmem:[#allocation6 + $0x340] sm:$0xff]  ;;  %3414 = vmatpush1.bf16.msra.mxu0 %v3413_v17 }
  0x9c   :  { %v929_v11 = vld [vmem:[#allocation6 + $0x1308] sm:$0xff]  ;;  %v4891_v16 = vld [vmem:[#allocation6 + $0x1300] sm:$0xff]  ;;  %v3415_v21 = vpack.c.bf16 %v425_v4, %v417_v3  ;;  %v3417_v23 = vpack.c.bf16 %v424_v10, %v4889_v8  ;;  %3540 = vmatprep.subr.bf16.mxu1 %v3539_v13 }
  0x9d   :  { %v937_v12 = vld [vmem:[#allocation6 + $0x1348] sm:$0xff]  ;;  %v936_v18 = vld [vmem:[#allocation6 + $0x1340] sm:$0xff]  ;;  %3542 = vmatpush1.bf16.msra.mxu1 %v3541_v22 }
  0x9e   :  { %v433_v14 = vld [vmem:[#allocation6 + $0x388] sm:$0xff]  ;;  %v4893_v19 = vld [vmem:[#allocation6 + $0x380] sm:$0xff]  ;;  %v3543_v28 = vpack.c.bf16 %v937_v12, %v929_v11  ;;  %v3545_v30 = vpack.c.bf16 %v936_v18, %v4891_v16  ;;  %3416 = vmatprep.subr.bf16.mxu0 %v3415_v21 }
  0x9f   :  { %v441_v15 = vld [vmem:[#allocation6 + $0x3c8] sm:$0xff]  ;;  %v4895_v20 = vld [vmem:[#allocation6 + $0x3c0] sm:$0xff]  ;;  %3418 = vmatpush1.bf16.msra.mxu0 %v3417_v23 }
  0xa0   :  { %v945_v24 = vld [vmem:[#allocation6 + $0x1388] sm:$0xff]  ;;  %v3419_v29 = vpack.c.bf16 %v441_v15, %v433_v14  ;;  %v3421_v31 = vpack.c.bf16 %v4895_v20, %v4893_v19  ;;  %v4905_v32 = vld [vmem:[#allocation6 + $0x1380] sm:$0xff]  ;;  %3544 = vmatprep.subr.bf16.mxu1 %v3543_v28 }
  0xa1   :  { %v953_v25 = vld [vmem:[#allocation6 + $0x13c8] sm:$0xff]  ;;  %v952_v33 = vld [vmem:[#allocation6 + $0x13c0] sm:$0xff]  ;;  %3546 = vmatpush1.bf16.msra.mxu1 %v3545_v30 }
  0xa2   :  { %v4898_v26 = vld [vmem:[#allocation6 + $0x408] sm:$0xff]  ;;  %v4907_v34 = vld [vmem:[#allocation6 + $0x400] sm:$0xff]  ;;  %v3547_v57 = vpack.c.bf16 %v953_v25, %v945_v24  ;;  %v3549_v61 = vpack.c.bf16 %v952_v33, %v4905_v32  ;;  %3420 = vmatprep.subr.bf16.mxu0 %v3419_v29 }
  0xa3   :  { %v4900_v27 = vld [vmem:[#allocation6 + $0x448] sm:$0xff]  ;;  %v129_v37 = vld [vmem:[#allocation3 + $0x10] ss:$20 sps:$4 sm:$0xff]   ;;  %3422 = vmatpush1.bf16.msra.mxu0 %v3421_v31 }
  0xa4   :  { %v130_v38 = vld [vmem:[#allocation3 + $0x14] sm:$0xff]  ;;  %v131_v39 = vld [vmem:[#allocation3 + $0x1c] sm:$0xff]  ;;  %v143_v48 = vunpack.c.l.bf16 %v129_v37  ;;  %v148_v54 = vunpack.c.h.bf16 %v129_v37  ;;  %v3423_v58 = vpack.c.bf16 %v4900_v27, %v4898_v26  ;;  %3548 = vmatprep.subr.bf16.mxu1 %v3547_v57 }
  0xa5   :  { %v456_v45 = vld [vmem:[#allocation6 + $0x440] sm:$0xff]  ;;  %v136_v47 = vld [vmem:[#allocation3 + $0x3c] sm:$0xff]  ;;  %v144_v49 = vunpack.c.l.bf16 %v130_v38  ;;  %v145_v50 = vunpack.c.h.bf16 %v130_v38  ;;  %v146_v51 = vunpack.c.l.bf16 %v131_v39  ;;  %v147_v53 = vunpack.c.h.bf16 %v131_v39  ;;  %3550 = vmatpush1.bf16.msra.mxu1 %v3549_v61  ;;  %v135_v26 = vld [vmem:[#allocation3 + $0x38] ss:$20 sps:$4 sm:$0xff]  }
  0xa6   :  { %v4909_v46 = vld [vmem:[#allocation3 + $0x30] sm:$0xff]  ;;  %v154_v60 = vunpack.c.l.bf16 %v136_v47  ;;  %v3425_v62 = vpack.c.bf16 %v456_v45, %v4907_v34  ;;  %v155_v63 = vunpack.c.h.bf16 %v136_v47  ;;  %v187_v6 = vadd.f32 %v148_v54, %v143_v48  ;;  %3424 = vmatprep.subr.bf16.mxu0 %v3423_v58  ;;  %v323_v45 = vld [vmem:[#allocation6 + $0x18] sm:$0xff] }
  0xa7   :  { %v151_v59 = vunpack.c.l.bf16 %v4909_v46  ;;  %v159_v2 = vadd.f32 %v144_v49, %v139_v41  ;;  %v166_v3 = vadd.f32 %v145_v50, %v140_v42  ;;  %v173_v4 = vadd.f32 %v146_v51, %v141_v43  ;;  %v331_v50 = vld [vmem:[#allocation6 + $0x58] sm:$0xff]  ;;  %v465_v51 = vld [vmem:[#allocation6 + $0x488] sm:$0xff]  ;;  %v472_v61 = vld [vmem:[#allocation6 + $0x4c0] sm:$0xff] }
  0xa8   :  { %v180_v5 = vadd.f32 %v147_v53, %v142_v44  ;;  %v194_v7 = vadd.f32 %v154_v60, %v149_v55  ;;  %v201_v8 = vadd.f32 %v155_v63, %v150_v56  ;;  %v188_v14 = vrot.slane %v187_v6, 4  ;;  %3426 = vmatpush1.bf16.msra.mxu0 %v3425_v62  ;;  %v464_v60 = vld [vmem:[#allocation6 + $0x480] sm:$0xff] }
  0xa9   :  { %v208_v9 = vadd.f32 %v156_v1, %v151_v59  ;;  %v160_v10 = vrot.slane %v159_v2, 4  ;;  %v167_v11 = vrot.slane %v166_v3, 4  ;;  %v174_v12 = vrot.slane %v173_v4, 4 }
  0xaa   :  { %v181_v13 = vrot.slane %v180_v5, 4  ;;  %v195_v15 = vrot.slane %v194_v7, 4  ;;  %v202_v16 = vrot.slane %v201_v8, 4  ;;  %v189_v22 = vadd.f32 %v188_v14, %v187_v6 }
  0xab   :  { %v209_v17 = vrot.slane %v208_v9, 4  ;;  %v161_v18 = vadd.f32 %v160_v10, %v159_v2  ;;  %v168_v19 = vadd.f32 %v167_v11, %v166_v3  ;;  %v175_v20 = vadd.f32 %v174_v12, %v173_v4  ;;  %v481_v3 = vld [vmem:[#allocation6 + $0x508] sm:$0xff]  ;;  %v488_v10 = vld [vmem:[#allocation6 + $0x540] sm:$0xff] }
  0xac   :  { %v182_v21 = vadd.f32 %v181_v13, %v180_v5  ;;  %v196_v23 = vadd.f32 %v195_v15, %v194_v7  ;;  %v203_v24 = vadd.f32 %v202_v16, %v201_v8  ;;  %v152_v32 = vunpack.c.h.bf16 %v4909_v46  ;;  %v473_v46 = vld [vmem:[#allocation6 + $0x4c8] sm:$0xff] }
  0xad   :  { %v210_v25 = vadd.f32 %v209_v17, %v208_v9  ;;  %v162_v27 = vrot.slane %v161_v18, 2  ;;  %v169_v28 = vrot.slane %v168_v19, 2  ;;  %v176_v29 = vrot.slane %v175_v20, 2  ;;  %v489_v8 = vld [vmem:[#allocation6 + $0x548] sm:$0xff]  ;;  %v480_v9 = vld [vmem:[#allocation6 + $0x500] sm:$0xff] }
  0xae   :  { %v183_v30 = vrot.slane %v182_v21, 2  ;;  %v197_v31 = vrot.slane %v196_v23, 2  ;;  %v204_v33 = vrot.slane %v203_v24, 2  ;;  %v244_v34 = vlaneseq  ;;  %v497_v15 = vld [vmem:[#allocation6 + $0x588] sm:$0xff] }
  0xaf   :  { %v153_v35 = vunpack.c.l.bf16 %v135_v26  ;;  %v163_v36 = vadd.f32 %v162_v27, %v161_v18  ;;  %v190_v37 = vrot.slane %v189_v22, 2  ;;  %v211_v38 = vrot.slane %v210_v25, 2  ;;  %v505_v16 = vld [vmem:[#allocation6 + $0x5c8] sm:$0xff] }
  0xb0   :  { %v157_v39 = vunpack.c.h.bf16 %v4911_v52  ;;  %v158_v40 = vunpack.c.h.bf16 %v135_v26  ;;  %v170_v41 = vadd.f32 %v169_v28, %v168_v19  ;;  %v177_v42 = vadd.f32 %v176_v29, %v175_v20  ;;  %v496_v29 = vld [vmem:[#allocation6 + $0x580] sm:$0xff] }
  0xb1   :  { %v184_v43 = vadd.f32 %v183_v30, %v182_v21  ;;  %v198_v44 = vadd.f32 %v197_v31, %v196_v23  ;;  %v205_v47 = vadd.f32 %v204_v33, %v203_v24  ;;  %v4753_v48 = vmov 1983009808   ;;  %v504_v30 = vld [vmem:[#allocation6 + $0x5c0] sm:$0xff]  ;;  %v513_v31 = vld [vmem:[#allocation6 + $0x608] sm:$0xff] }
  0xb2   :  { %v242_v49 = vunpack.c.l.s4 %v4753_v48  ;;  %v164_v53 = vrot.slane %v163_v36, 1  ;;  %v191_v54 = vadd.f32 %v190_v37, %v189_v22  ;;  %v212_v55 = vadd.f32 %v211_v38, %v210_v25  ;;  %v529_v48 = vld [vmem:[#allocation6 + $0x688] sm:$0xff] }
  0xb3   :  { %v4921_v56 = vshrl.u32 %v244_v34, 7  ;;  %v171_v57 = vrot.slane %v170_v41, 1  ;;  %v178_v58 = vrot.slane %v177_v42, 1  ;;  %v215_v52 = vadd.f32 %v157_v39, %v152_v32  ;;  %v521_v32 = vld [vmem:[#allocation6 + $0x648] sm:$0xff] }
  0xb4   :  { %v222_v59 = vadd.f32 %v158_v40, %v153_v35  ;;  %v185_v62 = vrot.slane %v184_v43, 1  ;;  %v199_v63 = vrot.slane %v198_v44, 1  ;;  %v3551_v1 = vpack.c.bf16 %v331_v50, %v323_v45  ;;  %v512_v45 = vld [vmem:[#allocation6 + $0x600] sm:$0xff] }
  0xb5   :  { %v3427_v2 = vpack.c.bf16 %v473_v46, %v465_v51  ;;  %v206_v4 = vrot.slane %v205_v47, 1  ;;  %v216_v5 = vrot.slane %v215_v52, 4  ;;  %v243_v7 = vunpack.c.0.s8 %v242_v49  ;;  %v537_v49 = vld [vmem:[#allocation6 + $0x6c8] sm:$0xff] }
  0xb6   :  { %v223_v6 = vrot.slane %v222_v59, 4  ;;  %v165_v11 = vadd.f32 %v164_v53, %v163_v36  ;;  %v192_v12 = vrot.slane %v191_v54, 1  ;;  %v213_v13 = vrot.slane %v212_v55, 1  ;;  %3552 = vmatprep.subr.bf16.mxu1 %v3551_v1 }
  0xb7   :  { %3428 = vmatprep.subr.bf16.mxu0 %v3427_v2  ;;  %v3429_v14 = vpack.c.bf16 %v472_v61, %v464_v60  ;;  %v172_v17 = vadd.f32 %v171_v57, %v170_v41  ;;  %v179_v18 = vadd.f32 %v178_v58, %v177_v42  ;;  %v217_v19 = vadd.f32 %v216_v5, %v215_v52  ;;  %v528_v60 = vld [vmem:[#allocation6 + $0x680] sm:$0xff] }
  0xb8   :  { %v224_v20 = vadd.f32 %v223_v6, %v222_v59  ;;  %v186_v21 = vadd.f32 %v185_v62, %v184_v43  ;;  %v200_v22 = vadd.f32 %v199_v63, %v198_v44  ;;  %v3431_v23 = vpack.c.bf16 %v489_v8, %v481_v3  ;;  %v536_v61 = vld [vmem:[#allocation6 + $0x6c0] sm:$0xff]  ;;  %v545_v62 = vld [vmem:[#allocation6 + $0x708] sm:$0xff] }
  0xb9   :  { %3430 = vmatpush1.bf16.msra.mxu0 %v3429_v14  ;;  %v3433_v24 = vpack.c.bf16 %v488_v10, %v480_v9  ;;  %v207_v25 = vadd.f32 %v206_v4, %v205_v47  ;;  %v218_v26 = vrot.slane %v217_v19, 2  ;;  %v3435_v28 = vpack.c.bf16 %v505_v16, %v497_v15  ;;  %v520_v47 = vld [vmem:[#allocation6 + $0x640] sm:$0xff]  ;;  %v553_v63 = vld [vmem:[#allocation6 + $0x748] sm:$0xff] }
  0xba   :  { %v225_v27 = vrot.slane %v224_v20, 2  ;;  %3432 = vmatprep.subr.bf16.mxu0 %v3431_v23  ;;  %v193_v33 = vadd.f32 %v192_v12, %v191_v54  ;;  %v4924_v36 = vsub.s32 %v243_v7, %v4921_v56  ;;  %v214_v37 = vadd.f32 %v213_v13, %v212_v55  ;;  %v544_v8 = vld [vmem:[#allocation6 + $0x700] sm:$0xff]  ;;  %v126_v10 = vld [vmem:[#allocation2 + $0x8] sm:$0x3] }
  0xbb   :  { %v219_v34 = vadd.f32 %v218_v26, %v217_v19  ;;  %v239_v38 = vcombine.low %v165_v11, %v172_v17  ;;  %v240_v39 = vcombine.low %v179_v18, %v186_v21  ;;  %v3437_v40 = vpack.c.bf16 %v504_v30, %v496_v29  ;;  %v552_v9 = vld [vmem:[#allocation6 + $0x740] sm:$0xff]  ;;  %v561_v12 = vld [vmem:[#allocation6 + $0x788] sm:$0xff] }
  0xbc   :  { %v226_v35 = vadd.f32 %v225_v27, %v224_v20  ;;  %v263_v43 = vcombine.low %v200_v22, %v207_v25  ;;  %v3439_v44 = vpack.c.bf16 %v521_v32, %v513_v31  ;;  %v262_v54 = vrot.slane %v193_v33, %v4924_v36  ;;  %v569_v13 = vld [vmem:[#allocation6 + $0x7c8] sm:$0xff]  ;;  %v560_v21 = vld [vmem:[#allocation6 + $0x780] sm:$0xff]  ;;  %v322_v31 = vld [vmem:[#allocation6 + $0x10] sm:$0xff] }
  0xbd   :  { %3434 = vmatpush1.bf16.msra.mxu0 %v3433_v24  ;;  %v220_v41 = vrot.slane %v219_v34, 1  ;;  %v247_v46 = vrot.slane %v239_v38, %v4924_v36  ;;  %v254_v53 = vrot.slane %v240_v39, %v4924_v36  ;;  %v3441_v55 = vpack.c.bf16 %v520_v47, %v512_v45  ;;  %v568_v22 = vld [vmem:[#allocation6 + $0x7c0] sm:$0xff]  ;;  %v577_v24 = vld [vmem:[#allocation6 + $0x808] sm:$0xff] }
  0xbe   :  { %v227_v42 = vrot.slane %v226_v35, 1  ;;  %3436 = vmatprep.subr.bf16.mxu0 %v3435_v28  ;;  %v271_v58 = vrot.slane %v263_v43, %v4924_v36  ;;  %v3443_v59 = vpack.c.bf16 %v537_v49, %v529_v48  ;;  %v3445_v3 = vpack.c.bf16 %v536_v61, %v528_v60  ;;  %v585_v25 = vld [vmem:[#allocation6 + $0x848] sm:$0xff]  ;;  %v576_v32 = vld [vmem:[#allocation6 + $0x800] sm:$0xff]  ;;  %v338_v49 = vld [vmem:[#allocation6 + $0x90] sm:$0xff] }
  0xbf   :  { %v221_v50 = vadd.f32 %v220_v41, %v219_v34  ;;  %v255_v4 = vcombine.low %v247_v46, %v254_v53  ;;  %v3447_v7 = vpack.c.bf16 %v553_v63, %v545_v62  ;;  %v3449_v17 = vpack.c.bf16 %v552_v9, %v544_v8  ;;  %v584_v33 = vld [vmem:[#allocation6 + $0x840] sm:$0xff]  ;;  %v330_v34 = vld [vmem:[#allocation6 + $0x50] sm:$0xff]  ;;  %v601_v38 = vld [vmem:[#allocation6 + $0x8c8] sm:$0xff] }
  0xc0   :  { %v228_v51 = vadd.f32 %v227_v42, %v226_v35  ;;  %v3451_v20 = vpack.c.bf16 %v569_v13, %v561_v12  ;;  %v3453_v28 = vpack.c.bf16 %v568_v22, %v560_v21  ;;  %v3455_v29 = vpack.c.bf16 %v585_v25, %v577_v24  ;;  %v339_v41 = vld [vmem:[#allocation6 + $0x98] sm:$0xff]  ;;  %v600_v46 = vld [vmem:[#allocation6 + $0x8c0] sm:$0xff]  ;;  %v354_v63 = vld [vmem:[#allocation6 + $0x110] sm:$0xff] }
  0xc1   :  { %3438 = vmatpush1.bf16.msra.mxu0 %v3437_v40  ;;  %v264_v57 = vcombine.low %v214_v37, %v221_v50  ;;  %v593_v37 = vld [vmem:[#allocation6 + $0x888] sm:$0xff]  ;;  %v347_v42 = vld [vmem:[#allocation6 + $0xd8] sm:$0xff]  ;;  %v3457_v45 = vpack.c.bf16 %v584_v33, %v576_v32  ;;  %v3553_v48 = vpack.c.bf16 %v330_v34, %v322_v31  ;;  %v370_v12 = vld [vmem:[#allocation6 + $0x190] sm:$0xff] }
  0xc2   :  { %v286_v52 = vrot.slane %v228_v51, %v4924_v36  ;;  %3440 = vmatprep.subr.bf16.mxu0 %v3439_v44  ;;  %v3459_v50 = vpack.c.bf16 %v601_v38, %v593_v37  ;;  %v592_v51 = vld [vmem:[#allocation6 + $0x880] sm:$0xff]  ;;  %v371_v8 = vld [vmem:[#allocation6 + $0x198] sm:$0xff]  ;;  %v386_v24 = vld [vmem:[#allocation6 + $0x210] sm:$0xff] }
  0xc3   :  { %v278_v1 = vrot.slane %v264_v57, %v4924_v36  ;;  %v609_v57 = vld [vmem:[#allocation6 + $0x908] sm:$0xff]  ;;  %v3461_v61 = vpack.c.bf16 %v600_v46, %v592_v51  ;;  %v379_v9 = vld [vmem:[#allocation6 + $0x1d8] sm:$0xff]  ;;  %v402_v38 = vld [vmem:[#allocation6 + $0x290] sm:$0xff] }
  0xc4   :  { %v302_v2 = vrot.slane %v286_v52, 7  ;;  %v355_v52 = vld [vmem:[#allocation6 + $0x118] sm:$0xff]  ;;  %v665_v31 = vld [vmem:[#allocation6 + $0xac8] sm:$0xff] }
  0xc5   :  { %3442 = vmatpush1.bf16.msra.mxu0 %v3441_v55  ;;  %v279_v5 = vcombine.low %v271_v58, %v278_v1  ;;  %v346_v55 = vld [vmem:[#allocation6 + $0xd0] sm:$0xff]  ;;  %v617_v58 = vld [vmem:[#allocation6 + $0x948] sm:$0xff]  ;;  %v395_v21 = vld [vmem:[#allocation6 + $0x258] sm:$0xff] }
  0xc6   :  { %v303_v6 = vsel %vm292_vm0, %v302_v2, %v262_v54  ;;  %3444 = vmatprep.subr.bf16.mxu0 %v3443_v59  ;;  %v3555_v54 = vpack.c.bf16 %v347_v42, %v339_v41  ;;  %v363_v59 = vld [vmem:[#allocation6 + $0x158] sm:$0xff]  ;;  %v3557_v62 = vpack.c.bf16 %v346_v55, %v338_v49  ;;  %v3463_v1 = vpack.c.bf16 %v617_v58, %v609_v57  ;;  %v664_v41 = vld [vmem:[#allocation6 + $0xac0] sm:$0xff] }
  0xc7   :  { %v304_v11 = vsel %vm294_vm1, %v302_v2, %v303_v6  ;;  %v291_v14 = vrot.slane %v279_v5, 7  ;;  %v362_v5 = vld [vmem:[#allocation6 + $0x150] sm:$0xff]  ;;  %v625_v6 = vld [vmem:[#allocation6 + $0x988] sm:$0xff]  ;;  %v403_v32 = vld [vmem:[#allocation6 + $0x298] sm:$0xff] }
  0xc8   :  { %v305_v15 = vsel %vm296_vm2, %v302_v2, %v304_v11  ;;  %v3561_v11 = vpack.c.bf16 %v362_v5, %v354_v63  ;;  %v411_v33 = vld [vmem:[#allocation6 + $0x2d8] sm:$0xff]  ;;  %v672_v57 = vld [vmem:[#allocation6 + $0xb00] sm:$0xff] }
  0xc9   :  { %v306_v16 = vsel %vm298_vm3, %v302_v2, %v305_v15  ;;  %3446 = vmatpush1.bf16.msra.mxu0 %v3445_v3  ;;  %v293_v18 = vsel %vm292_vm0, %v291_v14, %v255_v4  ;;  %v608_v2 = vld [vmem:[#allocation6 + $0x900] sm:$0xff]  ;;  %v3559_v4 = vpack.c.bf16 %v363_v59, %v355_v52  ;;  %v3571_v42 = vpack.c.bf16 %v411_v33, %v403_v32  ;;  %v419_v49 = vld [vmem:[#allocation6 + $0x318] sm:$0xff]  ;;  %v426_v59 = vld [vmem:[#allocation6 + $0x350] sm:$0xff] }
  0xca   :  { %v310_v19 = vadd.f32 %v306_v16, %v126_v10  ;;  %3448 = vmatprep.subr.bf16.mxu0 %v3447_v7  ;;  %v295_v23 = vsel %vm294_vm1, %v291_v14, %v293_v18  ;;  %v616_v3 = vld [vmem:[#allocation6 + $0x940] sm:$0xff]  ;;  %v633_v7 = vld [vmem:[#allocation6 + $0x9c8] sm:$0xff]  ;;  %v3563_v16 = vpack.c.bf16 %v379_v9, %v371_v8  ;;  %v435_v63 = vld [vmem:[#allocation6 + $0x398] sm:$0xff] }
  0xcb   :  { %v297_v26 = vsel %vm296_vm2, %v291_v14, %v295_v23  ;;  %v3465_v10 = vpack.c.bf16 %v616_v3, %v608_v2  ;;  %v3467_v13 = vpack.c.bf16 %v633_v7, %v625_v6  ;;  %v632_v15 = vld [vmem:[#allocation6 + $0x9c0] sm:$0xff]  ;;  %v641_v18 = vld [vmem:[#allocation6 + $0xa08] sm:$0xff]  ;;  %v442_v9 = vld [vmem:[#allocation6 + $0x3d0] sm:$0xff] }
  0xcc   :  { %312 = vst [vmem:[#allocation2 + $0x8] sm:$0x3] %v310_v19  ;;  %v299_v27 = vsel %vm298_vm3, %v291_v14, %v297_v26  ;;  %v624_v14 = vld [vmem:[#allocation6 + $0x980] sm:$0xff]  ;;  %v649_v19 = vld [vmem:[#allocation6 + $0xa48] sm:$0xff]  ;;  %v474_v33 = vld [vmem:[#allocation6 + $0x4d0] sm:$0xff] }
  0xcd   :  { %3450 = vmatpush1.bf16.msra.mxu0 %v3449_v17  ;;  %v318_v30 = vmul.f32 0.25, %v299_v27  ;;  %v378_v17 = vld [vmem:[#allocation6 + $0x1d0] sm:$0xff]  ;;  %v3469_v22 = vpack.c.bf16 %v632_v15, %v624_v14  ;;  %v3471_v25 = vpack.c.bf16 %v649_v19, %v641_v18  ;;  %v640_v26 = vld [vmem:[#allocation6 + $0xa00] sm:$0xff] }
  0xce   :  { %3452 = vmatprep.subr.bf16.mxu0 %v3451_v20  ;;  %v387_v20 = vld [vmem:[#allocation6 + $0x218] sm:$0xff]  ;;  %v3565_v23 = vpack.c.bf16 %v378_v17, %v370_v12  ;;  %v648_v27 = vld [vmem:[#allocation6 + $0xa40] sm:$0xff] }
  0xcf   :  { %v4941_v35 = vrot.slane %v318_v30, %v4924_v36  ;;  %v1004_v39 = vcombine.high %v318_v30, %v318_v30  ;;  %v657_v30 = vld [vmem:[#allocation6 + $0xa88] sm:$0xff]  ;;  %v3473_v34 = vpack.c.bf16 %v648_v27, %v640_v26  ;;  %v680_v58 = vld [vmem:[#allocation6 + $0xb40] sm:$0xff]  ;;  %v451_v12 = vld [vmem:[#allocation6 + $0x418] sm:$0xff] }
  0xd0   :  { %v3481_v2 = vpack.c.bf16 %v680_v58, %v672_v57  ;;  %v688_v6 = vld [vmem:[#allocation6 + $0xb80] sm:$0xff] }
  0xd1   :  { %3454 = vmatpush1.bf16.msra.mxu0 %v3453_v28  ;;  %v4945_v44 = vcombine.high %v4941_v35, %v4941_v35  ;;  %v4948_v47 = vrot.slane %v1004_v39, %v4924_v36  ;;  %v3567_v28 = vpack.c.bf16 %v395_v21, %v387_v20  ;;  %v3475_v39 = vpack.c.bf16 %v665_v31, %v657_v30  ;;  %v696_v7 = vld [vmem:[#allocation6 + $0xbc0] sm:$0xff]  ;;  %v458_v21 = vld [vmem:[#allocation6 + $0x450] sm:$0xff] }
  0xd2   :  { %3456 = vmatprep.subr.bf16.mxu0 %v3455_v29  ;;  %v394_v29 = vld [vmem:[#allocation6 + $0x250] sm:$0xff]  ;;  %v3485_v14 = vpack.c.bf16 %v696_v7, %v688_v6  ;;  %v704_v18 = vld [vmem:[#allocation6 + $0xc00] sm:$0xff] }
  0xd3   :  { %v317_v40 = vld [vmem:[#allocation2 + $0x8] sm:$0x3]  ;;  %1097 = vmatprep.mubr.f32.mxu0 %v4945_v44  ;;  %v4957_v60 = vcombine.high %v4948_v47, %v4948_v47  ;;  %v3569_v37 = vpack.c.bf16 %v394_v29, %v386_v24  ;;  %v712_v19 = vld [vmem:[#allocation6 + $0xc40] sm:$0xff]  ;;  %v467_v24 = vld [vmem:[#allocation6 + $0x498] sm:$0xff] }
  0xd4   :  { %v319_v43 = vmul.f32 0.25, %v317_v40  ;;  %1098 = vmatmul.mubr.f32.vlgmr.msra.gmra.mrb[0].mxu0 %v4941_v35  ;;  %v656_v40 = vld [vmem:[#allocation6 + $0xa80] sm:$0xff]  ;;  %v3489_v26 = vpack.c.bf16 %v712_v19, %v704_v18 }
  0xd5   :  { %3458 = vmatpush1.bf16.msra.mxu0 %v3457_v45  ;;  %1168 = vmatprep.mubr.f32.mxu0 %v4957_v60  ;;  %v673_v45 = vld [vmem:[#allocation6 + $0xb08] sm:$0xff]  ;;  %v3477_v51 = vpack.c.bf16 %v664_v41, %v656_v40  ;;  %v720_v30 = vld [vmem:[#allocation6 + $0xc80] sm:$0xff] }
  0xd6   :  { %v4951_v53 = vrot.slane %v319_v43, %v4924_v36  ;;  %3460 = vmatprep.subr.bf16.mxu0 %v3459_v50  ;;  %v410_v43 = vld [vmem:[#allocation6 + $0x2d0] sm:$0xff]  ;;  %v427_v50 = vld [vmem:[#allocation6 + $0x358] sm:$0xff]  ;;  %v728_v31 = vld [vmem:[#allocation6 + $0xcc0] sm:$0xff] }
  0xd7   :  { %v3573_v46 = vpack.c.bf16 %v410_v43, %v402_v38  ;;  %v3575_v52 = vpack.c.bf16 %v427_v50, %v419_v49  ;;  %v483_v38 = vld [vmem:[#allocation6 + $0x518] sm:$0xff]  ;;  %v3493_v40 = vpack.c.bf16 %v728_v31, %v720_v30  ;;  %v490_v50 = vld [vmem:[#allocation6 + $0x550] sm:$0xff] }
  0xd8   :  { %1240 = vmatmul.mubr.f32.vlgmr.msra.gmra.mrb[0].mxu1 %v4951_v53 }
  0xd9   :  { %3554 = vmatpush1.bf16.msra.mxu1 %v3553_v48  ;;  %1310 = vmatprep.mubr.f32.mxu1 %v4945_v44  ;;  %v681_v48 = vld [vmem:[#allocation6 + $0xb48] sm:$0xff] }
  0xda   :  { %3556 = vmatprep.subr.bf16.mxu1 %v3555_v54  ;;  %3462 = vmatpush1.bf16.msra.mxu0 %v3461_v61  ;;  %v418_v54 = vld [vmem:[#allocation6 + $0x310] sm:$0xff]  ;;  %v3479_v55 = vpack.c.bf16 %v681_v48, %v673_v45  ;;  %v689_v61 = vld [vmem:[#allocation6 + $0xb88] sm:$0xff]  ;;  %v736_v45 = vld [vmem:[#allocation6 + $0xd00] sm:$0xff] }
  0xdb   :  { %3464 = vmatprep.subr.bf16.mxu0 %v3463_v1  ;;  %v443_v1 = vld [vmem:[#allocation6 + $0x3d8] sm:$0xff]  ;;  %v3577_v3 = vpack.c.bf16 %v426_v59, %v418_v54  ;;  %v744_v48 = vld [vmem:[#allocation6 + $0xd40] sm:$0xff] }
  0xdc   :  { %v3579_v8 = vpack.c.bf16 %v443_v1, %v435_v63  ;;  %v499_v54 = vld [vmem:[#allocation6 + $0x598] sm:$0xff]  ;;  %v3497_v57 = vpack.c.bf16 %v744_v48, %v736_v45  ;;  %v506_v1 = vld [vmem:[#allocation6 + $0x5d0] sm:$0xff] }
  0xdd   :  { %3558 = vmatpush1.bf16.msra.mxu1 %v3557_v62  ;;  %v697_v62 = vld [vmem:[#allocation6 + $0xbc8] sm:$0xff] }
  0xde   :  { %3560 = vmatprep.subr.bf16.mxu1 %v3559_v4  ;;  %3466 = vmatpush1.bf16.msra.mxu0 %v3465_v10  ;;  %v434_v4 = vld [vmem:[#allocation6 + $0x390] sm:$0xff]  ;;  %v3483_v5 = vpack.c.bf16 %v697_v62, %v689_v61  ;;  %v705_v10 = vld [vmem:[#allocation6 + $0xc08] sm:$0xff]  ;;  %v752_v61 = vld [vmem:[#allocation6 + $0xd80] sm:$0xff] }
  0xdf   :  { %3468 = vmatprep.subr.bf16.mxu0 %v3467_v13  ;;  %v459_v13 = vld [vmem:[#allocation6 + $0x458] sm:$0xff]  ;;  %v3581_v15 = vpack.c.bf16 %v442_v9, %v434_v4  ;;  %v760_v62 = vld [vmem:[#allocation6 + $0xdc0] sm:$0xff] }
  0xe0   :  { %v3583_v20 = vpack.c.bf16 %v459_v13, %v451_v12  ;;  %v515_v4 = vld [vmem:[#allocation6 + $0x618] sm:$0xff]  ;;  %v3501_v6 = vpack.c.bf16 %v760_v62, %v752_v61  ;;  %v522_v13 = vld [vmem:[#allocation6 + $0x650] sm:$0xff] }
  0xe1   :  { %3562 = vmatpush1.bf16.msra.mxu1 %v3561_v11  ;;  %v713_v11 = vld [vmem:[#allocation6 + $0xc48] sm:$0xff] }
  0xe2   :  { %3564 = vmatprep.subr.bf16.mxu1 %v3563_v16  ;;  %3470 = vmatpush1.bf16.msra.mxu0 %v3469_v22  ;;  %v450_v16 = vld [vmem:[#allocation6 + $0x410] sm:$0xff]  ;;  %v3487_v17 = vpack.c.bf16 %v713_v11, %v705_v10  ;;  %v721_v22 = vld [vmem:[#allocation6 + $0xc88] sm:$0xff]  ;;  %v768_v10 = vld [vmem:[#allocation6 + $0xe00] sm:$0xff] }
  0xe3   :  { %3472 = vmatprep.subr.bf16.mxu0 %v3471_v25  ;;  %v475_v25 = vld [vmem:[#allocation6 + $0x4d8] sm:$0xff]  ;;  %v3585_v27 = vpack.c.bf16 %v458_v21, %v450_v16  ;;  %v776_v11 = vld [vmem:[#allocation6 + $0xe40] sm:$0xff] }
  0xe4   :  { %v3587_v32 = vpack.c.bf16 %v475_v25, %v467_v24  ;;  %v531_v16 = vld [vmem:[#allocation6 + $0x698] sm:$0xff]  ;;  %v3505_v18 = vpack.c.bf16 %v776_v11, %v768_v10  ;;  %v538_v25 = vld [vmem:[#allocation6 + $0x6d0] sm:$0xff] }
  0xe5   :  { %3566 = vmatpush1.bf16.msra.mxu1 %v3565_v23  ;;  %v729_v23 = vld [vmem:[#allocation6 + $0xcc8] sm:$0xff] }
  0xe6   :  { %3568 = vmatprep.subr.bf16.mxu1 %v3567_v28  ;;  %3474 = vmatpush1.bf16.msra.mxu0 %v3473_v34  ;;  %v466_v28 = vld [vmem:[#allocation6 + $0x490] sm:$0xff]  ;;  %v3491_v29 = vpack.c.bf16 %v729_v23, %v721_v22  ;;  %v737_v34 = vld [vmem:[#allocation6 + $0xd08] sm:$0xff]  ;;  %v784_v22 = vld [vmem:[#allocation6 + $0xe80] sm:$0xff] }
  0xe7   :  { %3476 = vmatprep.subr.bf16.mxu0 %v3475_v39  ;;  %v491_v39 = vld [vmem:[#allocation6 + $0x558] sm:$0xff]  ;;  %v3589_v41 = vpack.c.bf16 %v474_v33, %v466_v28  ;;  %v792_v23 = vld [vmem:[#allocation6 + $0xec0] sm:$0xff] }
  0xe8   :  { %v3591_v49 = vpack.c.bf16 %v491_v39, %v483_v38  ;;  %v547_v28 = vld [vmem:[#allocation6 + $0x718] sm:$0xff]  ;;  %v3509_v30 = vpack.c.bf16 %v792_v23, %v784_v22  ;;  %v554_v39 = vld [vmem:[#allocation6 + $0x750] sm:$0xff] }
  0xe9   :  { %3570 = vmatpush1.bf16.msra.mxu1 %v3569_v37  ;;  %v745_v37 = vld [vmem:[#allocation6 + $0xd48] sm:$0xff] }
  0xea   :  { %3572 = vmatprep.subr.bf16.mxu1 %v3571_v42  ;;  %3478 = vmatpush1.bf16.msra.mxu0 %v3477_v51  ;;  %v482_v42 = vld [vmem:[#allocation6 + $0x510] sm:$0xff]  ;;  %v3495_v43 = vpack.c.bf16 %v745_v37, %v737_v34  ;;  %v753_v51 = vld [vmem:[#allocation6 + $0xd88] sm:$0xff]  ;;  %v800_v34 = vld [vmem:[#allocation6 + $0xf00] sm:$0xff] }
  0xeb   :  { %3480 = vmatprep.subr.bf16.mxu0 %v3479_v55  ;;  %v507_v55 = vld [vmem:[#allocation6 + $0x5d8] sm:$0xff]  ;;  %v3593_v58 = vpack.c.bf16 %v490_v50, %v482_v42  ;;  %v808_v37 = vld [vmem:[#allocation6 + $0xf40] sm:$0xff] }
  0xec   :  { %v3595_v63 = vpack.c.bf16 %v507_v55, %v499_v54  ;;  %v563_v42 = vld [vmem:[#allocation6 + $0x798] sm:$0xff]  ;;  %v3513_v45 = vpack.c.bf16 %v808_v37, %v800_v34  ;;  %v570_v55 = vld [vmem:[#allocation6 + $0x7d0] sm:$0xff] }
  0xed   :  { %3574 = vmatpush1.bf16.msra.mxu1 %v3573_v46  ;;  %v761_v46 = vld [vmem:[#allocation6 + $0xdc8] sm:$0xff] }
  0xee   :  { %3576 = vmatprep.subr.bf16.mxu1 %v3575_v52  ;;  %3482 = vmatpush1.bf16.msra.mxu0 %v3481_v2  ;;  %v498_v52 = vld [vmem:[#allocation6 + $0x590] sm:$0xff]  ;;  %v3499_v59 = vpack.c.bf16 %v761_v46, %v753_v51  ;;  %v769_v2 = vld [vmem:[#allocation6 + $0xe08] sm:$0xff]  ;;  %v816_v51 = vld [vmem:[#allocation6 + $0xf80] sm:$0xff] }
  0xef   :  { %3484 = vmatprep.subr.bf16.mxu0 %v3483_v5  ;;  %v523_v5 = vld [vmem:[#allocation6 + $0x658] sm:$0xff]  ;;  %v3597_v7 = vpack.c.bf16 %v506_v1, %v498_v52  ;;  %v824_v46 = vld [vmem:[#allocation6 + $0xfc0] sm:$0xff] }
  0xf0   :  { %v3599_v12 = vpack.c.bf16 %v523_v5, %v515_v4  ;;  %v579_v52 = vld [vmem:[#allocation6 + $0x818] sm:$0xff]  ;;  %v3517_v61 = vpack.c.bf16 %v824_v46, %v816_v51  ;;  %v586_v5 = vld [vmem:[#allocation6 + $0x850] sm:$0xff] }
  0xf1   :  { %3578 = vmatpush1.bf16.msra.mxu1 %v3577_v3  ;;  %v777_v3 = vld [vmem:[#allocation6 + $0xe48] sm:$0xff] }
  0xf2   :  { %3580 = vmatprep.subr.bf16.mxu1 %v3579_v8  ;;  %3486 = vmatpush1.bf16.msra.mxu0 %v3485_v14  ;;  %v514_v8 = vld [vmem:[#allocation6 + $0x610] sm:$0xff]  ;;  %v3503_v9 = vpack.c.bf16 %v777_v3, %v769_v2  ;;  %v785_v14 = vld [vmem:[#allocation6 + $0xe88] sm:$0xff]  ;;  %v324_v2 = vld [vmem:[#allocation6 + $0x20] sm:$0xff] }
  0xf3   :  { %3488 = vmatprep.subr.bf16.mxu0 %v3487_v17  ;;  %v539_v17 = vld [vmem:[#allocation6 + $0x6d8] sm:$0xff]  ;;  %v3601_v19 = vpack.c.bf16 %v522_v13, %v514_v8  ;;  %v332_v3 = vld [vmem:[#allocation6 + $0x60] sm:$0xff] }
  0xf4   :  { %v3603_v24 = vpack.c.bf16 %v539_v17, %v531_v16  ;;  %v595_v8 = vld [vmem:[#allocation6 + $0x898] sm:$0xff]  ;;  %v3713_v10 = vpack.c.bf16 %v332_v3, %v324_v2  ;;  %v602_v17 = vld [vmem:[#allocation6 + $0x8d0] sm:$0xff] }
  0xf5   :  { %3582 = vmatpush1.bf16.msra.mxu1 %v3581_v15  ;;  %v793_v15 = vld [vmem:[#allocation6 + $0xec8] sm:$0xff] }
  0xf6   :  { %3584 = vmatprep.subr.bf16.mxu1 %v3583_v20  ;;  %3490 = vmatpush1.bf16.msra.mxu0 %v3489_v26  ;;  %v530_v20 = vld [vmem:[#allocation6 + $0x690] sm:$0xff]  ;;  %v3507_v21 = vpack.c.bf16 %v793_v15, %v785_v14  ;;  %v801_v26 = vld [vmem:[#allocation6 + $0xf08] sm:$0xff]  ;;  %v340_v14 = vld [vmem:[#allocation6 + $0xa0] sm:$0xff] }
  0xf7   :  { %3492 = vmatprep.subr.bf16.mxu0 %v3491_v29  ;;  %v555_v29 = vld [vmem:[#allocation6 + $0x758] sm:$0xff]  ;;  %v3605_v31 = vpack.c.bf16 %v538_v25, %v530_v20  ;;  %v348_v15 = vld [vmem:[#allocation6 + $0xe0] sm:$0xff] }
  0xf8   :  { %v3607_v38 = vpack.c.bf16 %v555_v29, %v547_v28  ;;  %v611_v20 = vld [vmem:[#allocation6 + $0x918] sm:$0xff]  ;;  %v3717_v22 = vpack.c.bf16 %v348_v15, %v340_v14  ;;  %v618_v29 = vld [vmem:[#allocation6 + $0x950] sm:$0xff] }
  0xf9   :  { %3586 = vmatpush1.bf16.msra.mxu1 %v3585_v27  ;;  %v809_v27 = vld [vmem:[#allocation6 + $0xf48] sm:$0xff] }
  0xfa   :  { %3588 = vmatprep.subr.bf16.mxu1 %v3587_v32  ;;  %3494 = vmatpush1.bf16.msra.mxu0 %v3493_v40  ;;  %v546_v32 = vld [vmem:[#allocation6 + $0x710] sm:$0xff]  ;;  %v3511_v33 = vpack.c.bf16 %v809_v27, %v801_v26  ;;  %v817_v40 = vld [vmem:[#allocation6 + $0xf88] sm:$0xff]  ;;  %v356_v26 = vld [vmem:[#allocation6 + $0x120] sm:$0xff] }
  0xfb   :  { %3496 = vmatprep.subr.bf16.mxu0 %v3495_v43  ;;  %v571_v43 = vld [vmem:[#allocation6 + $0x7d8] sm:$0xff]  ;;  %v3609_v48 = vpack.c.bf16 %v554_v39, %v546_v32  ;;  %v364_v27 = vld [vmem:[#allocation6 + $0x160] sm:$0xff] }
  0xfc   :  { %v3611_v54 = vpack.c.bf16 %v571_v43, %v563_v42  ;;  %v627_v32 = vld [vmem:[#allocation6 + $0x998] sm:$0xff]  ;;  %v3721_v34 = vpack.c.bf16 %v364_v27, %v356_v26  ;;  %v634_v43 = vld [vmem:[#allocation6 + $0x9d0] sm:$0xff] }
  0xfd   :  { %3590 = vmatpush1.bf16.msra.mxu1 %v3589_v41  ;;  %v825_v41 = vld [vmem:[#allocation6 + $0xfc8] sm:$0xff] }
  0xfe   :  { %3592 = vmatprep.subr.bf16.mxu1 %v3591_v49  ;;  %3498 = vmatpush1.bf16.msra.mxu0 %v3497_v57  ;;  %v562_v49 = vld [vmem:[#allocation6 + $0x790] sm:$0xff]  ;;  %v3515_v50 = vpack.c.bf16 %v825_v41, %v817_v40  ;;  %v325_v57 = vld [vmem:[#allocation6 + $0x28] sm:$0xff]  ;;  %v372_v40 = vld [vmem:[#allocation6 + $0x1a0] sm:$0xff] }
  0xff   :  { %3500 = vmatprep.subr.bf16.mxu0 %v3499_v59  ;;  %v587_v59 = vld [vmem:[#allocation6 + $0x858] sm:$0xff]  ;;  %v3613_v62 = vpack.c.bf16 %v570_v55, %v562_v49  ;;  %v380_v41 = vld [vmem:[#allocation6 + $0x1e0] sm:$0xff] }
 0x100   :  { %v3615_v4 = vpack.c.bf16 %v587_v59, %v579_v52  ;;  %v643_v49 = vld [vmem:[#allocation6 + $0xa18] sm:$0xff]  ;;  %v3725_v51 = vpack.c.bf16 %v380_v41, %v372_v40  ;;  %v650_v59 = vld [vmem:[#allocation6 + $0xa50] sm:$0xff] }
 0x101   :  { %3594 = vmatpush1.bf16.msra.mxu1 %v3593_v58  ;;  %v333_v58 = vld [vmem:[#allocation6 + $0x68] sm:$0xff] }
 0x102   :  { %3596 = vmatprep.subr.bf16.mxu1 %v3595_v63  ;;  %3502 = vmatpush1.bf16.msra.mxu0 %v3501_v6  ;;  %v578_v63 = vld [vmem:[#allocation6 + $0x810] sm:$0xff]  ;;  %v3711_v1 = vpack.c.bf16 %v333_v58, %v325_v57  ;;  %v341_v6 = vld [vmem:[#allocation6 + $0xa8] sm:$0xff]  ;;  %v388_v57 = vld [vmem:[#allocation6 + $0x220] sm:$0xff] }
 0x103   :  { %3504 = vmatprep.subr.bf16.mxu0 %v3503_v9  ;;  %v603_v9 = vld [vmem:[#allocation6 + $0x8d8] sm:$0xff]  ;;  %v3617_v11 = vpack.c.bf16 %v586_v5, %v578_v63  ;;  %v396_v58 = vld [vmem:[#allocation6 + $0x260] sm:$0xff] }
 0x104   :  { %v3619_v16 = vpack.c.bf16 %v603_v9, %v595_v8  ;;  %v659_v63 = vld [vmem:[#allocation6 + $0xa98] sm:$0xff]  ;;  %v3729_v2 = vpack.c.bf16 %v396_v58, %v388_v57  ;;  %v666_v9 = vld [vmem:[#allocation6 + $0xad0] sm:$0xff] }
 0x105   :  { %3598 = vmatpush1.bf16.msra.mxu1 %v3597_v7  ;;  %v349_v7 = vld [vmem:[#allocation6 + $0xe8] sm:$0xff] }
 0x106   :  { %3600 = vmatprep.subr.bf16.mxu1 %v3599_v12  ;;  %3506 = vmatpush1.bf16.msra.mxu0 %v3505_v18  ;;  %v594_v12 = vld [vmem:[#allocation6 + $0x890] sm:$0xff]  ;;  %v3715_v13 = vpack.c.bf16 %v349_v7, %v341_v6  ;;  %v357_v18 = vld [vmem:[#allocation6 + $0x128] sm:$0xff]  ;;  %v404_v6 = vld [vmem:[#allocation6 + $0x2a0] sm:$0xff] }
 0x107   :  { %3508 = vmatprep.subr.bf16.mxu0 %v3507_v21  ;;  %v619_v21 = vld [vmem:[#allocation6 + $0x958] sm:$0xff]  ;;  %v3621_v23 = vpack.c.bf16 %v602_v17, %v594_v12  ;;  %v412_v7 = vld [vmem:[#allocation6 + $0x2e0] sm:$0xff] }
 0x108   :  { %v3623_v28 = vpack.c.bf16 %v619_v21, %v611_v20  ;;  %v675_v12 = vld [vmem:[#allocation6 + $0xb18] sm:$0xff]  ;;  %v3733_v14 = vpack.c.bf16 %v412_v7, %v404_v6  ;;  %v682_v21 = vld [vmem:[#allocation6 + $0xb50] sm:$0xff] }
 0x109   :  { %3602 = vmatpush1.bf16.msra.mxu1 %v3601_v19  ;;  %v365_v19 = vld [vmem:[#allocation6 + $0x168] sm:$0xff] }
 0x10a   :  { %3604 = vmatprep.subr.bf16.mxu1 %v3603_v24  ;;  %3510 = vmatpush1.bf16.msra.mxu0 %v3509_v30  ;;  %v610_v24 = vld [vmem:[#allocation6 + $0x910] sm:$0xff]  ;;  %v3719_v25 = vpack.c.bf16 %v365_v19, %v357_v18  ;;  %v373_v30 = vld [vmem:[#allocation6 + $0x1a8] sm:$0xff]  ;;  %v420_v18 = vld [vmem:[#allocation6 + $0x320] sm:$0xff] }
 0x10b   :  { %3512 = vmatprep.subr.bf16.mxu0 %v3511_v33  ;;  %v635_v33 = vld [vmem:[#allocation6 + $0x9d8] sm:$0xff]  ;;  %v3625_v37 = vpack.c.bf16 %v618_v29, %v610_v24  ;;  %v428_v19 = vld [vmem:[#allocation6 + $0x360] sm:$0xff] }
 0x10c   :  { %v3627_v42 = vpack.c.bf16 %v635_v33, %v627_v32  ;;  %v691_v24 = vld [vmem:[#allocation6 + $0xb98] sm:$0xff]  ;;  %v3737_v26 = vpack.c.bf16 %v428_v19, %v420_v18  ;;  %v698_v33 = vld [vmem:[#allocation6 + $0xbd0] sm:$0xff] }
 0x10d   :  { %3606 = vmatpush1.bf16.msra.mxu1 %v3605_v31  ;;  %v381_v31 = vld [vmem:[#allocation6 + $0x1e8] sm:$0xff] }
 0x10e   :  { %3608 = vmatprep.subr.bf16.mxu1 %v3607_v38  ;;  %3514 = vmatpush1.bf16.msra.mxu0 %v3513_v45  ;;  %v626_v38 = vld [vmem:[#allocation6 + $0x990] sm:$0xff]  ;;  %v3723_v39 = vpack.c.bf16 %v381_v31, %v373_v30  ;;  %v389_v45 = vld [vmem:[#allocation6 + $0x228] sm:$0xff]  ;;  %v436_v30 = vld [vmem:[#allocation6 + $0x3a0] sm:$0xff] }
 0x10f   :  { %3516 = vmatprep.subr.bf16.mxu0 %v3515_v50  ;;  %v651_v50 = vld [vmem:[#allocation6 + $0xa58] sm:$0xff]  ;;  %v3629_v46 = vpack.c.bf16 %v634_v43, %v626_v38  ;;  %v444_v31 = vld [vmem:[#allocation6 + $0x3e0] sm:$0xff] }
 0x110   :  { %v3631_v52 = vpack.c.bf16 %v651_v50, %v643_v49  ;;  %v707_v38 = vld [vmem:[#allocation6 + $0xc18] sm:$0xff]  ;;  %v3741_v40 = vpack.c.bf16 %v444_v31, %v436_v30  ;;  %v714_v50 = vld [vmem:[#allocation6 + $0xc50] sm:$0xff] }
 0x111   :  { %3610 = vmatpush1.bf16.msra.mxu1 %v3609_v48  ;;  %v397_v48 = vld [vmem:[#allocation6 + $0x268] sm:$0xff] }
 0x112   :  { %3612 = vmatprep.subr.bf16.mxu1 %v3611_v54  ;;  %3518 = vmatpush1.bf16.msra.mxu0 %v3517_v61  ;;  %v642_v54 = vld [vmem:[#allocation6 + $0xa10] sm:$0xff]  ;;  %v3727_v55 = vpack.c.bf16 %v397_v48, %v389_v45  ;;  %v405_v61 = vld [vmem:[#allocation6 + $0x2a8] sm:$0xff]  ;;  %v452_v45 = vld [vmem:[#allocation6 + $0x420] sm:$0xff] }
 0x113   :  { %3712 = vmatprep.subr.bf16.mxu0 %v3711_v1  ;;  %v667_v1 = vld [vmem:[#allocation6 + $0xad8] sm:$0xff]  ;;  %v3633_v3 = vpack.c.bf16 %v650_v59, %v642_v54  ;;  %v460_v48 = vld [vmem:[#allocation6 + $0x460] sm:$0xff] }
 0x114   :  { %v3635_v8 = vpack.c.bf16 %v667_v1, %v659_v63  ;;  %v723_v54 = vld [vmem:[#allocation6 + $0xc98] sm:$0xff]  ;;  %v3745_v57 = vpack.c.bf16 %v460_v48, %v452_v45  ;;  %v730_v1 = vld [vmem:[#allocation6 + $0xcd0] sm:$0xff] }
 0x115   :  { %3614 = vmatpush1.bf16.msra.mxu1 %v3613_v62  ;;  %1169 = vmatmul.mubr.f32.vlgmr.msra.gmra.mrb[0].mxu0 %v4948_v47  ;;  %v413_v62 = vld [vmem:[#allocation6 + $0x2e8] sm:$0xff] }
 0x116   :  { %3616 = vmatprep.subr.bf16.mxu1 %v3615_v4  ;;  %3714 = vmatpush1.bf16.msra.mxu0 %v3713_v10  ;;  %v658_v4 = vld [vmem:[#allocation6 + $0xa90] sm:$0xff]  ;;  %v3731_v5 = vpack.c.bf16 %v413_v62, %v405_v61  ;;  %v421_v10 = vld [vmem:[#allocation6 + $0x328] sm:$0xff]  ;;  %v468_v61 = vld [vmem:[#allocation6 + $0x4a0] sm:$0xff] }
 0x117   :  { %3716 = vmatprep.subr.bf16.mxu0 %v3715_v13  ;;  %1523 = vmatprep.mubr.f32.mxu0 %v4945_v44  ;;  %v683_v13 = vld [vmem:[#allocation6 + $0xb58] sm:$0xff]  ;;  %v3637_v15 = vpack.c.bf16 %v666_v9, %v658_v4  ;;  %v476_v62 = vld [vmem:[#allocation6 + $0x4e0] sm:$0xff] }
 0x118   :  { %1311 = vmatmul.mubr.f32.vlgmr.msra.gmra.mrb[2].mxu1 %v4941_v35  ;;  %v3639_v20 = vpack.c.bf16 %v683_v13, %v675_v12  ;;  %v739_v4 = vld [vmem:[#allocation6 + $0xd18] sm:$0xff]  ;;  %v3749_v6 = vpack.c.bf16 %v476_v62, %v468_v61  ;;  %v746_v13 = vld [vmem:[#allocation6 + $0xd50] sm:$0xff] }
 0x119   :  { %3618 = vmatpush1.bf16.msra.mxu1 %v3617_v11  ;;  %1381 = vmatprep.mubr.f32.mxu1 %v4957_v60  ;;  %v429_v11 = vld [vmem:[#allocation6 + $0x368] sm:$0xff] }
 0x11a   :  { %3620 = vmatprep.subr.bf16.mxu1 %v3619_v16  ;;  %3718 = vmatpush1.bf16.msra.mxu0 %v3717_v22  ;;  %v674_v16 = vld [vmem:[#allocation6 + $0xb10] sm:$0xff]  ;;  %v3735_v17 = vpack.c.bf16 %v429_v11, %v421_v10  ;;  %v437_v22 = vld [vmem:[#allocation6 + $0x3a8] sm:$0xff]  ;;  %v484_v10 = vld [vmem:[#allocation6 + $0x520] sm:$0xff] }
 0x11b   :  { %3720 = vmatprep.subr.bf16.mxu0 %v3719_v25  ;;  %v699_v25 = vld [vmem:[#allocation6 + $0xbd8] sm:$0xff]  ;;  %v3641_v27 = vpack.c.bf16 %v682_v21, %v674_v16  ;;  %v492_v11 = vld [vmem:[#allocation6 + $0x560] sm:$0xff] }
 0x11c   :  { %v3643_v32 = vpack.c.bf16 %v699_v25, %v691_v24  ;;  %v755_v16 = vld [vmem:[#allocation6 + $0xd98] sm:$0xff]  ;;  %v3753_v18 = vpack.c.bf16 %v492_v11, %v484_v10  ;;  %v762_v25 = vld [vmem:[#allocation6 + $0xdd0] sm:$0xff] }
 0x11d   :  { %3622 = vmatpush1.bf16.msra.mxu1 %v3621_v23  ;;  %v445_v23 = vld [vmem:[#allocation6 + $0x3e8] sm:$0xff] }
 0x11e   :  { %3624 = vmatprep.subr.bf16.mxu1 %v3623_v28  ;;  %3722 = vmatpush1.bf16.msra.mxu0 %v3721_v34  ;;  %v690_v28 = vld [vmem:[#allocation6 + $0xb90] sm:$0xff]  ;;  %v3739_v29 = vpack.c.bf16 %v445_v23, %v437_v22  ;;  %v453_v34 = vld [vmem:[#allocation6 + $0x428] sm:$0xff]  ;;  %v500_v22 = vld [vmem:[#allocation6 + $0x5a0] sm:$0xff] }
 0x11f   :  { %3724 = vmatprep.subr.bf16.mxu0 %v3723_v39  ;;  %v715_v39 = vld [vmem:[#allocation6 + $0xc58] sm:$0xff]  ;;  %v3645_v41 = vpack.c.bf16 %v698_v33, %v690_v28  ;;  %v508_v23 = vld [vmem:[#allocation6 + $0x5e0] sm:$0xff] }
 0x120   :  { %v3647_v49 = vpack.c.bf16 %v715_v39, %v707_v38  ;;  %v771_v28 = vld [vmem:[#allocation6 + $0xe18] sm:$0xff]  ;;  %v3757_v30 = vpack.c.bf16 %v508_v23, %v500_v22  ;;  %v778_v39 = vld [vmem:[#allocation6 + $0xe50] sm:$0xff] }
 0x121   :  { %3626 = vmatpush1.bf16.msra.mxu1 %v3625_v37  ;;  %v461_v37 = vld [vmem:[#allocation6 + $0x468] sm:$0xff] }
 0x122   :  { %3628 = vmatprep.subr.bf16.mxu1 %v3627_v42  ;;  %3726 = vmatpush1.bf16.msra.mxu0 %v3725_v51  ;;  %v706_v42 = vld [vmem:[#allocation6 + $0xc10] sm:$0xff]  ;;  %v3743_v43 = vpack.c.bf16 %v461_v37, %v453_v34  ;;  %v469_v51 = vld [vmem:[#allocation6 + $0x4a8] sm:$0xff]  ;;  %v516_v34 = vld [vmem:[#allocation6 + $0x620] sm:$0xff] }
 0x123   :  { %3728 = vmatprep.subr.bf16.mxu0 %v3727_v55  ;;  %v731_v55 = vld [vmem:[#allocation6 + $0xcd8] sm:$0xff]  ;;  %v3649_v58 = vpack.c.bf16 %v714_v50, %v706_v42  ;;  %v524_v37 = vld [vmem:[#allocation6 + $0x660] sm:$0xff] }
 0x124   :  { %v3651_v63 = vpack.c.bf16 %v731_v55, %v723_v54  ;;  %v787_v42 = vld [vmem:[#allocation6 + $0xe98] sm:$0xff]  ;;  %v3761_v45 = vpack.c.bf16 %v524_v37, %v516_v34  ;;  %v794_v55 = vld [vmem:[#allocation6 + $0xed0] sm:$0xff] }
 0x125   :  { %3630 = vmatpush1.bf16.msra.mxu1 %v3629_v46  ;;  %v477_v46 = vld [vmem:[#allocation6 + $0x4e8] sm:$0xff] }
 0x126   :  { %3632 = vmatprep.subr.bf16.mxu1 %v3631_v52  ;;  %3730 = vmatpush1.bf16.msra.mxu0 %v3729_v2  ;;  %v722_v52 = vld [vmem:[#allocation6 + $0xc90] sm:$0xff]  ;;  %v3747_v59 = vpack.c.bf16 %v477_v46, %v469_v51  ;;  %v485_v2 = vld [vmem:[#allocation6 + $0x528] sm:$0xff]  ;;  %v532_v51 = vld [vmem:[#allocation6 + $0x6a0] sm:$0xff] }
 0x127   :  { %3732 = vmatprep.subr.bf16.mxu0 %v3731_v5  ;;  %v747_v5 = vld [vmem:[#allocation6 + $0xd58] sm:$0xff]  ;;  %v3653_v7 = vpack.c.bf16 %v730_v1, %v722_v52  ;;  %v540_v46 = vld [vmem:[#allocation6 + $0x6e0] sm:$0xff] }
 0x128   :  { %v3655_v12 = vpack.c.bf16 %v747_v5, %v739_v4  ;;  %v803_v52 = vld [vmem:[#allocation6 + $0xf18] sm:$0xff]  ;;  %v3765_v61 = vpack.c.bf16 %v540_v46, %v532_v51  ;;  %v810_v5 = vld [vmem:[#allocation6 + $0xf50] sm:$0xff] }
 0x129   :  { %3634 = vmatpush1.bf16.msra.mxu1 %v3633_v3  ;;  %v493_v3 = vld [vmem:[#allocation6 + $0x568] sm:$0xff] }
 0x12a   :  { %3636 = vmatprep.subr.bf16.mxu1 %v3635_v8  ;;  %3734 = vmatpush1.bf16.msra.mxu0 %v3733_v14  ;;  %v738_v8 = vld [vmem:[#allocation6 + $0xd10] sm:$0xff]  ;;  %v3751_v9 = vpack.c.bf16 %v493_v3, %v485_v2  ;;  %v501_v14 = vld [vmem:[#allocation6 + $0x5a8] sm:$0xff]  ;;  %v548_v2 = vld [vmem:[#allocation6 + $0x720] sm:$0xff] }
 0x12b   :  { %3736 = vmatprep.subr.bf16.mxu0 %v3735_v17  ;;  %v763_v17 = vld [vmem:[#allocation6 + $0xdd8] sm:$0xff]  ;;  %v3657_v19 = vpack.c.bf16 %v746_v13, %v738_v8  ;;  %v556_v3 = vld [vmem:[#allocation6 + $0x760] sm:$0xff] }
 0x12c   :  { %v3659_v24 = vpack.c.bf16 %v763_v17, %v755_v16  ;;  %v819_v8 = vld [vmem:[#allocation6 + $0xf98] sm:$0xff]  ;;  %v3769_v10 = vpack.c.bf16 %v556_v3, %v548_v2  ;;  %v826_v17 = vld [vmem:[#allocation6 + $0xfd0] sm:$0xff] }
 0x12d   :  { %3638 = vmatpush1.bf16.msra.mxu1 %v3637_v15  ;;  %v509_v15 = vld [vmem:[#allocation6 + $0x5e8] sm:$0xff] }
 0x12e   :  { %3640 = vmatprep.subr.bf16.mxu1 %v3639_v20  ;;  %3738 = vmatpush1.bf16.msra.mxu0 %v3737_v26  ;;  %v754_v20 = vld [vmem:[#allocation6 + $0xd90] sm:$0xff]  ;;  %v3755_v21 = vpack.c.bf16 %v509_v15, %v501_v14  ;;  %v517_v26 = vld [vmem:[#allocation6 + $0x628] sm:$0xff]  ;;  %v564_v14 = vld [vmem:[#allocation6 + $0x7a0] sm:$0xff] }
 0x12f   :  { %3740 = vmatprep.subr.bf16.mxu0 %v3739_v29  ;;  %v779_v29 = vld [vmem:[#allocation6 + $0xe58] sm:$0xff]  ;;  %v3661_v31 = vpack.c.bf16 %v762_v25, %v754_v20  ;;  %v572_v15 = vld [vmem:[#allocation6 + $0x7e0] sm:$0xff] }
 0x130   :  { %v3663_v38 = vpack.c.bf16 %v779_v29, %v771_v28  ;;  %v835_v20 = vld [vmem:[#allocation6 + $0x1018] sm:$0xff]  ;;  %v3773_v22 = vpack.c.bf16 %v572_v15, %v564_v14  ;;  %v580_v25 = vld [vmem:[#allocation6 + $0x820] sm:$0xff]  ;;  %v834_v28 = vld [vmem:[#allocation6 + $0x1010] sm:$0xff] }
 0x131   :  { %3642 = vmatpush1.bf16.msra.mxu1 %v3641_v27  ;;  %v525_v27 = vld [vmem:[#allocation6 + $0x668] sm:$0xff]  ;;  %v842_v29 = vld [vmem:[#allocation6 + $0x1050] sm:$0xff] }
 0x132   :  { %3644 = vmatprep.subr.bf16.mxu1 %v3643_v32  ;;  %3742 = vmatpush1.bf16.msra.mxu0 %v3741_v40  ;;  %v770_v32 = vld [vmem:[#allocation6 + $0xe10] sm:$0xff]  ;;  %v3759_v33 = vpack.c.bf16 %v525_v27, %v517_v26  ;;  %v533_v40 = vld [vmem:[#allocation6 + $0x6a8] sm:$0xff]  ;;  %v588_v26 = vld [vmem:[#allocation6 + $0x860] sm:$0xff]  ;;  %v3681_v37 = vpack.c.bf16 %v842_v29, %v834_v28 }
 0x133   :  { %3744 = vmatprep.subr.bf16.mxu0 %v3743_v43  ;;  %v795_v43 = vld [vmem:[#allocation6 + $0xed8] sm:$0xff]  ;;  %v3665_v48 = vpack.c.bf16 %v778_v39, %v770_v32  ;;  %v597_v32 = vld [vmem:[#allocation6 + $0x8a8] sm:$0xff]  ;;  %v3777_v34 = vpack.c.bf16 %v588_v26, %v580_v25  ;;  %v596_v39 = vld [vmem:[#allocation6 + $0x8a0] sm:$0xff] }
 0x134   :  { %v3667_v54 = vpack.c.bf16 %v795_v43, %v787_v42  ;;  %v858_v42 = vld [vmem:[#allocation6 + $0x10d0] sm:$0xff]  ;;  %v923_v25 = vld [vmem:[#allocation6 + $0x12d8] sm:$0xff] }
 0x135   :  { %3646 = vmatpush1.bf16.msra.mxu1 %v3645_v41  ;;  %v541_v41 = vld [vmem:[#allocation6 + $0x6e8] sm:$0xff]  ;;  %v914_v28 = vld [vmem:[#allocation6 + $0x1290] sm:$0xff] }
 0x136   :  { %3648 = vmatprep.subr.bf16.mxu1 %v3647_v49  ;;  %3746 = vmatpush1.bf16.msra.mxu0 %v3745_v57  ;;  %v786_v49 = vld [vmem:[#allocation6 + $0xe90] sm:$0xff]  ;;  %v3763_v50 = vpack.c.bf16 %v541_v41, %v533_v40  ;;  %v549_v57 = vld [vmem:[#allocation6 + $0x728] sm:$0xff]  ;;  %v604_v40 = vld [vmem:[#allocation6 + $0x8e0] sm:$0xff] }
 0x137   :  { %3748 = vmatprep.subr.bf16.mxu0 %v3747_v59  ;;  %v811_v59 = vld [vmem:[#allocation6 + $0xf58] sm:$0xff]  ;;  %v3669_v62 = vpack.c.bf16 %v794_v55, %v786_v49  ;;  %v3781_v51 = vpack.c.bf16 %v604_v40, %v596_v39 }
 0x138   :  { %v3671_v4 = vpack.c.bf16 %v811_v59, %v803_v52  ;;  %v867_v49 = vld [vmem:[#allocation6 + $0x1118] sm:$0xff]  ;;  %v874_v59 = vld [vmem:[#allocation6 + $0x1150] sm:$0xff] }
 0x139   :  { %3650 = vmatpush1.bf16.msra.mxu1 %v3649_v58  ;;  %v557_v58 = vld [vmem:[#allocation6 + $0x768] sm:$0xff]  ;;  %v939_v39 = vld [vmem:[#allocation6 + $0x1358] sm:$0xff] }
 0x13a   :  { %3652 = vmatprep.subr.bf16.mxu1 %v3651_v63  ;;  %3750 = vmatpush1.bf16.msra.mxu0 %v3749_v6  ;;  %v802_v63 = vld [vmem:[#allocation6 + $0xf10] sm:$0xff]  ;;  %v3767_v1 = vpack.c.bf16 %v557_v58, %v549_v57  ;;  %v565_v6 = vld [vmem:[#allocation6 + $0x7a8] sm:$0xff]  ;;  %v612_v57 = vld [vmem:[#allocation6 + $0x920] sm:$0xff] }
 0x13b   :  { %3752 = vmatprep.subr.bf16.mxu0 %v3751_v9  ;;  %v827_v9 = vld [vmem:[#allocation6 + $0xfd8] sm:$0xff]  ;;  %v3673_v11 = vpack.c.bf16 %v810_v5, %v802_v63  ;;  %v620_v58 = vld [vmem:[#allocation6 + $0x960] sm:$0xff] }
 0x13c   :  { %v3675_v16 = vpack.c.bf16 %v827_v9, %v819_v8  ;;  %v883_v63 = vld [vmem:[#allocation6 + $0x1198] sm:$0xff]  ;;  %v3785_v2 = vpack.c.bf16 %v620_v58, %v612_v57  ;;  %v890_v9 = vld [vmem:[#allocation6 + $0x11d0] sm:$0xff] }
 0x13d   :  { %3654 = vmatpush1.bf16.msra.mxu1 %v3653_v7  ;;  %v573_v7 = vld [vmem:[#allocation6 + $0x7e8] sm:$0xff] }
 0x13e   :  { %3656 = vmatprep.subr.bf16.mxu1 %v3655_v12  ;;  %3754 = vmatpush1.bf16.msra.mxu0 %v3753_v18  ;;  %v818_v12 = vld [vmem:[#allocation6 + $0xf90] sm:$0xff]  ;;  %v3771_v13 = vpack.c.bf16 %v573_v7, %v565_v6  ;;  %v581_v18 = vld [vmem:[#allocation6 + $0x828] sm:$0xff]  ;;  %v628_v6 = vld [vmem:[#allocation6 + $0x9a0] sm:$0xff] }
 0x13f   :  { %3756 = vmatprep.subr.bf16.mxu0 %v3755_v21  ;;  %v843_v21 = vld [vmem:[#allocation6 + $0x1058] sm:$0xff]  ;;  %v3677_v23 = vpack.c.bf16 %v826_v17, %v818_v12  ;;  %v636_v7 = vld [vmem:[#allocation6 + $0x9e0] sm:$0xff] }
 0x140   :  { %v3679_v27 = vpack.c.bf16 %v843_v21, %v835_v20  ;;  %v899_v12 = vld [vmem:[#allocation6 + $0x1218] sm:$0xff]  ;;  %v3789_v14 = vpack.c.bf16 %v636_v7, %v628_v6  ;;  %v906_v21 = vld [vmem:[#allocation6 + $0x1250] sm:$0xff] }
 0x141   :  { %3658 = vmatpush1.bf16.msra.mxu1 %v3657_v19  ;;  %v589_v19 = vld [vmem:[#allocation6 + $0x868] sm:$0xff] }
 0x142   :  { %3660 = vmatprep.subr.bf16.mxu1 %v3659_v24  ;;  %3758 = vmatpush1.bf16.msra.mxu0 %v3757_v30  ;;  %v3775_v24 = vpack.c.bf16 %v589_v19, %v581_v18  ;;  %v851_v30 = vld [vmem:[#allocation6 + $0x1098] sm:$0xff]  ;;  %v644_v18 = vld [vmem:[#allocation6 + $0xa20] sm:$0xff] }
 0x143   :  { %3760 = vmatprep.subr.bf16.mxu0 %v3759_v33  ;;  %v605_v33 = vld [vmem:[#allocation6 + $0x8e8] sm:$0xff]  ;;  %v652_v19 = vld [vmem:[#allocation6 + $0xa60] sm:$0xff] }
 0x144   :  { %v3779_v43 = vpack.c.bf16 %v605_v33, %v597_v32  ;;  %v3793_v26 = vpack.c.bf16 %v652_v19, %v644_v18  ;;  %v922_v33 = vld [vmem:[#allocation6 + $0x12d0] sm:$0xff] }
 0x145   :  { %3662 = vmatpush1.bf16.msra.mxu1 %v3661_v31  ;;  %v859_v31 = vld [vmem:[#allocation6 + $0x10d8] sm:$0xff] }
 0x146   :  { %3664 = vmatprep.subr.bf16.mxu1 %v3663_v38  ;;  %3762 = vmatpush1.bf16.msra.mxu0 %v3761_v45  ;;  %v850_v38 = vld [vmem:[#allocation6 + $0x1090] sm:$0xff]  ;;  %v3683_v41 = vpack.c.bf16 %v859_v31, %v851_v30  ;;  %v613_v45 = vld [vmem:[#allocation6 + $0x928] sm:$0xff]  ;;  %v660_v30 = vld [vmem:[#allocation6 + $0xaa0] sm:$0xff] }
 0x147   :  { %3764 = vmatprep.subr.bf16.mxu0 %v3763_v50  ;;  %v875_v50 = vld [vmem:[#allocation6 + $0x1158] sm:$0xff]  ;;  %v3685_v46 = vpack.c.bf16 %v858_v42, %v850_v38  ;;  %v668_v31 = vld [vmem:[#allocation6 + $0xae0] sm:$0xff]  ;;  %v930_v42 = vld [vmem:[#allocation6 + $0x1310] sm:$0xff] }
 0x148   :  { %v3687_v52 = vpack.c.bf16 %v875_v50, %v867_v49  ;;  %v931_v38 = vld [vmem:[#allocation6 + $0x1318] sm:$0xff]  ;;  %v3797_v40 = vpack.c.bf16 %v668_v31, %v660_v30  ;;  %v938_v50 = vld [vmem:[#allocation6 + $0x1350] sm:$0xff] }
 0x149   :  { %3666 = vmatpush1.bf16.msra.mxu1 %v3665_v48  ;;  %v621_v48 = vld [vmem:[#allocation6 + $0x968] sm:$0xff]  ;;  %v3703_v49 = vpack.c.bf16 %v939_v39, %v931_v38  ;;  %v3705_v58 = vpack.c.bf16 %v938_v50, %v930_v42  ;;  %v366_v39 = vld [vmem:[#allocation6 + $0x170] sm:$0xff]  ;;  %v375_v42 = vld [vmem:[#allocation6 + $0x1b8] sm:$0xff] }
 0x14a   :  { %3668 = vmatprep.subr.bf16.mxu1 %v3667_v54  ;;  %3766 = vmatpush1.bf16.msra.mxu0 %v3765_v61  ;;  %v866_v54 = vld [vmem:[#allocation6 + $0x1110] sm:$0xff]  ;;  %v3783_v55 = vpack.c.bf16 %v621_v48, %v613_v45  ;;  %v629_v61 = vld [vmem:[#allocation6 + $0x9a8] sm:$0xff]  ;;  %v676_v45 = vld [vmem:[#allocation6 + $0xb20] sm:$0xff] }
 0x14b   :  { %3768 = vmatprep.subr.bf16.mxu0 %v3767_v1  ;;  %v891_v1 = vld [vmem:[#allocation6 + $0x11d8] sm:$0xff]  ;;  %v3689_v3 = vpack.c.bf16 %v874_v59, %v866_v54  ;;  %v684_v48 = vld [vmem:[#allocation6 + $0xb60] sm:$0xff] }
 0x14c   :  { %v3691_v8 = vpack.c.bf16 %v891_v1, %v883_v63  ;;  %v947_v54 = vld [vmem:[#allocation6 + $0x1398] sm:$0xff]  ;;  %v3801_v57 = vpack.c.bf16 %v684_v48, %v676_v45  ;;  %v954_v1 = vld [vmem:[#allocation6 + $0x13d0] sm:$0xff] }
 0x14d   :  { %3670 = vmatpush1.bf16.msra.mxu1 %v3669_v62  ;;  %v637_v62 = vld [vmem:[#allocation6 + $0x9e8] sm:$0xff] }
 0x14e   :  { %3672 = vmatprep.subr.bf16.mxu1 %v3671_v4  ;;  %3770 = vmatpush1.bf16.msra.mxu0 %v3769_v10  ;;  %v882_v4 = vld [vmem:[#allocation6 + $0x1190] sm:$0xff]  ;;  %v3787_v5 = vpack.c.bf16 %v637_v62, %v629_v61  ;;  %v645_v10 = vld [vmem:[#allocation6 + $0xa28] sm:$0xff]  ;;  %v692_v61 = vld [vmem:[#allocation6 + $0xba0] sm:$0xff] }
 0x14f   :  { %3772 = vmatprep.subr.bf16.mxu0 %v3771_v13  ;;  %v907_v13 = vld [vmem:[#allocation6 + $0x1258] sm:$0xff]  ;;  %v3693_v15 = vpack.c.bf16 %v890_v9, %v882_v4  ;;  %v700_v62 = vld [vmem:[#allocation6 + $0xbe0] sm:$0xff] }
 0x150   :  { %v3695_v20 = vpack.c.bf16 %v907_v13, %v899_v12  ;;  %v327_v4 = vld [vmem:[#allocation6 + $0x38] sm:$0xff]  ;;  %v3805_v6 = vpack.c.bf16 %v700_v62, %v692_v61  ;;  %v334_v13 = vld [vmem:[#allocation6 + $0x70] sm:$0xff] }
 0x151   :  { %3674 = vmatpush1.bf16.msra.mxu1 %v3673_v11  ;;  %v653_v11 = vld [vmem:[#allocation6 + $0xa68] sm:$0xff]  ;;  %v390_v62 = vld [vmem:[#allocation6 + $0x230] sm:$0xff] }
 0x152   :  { %3676 = vmatprep.subr.bf16.mxu1 %v3675_v16  ;;  %3774 = vmatpush1.bf16.msra.mxu0 %v3773_v22  ;;  %v898_v16 = vld [vmem:[#allocation6 + $0x1210] sm:$0xff]  ;;  %v3791_v17 = vpack.c.bf16 %v653_v11, %v645_v10  ;;  %v661_v22 = vld [vmem:[#allocation6 + $0xaa8] sm:$0xff]  ;;  %v708_v10 = vld [vmem:[#allocation6 + $0xc20] sm:$0xff] }
 0x153   :  { %3776 = vmatprep.subr.bf16.mxu0 %v3775_v24  ;;  %v915_v24 = vld [vmem:[#allocation6 + $0x1298] sm:$0xff]  ;;  %v716_v11 = vld [vmem:[#allocation6 + $0xc60] sm:$0xff] }
 0x154   :  { %v3699_v32 = vpack.c.bf16 %v923_v25, %v915_v24  ;;  %v3809_v18 = vpack.c.bf16 %v716_v11, %v708_v10  ;;  %v350_v25 = vld [vmem:[#allocation6 + $0xf0] sm:$0xff] }
 0x155   :  { %3678 = vmatpush1.bf16.msra.mxu1 %v3677_v23  ;;  %1524 = vmatmul.mubr.f32.vlgmr.msra.gmra.mrb[2].mxu0 %v4941_v35  ;;  %v669_v23 = vld [vmem:[#allocation6 + $0xae8] sm:$0xff]  ;;  %v406_v11 = vld [vmem:[#allocation6 + $0x2b0] sm:$0xff] }
 0x156   :  { %3680 = vmatprep.subr.bf16.mxu1 %v3679_v27  ;;  %3778 = vmatpush1.bf16.msra.mxu0 %v3777_v34  ;;  %v3697_v27 = vpack.c.bf16 %v906_v21, %v898_v16  ;;  %v3795_v29 = vpack.c.bf16 %v669_v23, %v661_v22  ;;  %v677_v34 = vld [vmem:[#allocation6 + $0xb28] sm:$0xff]  ;;  %v343_v16 = vld [vmem:[#allocation6 + $0xb8] sm:$0xff]  ;;  %v724_v22 = vld [vmem:[#allocation6 + $0xca0] sm:$0xff] }
 0x157   :  { %3780 = vmatprep.subr.bf16.mxu0 %v3779_v43  ;;  %1594 = vmatprep.mubr.f32.mxu0 %v4957_v60  ;;  %v732_v23 = vld [vmem:[#allocation6 + $0xce0] sm:$0xff] }
 0x158   :  { %1382 = vmatmul.mubr.f32.vlgmr.msra.gmra.mrb[2].mxu1 %v4948_v47  ;;  %v3813_v30 = vpack.c.bf16 %v732_v23, %v724_v22  ;;  %v422_v23 = vld [vmem:[#allocation6 + $0x330] sm:$0xff] }
 0x159   :  { %3682 = vmatpush1.bf16.msra.mxu1 %v3681_v37  ;;  %1452 = vmatprep.mubr.f32.mxu1 %v4752_v0  ;;  %v685_v37 = vld [vmem:[#allocation6 + $0xb68] sm:$0xff] }
 0x15a   :  { %3684 = vmatprep.subr.bf16.mxu1 %v3683_v41  ;;  %3782 = vmatpush1.bf16.msra.mxu0 %v3781_v51  ;;  %v3701_v41 = vpack.c.bf16 %v922_v33, %v914_v28  ;;  %v3799_v43 = vpack.c.bf16 %v685_v37, %v677_v34  ;;  %v693_v51 = vld [vmem:[#allocation6 + $0xba8] sm:$0xff]  ;;  %v359_v28 = vld [vmem:[#allocation6 + $0x138] sm:$0xff]  ;;  %v740_v34 = vld [vmem:[#allocation6 + $0xd20] sm:$0xff] }
 0x15b   :  { %3784 = vmatprep.subr.bf16.mxu0 %v3783_v55  ;;  %v955_v55 = vld [vmem:[#allocation6 + $0x13d8] sm:$0xff]  ;;  %v748_v37 = vld [vmem:[#allocation6 + $0xd60] sm:$0xff] }
 0x15c   :  { %v3707_v63 = vpack.c.bf16 %v955_v55, %v947_v54  ;;  %v3817_v45 = vpack.c.bf16 %v748_v37, %v740_v34  ;;  %v382_v55 = vld [vmem:[#allocation6 + $0x1f0] sm:$0xff] }
 0x15d   :  { %3686 = vmatpush1.bf16.msra.mxu1 %v3685_v46  ;;  %v701_v46 = vld [vmem:[#allocation6 + $0xbe8] sm:$0xff]  ;;  %v438_v37 = vld [vmem:[#allocation6 + $0x3b0] sm:$0xff] }
 0x15e   :  { %3688 = vmatprep.subr.bf16.mxu1 %v3687_v52  ;;  %3786 = vmatpush1.bf16.msra.mxu0 %v3785_v2  ;;  %v946_v52 = vld [vmem:[#allocation6 + $0x1390] sm:$0xff]  ;;  %v3803_v59 = vpack.c.bf16 %v701_v46, %v693_v51  ;;  %v709_v2 = vld [vmem:[#allocation6 + $0xc28] sm:$0xff]  ;;  %v756_v51 = vld [vmem:[#allocation6 + $0xda0] sm:$0xff] }
 0x15f   :  { %3788 = vmatprep.subr.bf16.mxu0 %v3787_v5  ;;  %v335_v5 = vld [vmem:[#allocation6 + $0x78] sm:$0xff]  ;;  %v3709_v7 = vpack.c.bf16 %v954_v1, %v946_v52  ;;  %v764_v46 = vld [vmem:[#allocation6 + $0xde0] sm:$0xff] }
 0x160   :  { %v3871_v12 = vpack.c.bf16 %v335_v5, %v327_v4  ;;  %v391_v52 = vld [vmem:[#allocation6 + $0x238] sm:$0xff]  ;;  %v772_v1 = vld [vmem:[#allocation6 + $0xe20] sm:$0xff]  ;;  %v398_v4 = vld [vmem:[#allocation6 + $0x270] sm:$0xff] }
 0x161   :  { %3690 = vmatpush1.bf16.msra.mxu1 %v3689_v3  ;;  %v717_v3 = vld [vmem:[#allocation6 + $0xc68] sm:$0xff]  ;;  %v3889_v10 = vpack.c.bf16 %v398_v4, %v390_v62  ;;  %v479_v62 = vld [vmem:[#allocation6 + $0x4f8] sm:$0xff]  ;;  %v852_v4 = vld [vmem:[#allocation6 + $0x10a0] sm:$0xff] }
 0x162   :  { %3692 = vmatprep.subr.bf16.mxu1 %v3691_v8  ;;  %3790 = vmatpush1.bf16.msra.mxu0 %v3789_v14  ;;  %v326_v8 = vld [vmem:[#allocation6 + $0x30] sm:$0xff]  ;;  %v3807_v9 = vpack.c.bf16 %v717_v3, %v709_v2  ;;  %v725_v14 = vld [vmem:[#allocation6 + $0xca8] sm:$0xff]  ;;  %v780_v2 = vld [vmem:[#allocation6 + $0xe60] sm:$0xff] }
 0x163   :  { %3792 = vmatprep.subr.bf16.mxu0 %v3791_v17  ;;  %v351_v17 = vld [vmem:[#allocation6 + $0xf8] sm:$0xff]  ;;  %v3873_v19 = vpack.c.bf16 %v334_v13, %v326_v8  ;;  %v789_v5 = vld [vmem:[#allocation6 + $0xea8] sm:$0xff]  ;;  %v788_v13 = vld [vmem:[#allocation6 + $0xea0] sm:$0xff] }
 0x164   :  { %v3875_v24 = vpack.c.bf16 %v351_v17, %v343_v16  ;;  %v415_v8 = vld [vmem:[#allocation6 + $0x2f8] sm:$0xff]  ;;  %v414_v16 = vld [vmem:[#allocation6 + $0x2f0] sm:$0xff]  ;;  %v805_v17 = vld [vmem:[#allocation6 + $0xf28] sm:$0xff] }
 0x165   :  { %3694 = vmatpush1.bf16.msra.mxu1 %v3693_v15  ;;  %v733_v15 = vld [vmem:[#allocation6 + $0xce8] sm:$0xff]  ;;  %v3893_v22 = vpack.c.bf16 %v414_v16, %v406_v11  ;;  %v495_v11 = vld [vmem:[#allocation6 + $0x578] sm:$0xff]  ;;  %v868_v16 = vld [vmem:[#allocation6 + $0x1120] sm:$0xff] }
 0x166   :  { %3696 = vmatprep.subr.bf16.mxu1 %v3695_v20  ;;  %3794 = vmatpush1.bf16.msra.mxu0 %v3793_v26  ;;  %v342_v20 = vld [vmem:[#allocation6 + $0xb0] sm:$0xff]  ;;  %v3811_v21 = vpack.c.bf16 %v733_v15, %v725_v14  ;;  %v741_v26 = vld [vmem:[#allocation6 + $0xd28] sm:$0xff]  ;;  %v796_v14 = vld [vmem:[#allocation6 + $0xee0] sm:$0xff] }
 0x167   :  { %3796 = vmatprep.subr.bf16.mxu0 %v3795_v29  ;;  %v367_v29 = vld [vmem:[#allocation6 + $0x178] sm:$0xff]  ;;  %v3877_v31 = vpack.c.bf16 %v350_v25, %v342_v20  ;;  %v804_v25 = vld [vmem:[#allocation6 + $0xf20] sm:$0xff] }
 0x168   :  { %v3879_v38 = vpack.c.bf16 %v367_v29, %v359_v28  ;;  %v431_v20 = vld [vmem:[#allocation6 + $0x378] sm:$0xff]  ;;  %v430_v28 = vld [vmem:[#allocation6 + $0x370] sm:$0xff]  ;;  %v821_v29 = vld [vmem:[#allocation6 + $0xfa8] sm:$0xff] }
 0x169   :  { %3698 = vmatpush1.bf16.msra.mxu1 %v3697_v27  ;;  %v749_v27 = vld [vmem:[#allocation6 + $0xd68] sm:$0xff]  ;;  %v3897_v34 = vpack.c.bf16 %v430_v28, %v422_v23  ;;  %v511_v23 = vld [vmem:[#allocation6 + $0x5f8] sm:$0xff]  ;;  %v884_v28 = vld [vmem:[#allocation6 + $0x11a0] sm:$0xff] }
 0x16a   :  { %3700 = vmatprep.subr.bf16.mxu1 %v3699_v32  ;;  %3798 = vmatpush1.bf16.msra.mxu0 %v3797_v40  ;;  %v358_v32 = vld [vmem:[#allocation6 + $0x130] sm:$0xff]  ;;  %v3815_v33 = vpack.c.bf16 %v749_v27, %v741_v26  ;;  %v757_v40 = vld [vmem:[#allocation6 + $0xda8] sm:$0xff]  ;;  %v812_v26 = vld [vmem:[#allocation6 + $0xf60] sm:$0xff] }
 0x16b   :  { %3800 = vmatprep.subr.bf16.mxu0 %v3799_v43  ;;  %v383_v43 = vld [vmem:[#allocation6 + $0x1f8] sm:$0xff]  ;;  %v3881_v48 = vpack.c.bf16 %v366_v39, %v358_v32  ;;  %v820_v39 = vld [vmem:[#allocation6 + $0xfa0] sm:$0xff] }
 0x16c   :  { %v3883_v54 = vpack.c.bf16 %v383_v43, %v375_v42  ;;  %v447_v32 = vld [vmem:[#allocation6 + $0x3f8] sm:$0xff]  ;;  %v446_v42 = vld [vmem:[#allocation6 + $0x3f0] sm:$0xff]  ;;  %v837_v43 = vld [vmem:[#allocation6 + $0x1028] sm:$0xff] }
 0x16d   :  { %3702 = vmatpush1.bf16.msra.mxu1 %v3701_v41  ;;  %v765_v41 = vld [vmem:[#allocation6 + $0xde8] sm:$0xff] }
 0x16e   :  { %3704 = vmatprep.subr.bf16.mxu1 %v3703_v49  ;;  %3802 = vmatpush1.bf16.msra.mxu0 %v3801_v57  ;;  %v374_v49 = vld [vmem:[#allocation6 + $0x1b0] sm:$0xff]  ;;  %v3819_v50 = vpack.c.bf16 %v765_v41, %v757_v40  ;;  %v773_v57 = vld [vmem:[#allocation6 + $0xe28] sm:$0xff]  ;;  %v828_v40 = vld [vmem:[#allocation6 + $0xfe0] sm:$0xff] }
 0x16f   :  { %3804 = vmatprep.subr.bf16.mxu0 %v3803_v59  ;;  %v399_v59 = vld [vmem:[#allocation6 + $0x278] sm:$0xff]  ;;  %v3885_v61 = vpack.c.bf16 %v382_v55, %v374_v49  ;;  %v836_v55 = vld [vmem:[#allocation6 + $0x1020] sm:$0xff] }
 0x170   :  { %v3887_v3 = vpack.c.bf16 %v399_v59, %v391_v52  ;;  %v463_v49 = vld [vmem:[#allocation6 + $0x478] sm:$0xff]  ;;  %v462_v52 = vld [vmem:[#allocation6 + $0x470] sm:$0xff]  ;;  %v853_v59 = vld [vmem:[#allocation6 + $0x10a8] sm:$0xff] }
 0x171   :  { %3706 = vmatpush1.bf16.msra.mxu1 %v3705_v58  ;;  %v781_v58 = vld [vmem:[#allocation6 + $0xe68] sm:$0xff] }
 0x172   :  { %3708 = vmatprep.subr.bf16.mxu1 %v3707_v63  ;;  %3806 = vmatpush1.bf16.msra.mxu0 %v3805_v6  ;;  %v3823_v63 = vpack.c.bf16 %v781_v58, %v773_v57  ;;  %v797_v6 = vld [vmem:[#allocation6 + $0xee8] sm:$0xff]  ;;  %v844_v57 = vld [vmem:[#allocation6 + $0x1060] sm:$0xff] }
 0x173   :  { %3808 = vmatprep.subr.bf16.mxu0 %v3807_v9  ;;  %v3825_v9 = vpack.c.bf16 %v780_v2, %v772_v1  ;;  %v470_v2 = vld [vmem:[#allocation6 + $0x4b0] sm:$0xff] }
 0x175   :  { %3710 = vmatpush1.bf16.msra.mxu1 %v3709_v7  ;;  %v407_v7 = vld [vmem:[#allocation6 + $0x2b8] sm:$0xff] }
 0x176   :  { %3872 = vmatprep.subr.bf16.mxu1 %v3871_v12  ;;  %3810 = vmatpush1.bf16.msra.mxu0 %v3809_v18  ;;  %v3827_v12 = vpack.c.bf16 %v797_v6, %v789_v5  ;;  %v3891_v15 = vpack.c.bf16 %v415_v8, %v407_v7  ;;  %v813_v18 = vld [vmem:[#allocation6 + $0xf68] sm:$0xff]  ;;  %v860_v5 = vld [vmem:[#allocation6 + $0x10e0] sm:$0xff]  ;;  %v478_v7 = vld [vmem:[#allocation6 + $0x4f0] sm:$0xff] }
 0x177   :  { %3812 = vmatprep.subr.bf16.mxu0 %v3811_v21  ;;  %v3829_v21 = vpack.c.bf16 %v796_v14, %v788_v13  ;;  %v869_v8 = vld [vmem:[#allocation6 + $0x1128] sm:$0xff]  ;;  %v3909_v13 = vpack.c.bf16 %v478_v7, %v470_v2  ;;  %v486_v14 = vld [vmem:[#allocation6 + $0x530] sm:$0xff]  ;;  %v559_v2 = vld [vmem:[#allocation6 + $0x778] sm:$0xff] }
 0x178   :  { %1453 = vmatmul.mubr.f32.vlgmr.msra.gmra.mrb[2].mxu1 %v4951_v53  ;;  %v932_v7 = vld [vmem:[#allocation6 + $0x1320] sm:$0xff] }
 0x179   :  { %3874 = vmatpush1.bf16.msra.mxu1 %v3873_v19  ;;  %1736 = vmatprep.mubr.f32.mxu1 %v4945_v44  ;;  %v3821_v44 = vpack.c.bf16 %v764_v46, %v756_v51  ;;  %v423_v19 = vld [vmem:[#allocation6 + $0x338] sm:$0xff]  ;;  %v3901_v51 = vpack.c.bf16 %v446_v42, %v438_v37  ;;  %v454_v46 = vld [vmem:[#allocation6 + $0x430] sm:$0xff]  ;;  %v900_v42 = vld [vmem:[#allocation6 + $0x1220] sm:$0xff] }
 0x17a   :  { %3876 = vmatprep.subr.bf16.mxu1 %v3875_v24  ;;  %3814 = vmatpush1.bf16.msra.mxu0 %v3813_v30  ;;  %v3831_v24 = vpack.c.bf16 %v813_v18, %v805_v17  ;;  %v3895_v27 = vpack.c.bf16 %v431_v20, %v423_v19  ;;  %v829_v30 = vld [vmem:[#allocation6 + $0xfe8] sm:$0xff]  ;;  %v3905_v1 = vpack.c.bf16 %v462_v52, %v454_v46  ;;  %v876_v17 = vld [vmem:[#allocation6 + $0x1160] sm:$0xff]  ;;  %v494_v19 = vld [vmem:[#allocation6 + $0x570] sm:$0xff] }
 0x17b   :  { %3816 = vmatprep.subr.bf16.mxu0 %v3815_v33  ;;  %v3833_v33 = vpack.c.bf16 %v812_v26, %v804_v25  ;;  %v885_v20 = vld [vmem:[#allocation6 + $0x11a8] sm:$0xff]  ;;  %v3913_v25 = vpack.c.bf16 %v494_v19, %v486_v14  ;;  %v502_v26 = vld [vmem:[#allocation6 + $0x5b0] sm:$0xff]  ;;  %v527_v37 = vld [vmem:[#allocation6 + $0x678] sm:$0xff] }
 0x17c   :  { %v543_v46 = vld [vmem:[#allocation6 + $0x6f8] sm:$0xff]  ;;  %v916_v52 = vld [vmem:[#allocation6 + $0x12a0] sm:$0xff]  ;;  %v566_v19 = vld [vmem:[#allocation6 + $0x7b0] sm:$0xff] }
 0x17d   :  { %3878 = vmatpush1.bf16.msra.mxu1 %v3877_v31  ;;  %v439_v31 = vld [vmem:[#allocation6 + $0x3b8] sm:$0xff] }
 0x17e   :  { %3880 = vmatprep.subr.bf16.mxu1 %v3879_v38  ;;  %3818 = vmatpush1.bf16.msra.mxu0 %v3817_v45  ;;  %v3835_v38 = vpack.c.bf16 %v829_v30, %v821_v29  ;;  %v3899_v41 = vpack.c.bf16 %v447_v32, %v439_v31  ;;  %v845_v45 = vld [vmem:[#allocation6 + $0x1068] sm:$0xff]  ;;  %v892_v29 = vld [vmem:[#allocation6 + $0x11e0] sm:$0xff]  ;;  %v510_v31 = vld [vmem:[#allocation6 + $0x5f0] sm:$0xff] }
 0x17f   :  { %3820 = vmatprep.subr.bf16.mxu0 %v3819_v50  ;;  %v3837_v50 = vpack.c.bf16 %v828_v40, %v820_v39  ;;  %v901_v32 = vld [vmem:[#allocation6 + $0x1228] sm:$0xff]  ;;  %v3917_v39 = vpack.c.bf16 %v510_v31, %v502_v26  ;;  %v518_v40 = vld [vmem:[#allocation6 + $0x630] sm:$0xff]  ;;  %v567_v14 = vld [vmem:[#allocation6 + $0x7b8] sm:$0xff] }
 0x180   :  { %v1971_v26 = vld [vmem:[#allocation9 + $0x20] sm:$0xff]  ;;  %v582_v31 = vld [vmem:[#allocation6 + $0x830] sm:$0xff] }
 0x181   :  { %3882 = vmatpush1.bf16.msra.mxu1 %v3881_v48  ;;  %v455_v48 = vld [vmem:[#allocation6 + $0x438] sm:$0xff] }
 0x182   :  { %3884 = vmatprep.subr.bf16.mxu1 %v3883_v54  ;;  %3822 = vmatpush1.bf16.msra.mxu0 %v3821_v44  ;;  %v3839_v54 = vpack.c.bf16 %v845_v45, %v837_v43  ;;  %v3903_v58 = vpack.c.bf16 %v463_v49, %v455_v48  ;;  %v861_v44 = vld [vmem:[#allocation6 + $0x10e8] sm:$0xff]  ;;  %v908_v43 = vld [vmem:[#allocation6 + $0x1260] sm:$0xff]  ;;  %v526_v48 = vld [vmem:[#allocation6 + $0x670] sm:$0xff] }
 0x183   :  { %3824 = vmatprep.subr.bf16.mxu0 %v3823_v63  ;;  %v3841_v63 = vpack.c.bf16 %v844_v57, %v836_v55  ;;  %v917_v49 = vld [vmem:[#allocation6 + $0x12a8] sm:$0xff]  ;;  %v3921_v55 = vpack.c.bf16 %v526_v48, %v518_v40  ;;  %v534_v57 = vld [vmem:[#allocation6 + $0x6b0] sm:$0xff]  ;;  %v1977_v40 = vld [vmem:[#allocation9 + $0x50] sm:$0xff] }
 0x184   :  { %v598_v48 = vld [vmem:[#allocation6 + $0x8b0] sm:$0xff] }
 0x185   :  { %3886 = vmatpush1.bf16.msra.mxu1 %v3885_v61  ;;  %v471_v61 = vld [vmem:[#allocation6 + $0x4b8] sm:$0xff] }
 0x186   :  { %3888 = vmatprep.subr.bf16.mxu1 %v3887_v3  ;;  %3826 = vmatpush1.bf16.msra.mxu0 %v3825_v9  ;;  %v3843_v3 = vpack.c.bf16 %v861_v44, %v853_v59  ;;  %v3907_v6 = vpack.c.bf16 %v479_v62, %v471_v61  ;;  %v877_v9 = vld [vmem:[#allocation6 + $0x1168] sm:$0xff]  ;;  %v924_v59 = vld [vmem:[#allocation6 + $0x12e0] sm:$0xff]  ;;  %v542_v61 = vld [vmem:[#allocation6 + $0x6f0] sm:$0xff] }
 0x187   :  { %3828 = vmatprep.subr.bf16.mxu0 %v3827_v12  ;;  %v3845_v12 = vpack.c.bf16 %v860_v5, %v852_v4  ;;  %v933_v62 = vld [vmem:[#allocation6 + $0x1328] sm:$0xff]  ;;  %v3925_v4 = vpack.c.bf16 %v542_v61, %v534_v57  ;;  %v550_v5 = vld [vmem:[#allocation6 + $0x730] sm:$0xff] }
 0x188   :  { %v1983_v57 = vld [vmem:[#allocation9 + $0x80] sm:$0xff]  ;;  %v614_v61 = vld [vmem:[#allocation6 + $0x930] sm:$0xff] }
 0x189   :  { %3890 = vmatpush1.bf16.msra.mxu1 %v3889_v10  ;;  %v487_v10 = vld [vmem:[#allocation6 + $0x538] sm:$0xff] }
 0x18a   :  { %3892 = vmatprep.subr.bf16.mxu1 %v3891_v15  ;;  %3830 = vmatpush1.bf16.msra.mxu0 %v3829_v21  ;;  %v3847_v15 = vpack.c.bf16 %v877_v9, %v869_v8  ;;  %v3911_v18 = vpack.c.bf16 %v495_v11, %v487_v10  ;;  %v893_v21 = vld [vmem:[#allocation6 + $0x11e8] sm:$0xff]  ;;  %v940_v8 = vld [vmem:[#allocation6 + $0x1360] sm:$0xff]  ;;  %v558_v10 = vld [vmem:[#allocation6 + $0x770] sm:$0xff] }
 0x18b   :  { %3832 = vmatprep.subr.bf16.mxu0 %v3831_v24  ;;  %v3849_v24 = vpack.c.bf16 %v876_v17, %v868_v16  ;;  %v949_v11 = vld [vmem:[#allocation6 + $0x13a8] sm:$0xff]  ;;  %v3865_v17 = vpack.c.bf16 %v940_v8, %v932_v7  ;;  %v639_v7 = vld [vmem:[#allocation6 + $0x9f8] sm:$0xff] }
 0x18d   :  { %3894 = vmatpush1.bf16.msra.mxu1 %v3893_v22  ;;  %v503_v22 = vld [vmem:[#allocation6 + $0x5b8] sm:$0xff] }
 0x18e   :  { %3896 = vmatprep.subr.bf16.mxu1 %v3895_v27  ;;  %3834 = vmatpush1.bf16.msra.mxu0 %v3833_v33  ;;  %v3851_v27 = vpack.c.bf16 %v893_v21, %v885_v20  ;;  %v3915_v30 = vpack.c.bf16 %v511_v23, %v503_v22  ;;  %v909_v33 = vld [vmem:[#allocation6 + $0x1268] sm:$0xff]  ;;  %v948_v21 = vld [vmem:[#allocation6 + $0x13a0] sm:$0xff] }
 0x18f   :  { %3836 = vmatprep.subr.bf16.mxu0 %v3835_v38  ;;  %v3853_v38 = vpack.c.bf16 %v892_v29, %v884_v28  ;;  %v956_v22 = vld [vmem:[#allocation6 + $0x13e0] sm:$0xff]  ;;  %v591_v28 = vld [vmem:[#allocation6 + $0x878] sm:$0xff] }
 0x190   :  { %v3869_v29 = vpack.c.bf16 %v956_v22, %v948_v21  ;;  %v646_v22 = vld [vmem:[#allocation6 + $0xa30] sm:$0xff] }
 0x191   :  { %3898 = vmatpush1.bf16.msra.mxu1 %v3897_v34  ;;  %v519_v34 = vld [vmem:[#allocation6 + $0x638] sm:$0xff] }
 0x192   :  { %3900 = vmatprep.subr.bf16.mxu1 %v3899_v41  ;;  %3838 = vmatpush1.bf16.msra.mxu0 %v3837_v50  ;;  %v3855_v41 = vpack.c.bf16 %v909_v33, %v901_v32  ;;  %v3919_v45 = vpack.c.bf16 %v527_v37, %v519_v34  ;;  %v925_v50 = vld [vmem:[#allocation6 + $0x12e8] sm:$0xff]  ;;  %v1970_v34 = vld [vmem:[#allocation9 + $0x18] sm:$0xff] }
 0x193   :  { %3840 = vmatprep.subr.bf16.mxu0 %v3839_v54  ;;  %v3857_v54 = vpack.c.bf16 %v908_v43, %v900_v42  ;;  %v1967_v33 = vld [vmem:[#allocation9] sm:$0xff]  ;;  %v607_v42 = vld [vmem:[#allocation6 + $0x8f8] sm:$0xff] }
 0x194   :  { %v4033_v43 = vpack.c.bf16 %v1970_v34, %v1967_v33  ;;  %v662_v34 = vld [vmem:[#allocation6 + $0xab0] sm:$0xff] }
 0x195   :  { %3902 = vmatpush1.bf16.msra.mxu1 %v3901_v51  ;;  %1595 = vmatmul.mubr.f32.vlgmr.msra.gmra.mrb[2].mxu0 %v4948_v47  ;;  %v535_v51 = vld [vmem:[#allocation6 + $0x6b8] sm:$0xff] }
 0x196   :  { %3904 = vmatprep.subr.bf16.mxu1 %v3903_v58  ;;  %3842 = vmatpush1.bf16.msra.mxu0 %v3841_v63  ;;  %v3859_v58 = vpack.c.bf16 %v925_v50, %v917_v49  ;;  %v3923_v44 = vpack.c.bf16 %v543_v46, %v535_v51  ;;  %v941_v63 = vld [vmem:[#allocation6 + $0x1368] sm:$0xff]  ;;  %v1973_v50 = vld [vmem:[#allocation9 + $0x30] sm:$0xff]  ;;  %v1976_v51 = vld [vmem:[#allocation9 + $0x48] sm:$0xff] }
 0x197   :  { %1665 = vmatprep.mubr.f32.mxu0 %v4752_v0  ;;  %3844 = vmatprep.subr.bf16.mxu0 %v3843_v3  ;;  %v3861_v3 = vpack.c.bf16 %v924_v59, %v916_v52  ;;  %v623_v52 = vld [vmem:[#allocation6 + $0x978] sm:$0xff]  ;;  %v4037_v59 = vpack.c.bf16 %v1976_v51, %v1973_v50  ;;  %v678_v51 = vld [vmem:[#allocation6 + $0xb30] sm:$0xff] }
 0x199   :  { %3906 = vmatpush1.bf16.msra.mxu1 %v3905_v1  ;;  %v551_v1 = vld [vmem:[#allocation6 + $0x738] sm:$0xff] }
 0x19a   :  { %3908 = vmatprep.subr.bf16.mxu1 %v3907_v6  ;;  %3846 = vmatpush1.bf16.msra.mxu0 %v3845_v12  ;;  %v3863_v6 = vpack.c.bf16 %v941_v63, %v933_v62  ;;  %v3927_v9 = vpack.c.bf16 %v559_v2, %v551_v1  ;;  %v957_v12 = vld [vmem:[#allocation6 + $0x13e8] sm:$0xff]  ;;  %v1982_v1 = vld [vmem:[#allocation9 + $0x78] sm:$0xff] }
 0x19b   :  { %3848 = vmatprep.subr.bf16.mxu0 %v3847_v15  ;;  %v575_v15 = vld [vmem:[#allocation6 + $0x7f8] sm:$0xff]  ;;  %v3867_v20 = vpack.c.bf16 %v957_v12, %v949_v11  ;;  %v1979_v63 = vld [vmem:[#allocation9 + $0x60] sm:$0xff]  ;;  %v1988_v12 = vld [vmem:[#allocation9 + $0xa8] sm:$0xff] }
 0x19c   :  { %v3931_v23 = vpack.c.bf16 %v575_v15, %v567_v14  ;;  %v1985_v11 = vld [vmem:[#allocation9 + $0x90] sm:$0xff]  ;;  %v638_v15 = vld [vmem:[#allocation6 + $0x9f0] sm:$0xff] }
 0x19d   :  { %3910 = vmatpush1.bf16.msra.mxu1 %v3909_v13 }
 0x19e   :  { %3912 = vmatprep.subr.bf16.mxu1 %v3911_v18  ;;  %3850 = vmatpush1.bf16.msra.mxu0 %v3849_v24  ;;  %v3929_v18 = vpack.c.bf16 %v558_v10, %v550_v5  ;;  %v574_v24 = vld [vmem:[#allocation6 + $0x7f0] sm:$0xff]  ;;  %v1989_v5 = vld [vmem:[#allocation9 + $0xb0] sm:$0xff] }
 0x19f   :  { %3852 = vmatprep.subr.bf16.mxu0 %v3851_v27  ;;  %v583_v27 = vld [vmem:[#allocation6 + $0x838] sm:$0xff] }
 0x1a0   :  { %v3935_v37 = vpack.c.bf16 %v591_v28, %v583_v27  ;;  %v654_v27 = vld [vmem:[#allocation6 + $0xa70] sm:$0xff]  ;;  %v1998_v28 = vld [vmem:[#allocation9 + $0xf8] sm:$0xff] }
 0x1a1   :  { %3914 = vmatpush1.bf16.msra.mxu1 %v3913_v25  ;;  %v1968_v25 = vld [vmem:[#allocation9 + $0x8] sm:$0xff]  ;;  %v3953_v33 = vpack.c.bf16 %v654_v27, %v646_v22  ;;  %v735_v22 = vld [vmem:[#allocation6 + $0xcf8] sm:$0xff] }
 0x1a2   :  { %3916 = vmatprep.subr.bf16.mxu1 %v3915_v30  ;;  %3854 = vmatpush1.bf16.msra.mxu0 %v3853_v38  ;;  %v3933_v30 = vpack.c.bf16 %v574_v24, %v566_v19  ;;  %v4031_v32 = vpack.c.bf16 %v1971_v26, %v1968_v25  ;;  %v590_v38 = vld [vmem:[#allocation6 + $0x870] sm:$0xff]  ;;  %v647_v19 = vld [vmem:[#allocation6 + $0xa38] sm:$0xff]  ;;  %v1991_v24 = vld [vmem:[#allocation9 + $0xc0] sm:$0xff] }
 0x1a3   :  { %3856 = vmatprep.subr.bf16.mxu0 %v3855_v41  ;;  %v599_v41 = vld [vmem:[#allocation6 + $0x8b8] sm:$0xff]  ;;  %v1994_v25 = vld [vmem:[#allocation9 + $0xd8] sm:$0xff] }
 0x1a4   :  { %v3939_v46 = vpack.c.bf16 %v607_v42, %v599_v41  ;;  %v670_v41 = vld [vmem:[#allocation6 + $0xaf0] sm:$0xff]  ;;  %v2021_v27 = vld [vmem:[#allocation9 + $0x1b0] sm:$0xff] }
 0x1a5   :  { %3918 = vmatpush1.bf16.msra.mxu1 %v3917_v39  ;;  %v1974_v39 = vld [vmem:[#allocation9 + $0x38] sm:$0xff]  ;;  %v2004_v42 = vld [vmem:[#allocation9 + $0x128] sm:$0xff]  ;;  %v3957_v50 = vpack.c.bf16 %v670_v41, %v662_v34  ;;  %v751_v34 = vld [vmem:[#allocation6 + $0xd78] sm:$0xff] }
 0x1a6   :  { %3920 = vmatprep.subr.bf16.mxu1 %v3919_v45  ;;  %3858 = vmatpush1.bf16.msra.mxu0 %v3857_v54  ;;  %v3937_v45 = vpack.c.bf16 %v590_v38, %v582_v31  ;;  %v4035_v49 = vpack.c.bf16 %v1977_v40, %v1974_v39  ;;  %v606_v54 = vld [vmem:[#allocation6 + $0x8f0] sm:$0xff]  ;;  %v671_v31 = vld [vmem:[#allocation6 + $0xaf8] sm:$0xff]  ;;  %v2027_v41 = vld [vmem:[#allocation9 + $0x1e0] sm:$0xff] }
 0x1a7   :  { %3860 = vmatprep.subr.bf16.mxu0 %v3859_v58  ;;  %v615_v58 = vld [vmem:[#allocation6 + $0x938] sm:$0xff]  ;;  %v2000_v39 = vld [vmem:[#allocation9 + $0x108] sm:$0xff] }
 0x1a8   :  { %v3943_v2 = vpack.c.bf16 %v623_v52, %v615_v58  ;;  %v1997_v38 = vld [vmem:[#allocation9 + $0xf0] sm:$0xff]  ;;  %v686_v58 = vld [vmem:[#allocation6 + $0xb70] sm:$0xff]  ;;  %v2010_v52 = vld [vmem:[#allocation9 + $0x158] sm:$0xff] }
 0x1a9   :  { %3922 = vmatpush1.bf16.msra.mxu1 %v3921_v55  ;;  %v1980_v55 = vld [vmem:[#allocation9 + $0x68] sm:$0xff] }
 0x1aa   :  { %3924 = vmatprep.subr.bf16.mxu1 %v3923_v44  ;;  %3862 = vmatpush1.bf16.msra.mxu0 %v3861_v3  ;;  %v3941_v44 = vpack.c.bf16 %v606_v54, %v598_v48  ;;  %v4039_v62 = vpack.c.bf16 %v1983_v57, %v1980_v55  ;;  %v622_v3 = vld [vmem:[#allocation6 + $0x970] sm:$0xff]  ;;  %v687_v48 = vld [vmem:[#allocation6 + $0xb78] sm:$0xff]  ;;  %v2003_v54 = vld [vmem:[#allocation9 + $0x120] sm:$0xff] }
 0x1ab   :  { %v4974_v13 = vpop.f32.mrb[0].mxu1  ;;  %3864 = vmatprep.subr.bf16.mxu0 %v3863_v6  ;;  %v631_v6 = vld [vmem:[#allocation6 + $0x9b8] sm:$0xff]  ;;  %v3945_v8 = vpack.c.bf16 %v622_v3, %v614_v61  ;;  %v2006_v55 = vld [vmem:[#allocation9 + $0x138] sm:$0xff] }
 0x1ac   :  { %v4976_v16 = vpop.f32.mrb[1].mxu1  ;;  %v3947_v14 = vpack.c.bf16 %v639_v7, %v631_v6  ;;  %v703_v61 = vld [vmem:[#allocation6 + $0xbf8] sm:$0xff]  ;;  %v702_v6 = vld [vmem:[#allocation6 + $0xbf0] sm:$0xff] }
 0x1ad   :  { %3926 = vmatpush1.bf16.msra.mxu1 %v3925_v4  ;;  %v1986_v4 = vld [vmem:[#allocation9 + $0x98] sm:$0xff]  ;;  %v2009_v3 = vld [vmem:[#allocation9 + $0x150] sm:$0xff]  ;;  %v2016_v7 = vld [vmem:[#allocation9 + $0x188] sm:$0xff] }
 0x1ae   :  { %3928 = vmatprep.subr.bf16.mxu1 %v3927_v9  ;;  %3866 = vmatpush1.bf16.msra.mxu0 %v3865_v17  ;;  %v630_v9 = vld [vmem:[#allocation6 + $0x9b0] sm:$0xff]  ;;  %v4043_v10 = vpack.c.bf16 %v1989_v5, %v1986_v4 }
 0x1af   :  { %3868 = vmatprep.subr.bf16.mxu0 %v3867_v20  ;;  %v1992_v17 = vld [vmem:[#allocation9 + $0xc8] sm:$0xff]  ;;  %v655_v20 = vld [vmem:[#allocation6 + $0xa78] sm:$0xff]  ;;  %v3949_v21 = vpack.c.bf16 %v638_v15, %v630_v9  ;;  %v2015_v15 = vld [vmem:[#allocation9 + $0x180] sm:$0xff] }
 0x1b0   :  { %v3951_v26 = vpack.c.bf16 %v655_v20, %v647_v19  ;;  %v2012_v4 = vld [vmem:[#allocation9 + $0x168] sm:$0xff]  ;;  %v719_v9 = vld [vmem:[#allocation6 + $0xc78] sm:$0xff]  ;;  %v2022_v20 = vld [vmem:[#allocation9 + $0x1b8] sm:$0xff] }
 0x1b1   :  { %3930 = vmatpush1.bf16.msra.mxu1 %v3929_v18  ;;  %v1995_v18 = vld [vmem:[#allocation9 + $0xe0] sm:$0xff]  ;;  %v718_v19 = vld [vmem:[#allocation6 + $0xc70] sm:$0xff] }
 0x1b2   :  { %3932 = vmatprep.subr.bf16.mxu1 %v3931_v23  ;;  %3870 = vmatpush1.bf16.msra.mxu0 %v3869_v29  ;;  %v4047_v23 = vpack.c.bf16 %v1995_v18, %v1992_v17  ;;  %v2001_v29 = vld [vmem:[#allocation9 + $0x110] sm:$0xff]  ;;  %v2018_v17 = vld [vmem:[#allocation9 + $0x198] sm:$0xff] }
 0x1b3   :  { %4032 = vmatprep.subr.bf16.mxu0 %v4031_v32  ;;  %v4049_v32 = vpack.c.bf16 %v1994_v25, %v1991_v24  ;;  %v726_v25 = vld [vmem:[#allocation6 + $0xcb0] sm:$0xff] }
 0x1b5   :  { %3934 = vmatpush1.bf16.msra.mxu1 %v3933_v30  ;;  %1666 = vmatmul.mubr.f32.vlgmr.msra.gmra.mrb[2].mxu0 %v4951_v53  ;;  %v663_v30 = vld [vmem:[#allocation6 + $0xab8] sm:$0xff] }
 0x1b6   :  { %3936 = vmatprep.subr.bf16.mxu1 %v3935_v37  ;;  %4034 = vmatpush1.bf16.msra.mxu0 %v4033_v43  ;;  %v4051_v37 = vpack.c.bf16 %v2001_v29, %v1998_v28  ;;  %v3955_v40 = vpack.c.bf16 %v671_v31, %v663_v30  ;;  %v2007_v43 = vld [vmem:[#allocation9 + $0x140] sm:$0xff]  ;;  %v2024_v28 = vld [vmem:[#allocation9 + $0x1c8] sm:$0xff] }
 0x1b7   :  { %4036 = vmatprep.subr.bf16.mxu0 %v4035_v49  ;;  %v4053_v49 = vpack.c.bf16 %v2000_v39, %v1997_v38  ;;  %v734_v30 = vld [vmem:[#allocation6 + $0xcf0] sm:$0xff] }
 0x1b8   :  { %1737 = vmatmul.mubr.f32.vlgmr.msra.gmra.mrb[4].mxu1 %v4941_v35  ;;  %v4041_v35 = vpack.c.bf16 %v1982_v1, %v1979_v63  ;;  %v3961_v63 = vpack.c.bf16 %v686_v58, %v678_v51  ;;  %v694_v1 = vld [vmem:[#allocation6 + $0xbb0] sm:$0xff]  ;;  %v3973_v38 = vpack.c.bf16 %v734_v30, %v726_v25  ;;  %v767_v51 = vld [vmem:[#allocation6 + $0xdf8] sm:$0xff] }
 0x1b9   :  { %3938 = vmatpush1.bf16.msra.mxu1 %v3937_v45  ;;  %1807 = vmatprep.mubr.f32.mxu1 %v4957_v60  ;;  %v4045_v60 = vpack.c.bf16 %v1988_v12, %v1985_v11  ;;  %v679_v45 = vld [vmem:[#allocation6 + $0xb38] sm:$0xff]  ;;  %v3965_v11 = vpack.c.bf16 %v702_v6, %v694_v1  ;;  %v710_v12 = vld [vmem:[#allocation6 + $0xc30] sm:$0xff]  ;;  %v2039_v6 = vld [vmem:[#allocation9 + $0x240] sm:$0xff] }
 0x1ba   :  { %3940 = vmatprep.subr.bf16.mxu1 %v3939_v46  ;;  %4038 = vmatpush1.bf16.msra.mxu0 %v4037_v59  ;;  %v4055_v46 = vpack.c.bf16 %v2007_v43, %v2004_v42  ;;  %v3959_v57 = vpack.c.bf16 %v687_v48, %v679_v45  ;;  %v2013_v59 = vld [vmem:[#allocation9 + $0x170] sm:$0xff]  ;;  %v3969_v24 = vpack.c.bf16 %v718_v19, %v710_v12  ;;  %v2028_v31 = vld [vmem:[#allocation9 + $0x1e8] sm:$0xff]  ;;  %v2030_v42 = vld [vmem:[#allocation9 + $0x1f8] sm:$0xff] }
 0x1bb   :  { %4040 = vmatprep.subr.bf16.mxu0 %v4039_v62  ;;  %v4057_v62 = vpack.c.bf16 %v2006_v55, %v2003_v54  ;;  %v742_v39 = vld [vmem:[#allocation6 + $0xd30] sm:$0xff]  ;;  %v2034_v48 = vld [vmem:[#allocation9 + $0x218] sm:$0xff]  ;;  %v2033_v58 = vld [vmem:[#allocation9 + $0x210] sm:$0xff] }
 0x1bc   :  { %v750_v45 = vld [vmem:[#allocation6 + $0xd70] sm:$0xff]  ;;  %v783_v1 = vld [vmem:[#allocation6 + $0xe78] sm:$0xff] }
 0x1bd   :  { %3942 = vmatpush1.bf16.msra.mxu1 %v3941_v44  ;;  %v695_v44 = vld [vmem:[#allocation6 + $0xbb8] sm:$0xff]  ;;  %v3977_v54 = vpack.c.bf16 %v750_v45, %v742_v39  ;;  %v758_v55 = vld [vmem:[#allocation6 + $0xdb0] sm:$0xff] }
 0x1be   :  { %3944 = vmatprep.subr.bf16.mxu1 %v3943_v2  ;;  %4042 = vmatpush1.bf16.msra.mxu0 %v4041_v35  ;;  %v4059_v2 = vpack.c.bf16 %v2013_v59, %v2010_v52  ;;  %v3963_v5 = vpack.c.bf16 %v703_v61, %v695_v44  ;;  %v2019_v35 = vld [vmem:[#allocation9 + $0x1a0] sm:$0xff]  ;;  %v2036_v52 = vld [vmem:[#allocation9 + $0x228] sm:$0xff]  ;;  %v799_v12 = vld [vmem:[#allocation6 + $0xef8] sm:$0xff] }
 0x1bf   :  { %4044 = vmatprep.subr.bf16.mxu0 %v4043_v10  ;;  %v4061_v10 = vpack.c.bf16 %v2012_v4, %v2009_v3  ;;  %v766_v44 = vld [vmem:[#allocation6 + $0xdf0] sm:$0xff]  ;;  %v823_v45 = vld [vmem:[#allocation6 + $0xfb8] sm:$0xff] }
 0x1c0   :  { %v2040_v61 = vld [vmem:[#allocation9 + $0x248] sm:$0xff]  ;;  %v3981_v3 = vpack.c.bf16 %v766_v44, %v758_v55 }
 0x1c1   :  { %3946 = vmatpush1.bf16.msra.mxu1 %v3945_v8  ;;  %v711_v8 = vld [vmem:[#allocation6 + $0xc38] sm:$0xff]  ;;  %v774_v4 = vld [vmem:[#allocation6 + $0xe30] sm:$0xff] }
 0x1c2   :  { %3948 = vmatprep.subr.bf16.mxu1 %v3947_v14  ;;  %4046 = vmatpush1.bf16.msra.mxu0 %v4045_v60  ;;  %v4063_v14 = vpack.c.bf16 %v2019_v35, %v2016_v7  ;;  %v3967_v18 = vpack.c.bf16 %v719_v9, %v711_v8  ;;  %v2025_v60 = vld [vmem:[#allocation9 + $0x1d0] sm:$0xff]  ;;  %v2042_v7 = vld [vmem:[#allocation9 + $0x258] sm:$0xff]  ;;  %v782_v8 = vld [vmem:[#allocation6 + $0xe70] sm:$0xff] }
 0x1c3   :  { %4048 = vmatprep.subr.bf16.mxu0 %v4047_v23  ;;  %v4065_v23 = vpack.c.bf16 %v2018_v17, %v2015_v15  ;;  %v2046_v9 = vld [vmem:[#allocation9 + $0x278] sm:$0xff]  ;;  %v4081_v15 = vpack.c.bf16 %v2042_v7, %v2039_v6  ;;  %v3985_v19 = vpack.c.bf16 %v782_v8, %v774_v4  ;;  %v2052_v25 = vld [vmem:[#allocation9 + $0x2a8] sm:$0xff]  ;;  %v2063_v6 = vld [vmem:[#allocation9 + $0x300] sm:$0xff] }
 0x1c4   :  { %v4982_v17 = vld [vmem:[#allocation8] sm:$0xff]  ;;  %v822_v55 = vld [vmem:[#allocation6 + $0xfb0] sm:$0xff] }
 0x1c5   :  { %3950 = vmatpush1.bf16.msra.mxu1 %v3949_v21  ;;  %v727_v21 = vld [vmem:[#allocation6 + $0xcb8] sm:$0xff]  ;;  %v2066_v7 = vld [vmem:[#allocation9 + $0x318] sm:$0xff]  ;;  %v838_v8 = vld [vmem:[#allocation6 + $0x1030] sm:$0xff] }
 0x1c6   :  { %3952 = vmatprep.subr.bf16.mxu1 %v3951_v26  ;;  %4050 = vmatpush1.bf16.msra.mxu0 %v4049_v32  ;;  %v4067_v26 = vpack.c.bf16 %v2025_v60, %v2022_v20  ;;  %v3971_v29 = vpack.c.bf16 %v735_v22, %v727_v21  ;;  %v2031_v32 = vld [vmem:[#allocation9 + $0x200] sm:$0xff]  ;;  %v790_v20 = vld [vmem:[#allocation6 + $0xeb0] sm:$0xff]  ;;  %v2045_v21 = vld [vmem:[#allocation9 + $0x270] sm:$0xff] }
 0x1c7   :  { %4052 = vmatprep.subr.bf16.mxu0 %v4051_v37  ;;  %v4069_v37 = vpack.c.bf16 %v2024_v28, %v2021_v27  ;;  %v2048_v22 = vld [vmem:[#allocation9 + $0x288] sm:$0xff]  ;;  %v807_v27 = vld [vmem:[#allocation6 + $0xf38] sm:$0xff] }
 0x1c8   :  { %v815_v28 = vld [vmem:[#allocation6 + $0xf78] sm:$0xff] }
 0x1c9   :  { %3954 = vmatpush1.bf16.msra.mxu1 %v3953_v33  ;;  %v743_v33 = vld [vmem:[#allocation6 + $0xd38] sm:$0xff]  ;;  %v3991_v39 = vpack.c.bf16 %v815_v28, %v807_v27 }
 0x1ca   :  { %3956 = vmatprep.subr.bf16.mxu1 %v3955_v40  ;;  %4054 = vmatpush1.bf16.msra.mxu0 %v4053_v49  ;;  %v4071_v40 = vpack.c.bf16 %v2031_v32, %v2028_v31  ;;  %v3975_v43 = vpack.c.bf16 %v751_v34, %v743_v33  ;;  %v2037_v49 = vld [vmem:[#allocation9 + $0x230] sm:$0xff]  ;;  %v4085_v31 = vpack.c.bf16 %v2048_v22, %v2045_v21  ;;  %v806_v33 = vld [vmem:[#allocation6 + $0xf30] sm:$0xff] }
 0x1cb   :  { %4056 = vmatprep.subr.bf16.mxu0 %v4055_v46  ;;  %v4073_v46 = vpack.c.bf16 %v2030_v42, %v2027_v41  ;;  %v2058_v42 = vld [vmem:[#allocation9 + $0x2d8] sm:$0xff]  ;;  %v2072_v21 = vld [vmem:[#allocation9 + $0x348] sm:$0xff]  ;;  %v871_v27 = vld [vmem:[#allocation6 + $0x1138] sm:$0xff] }
 0x1cc   :  { %v879_v28 = vld [vmem:[#allocation6 + $0x1178] sm:$0xff] }
 0x1cd   :  { %3958 = vmatpush1.bf16.msra.mxu1 %v3957_v50  ;;  %v759_v50 = vld [vmem:[#allocation6 + $0xdb8] sm:$0xff] }
 0x1ce   :  { %3960 = vmatprep.subr.bf16.mxu1 %v3959_v57  ;;  %4058 = vmatpush1.bf16.msra.mxu0 %v4057_v62  ;;  %v4075_v57 = vpack.c.bf16 %v2037_v49, %v2034_v48  ;;  %v3979_v59 = vpack.c.bf16 %v767_v51, %v759_v50  ;;  %v2043_v62 = vld [vmem:[#allocation9 + $0x260] sm:$0xff]  ;;  %v831_v48 = vld [vmem:[#allocation6 + $0xff8] sm:$0xff] }
 0x1cf   :  { %4060 = vmatprep.subr.bf16.mxu0 %v4059_v2  ;;  %v4077_v2 = vpack.c.bf16 %v2036_v52, %v2033_v58  ;;  %v2057_v52 = vld [vmem:[#allocation9 + $0x2d0] sm:$0xff]  ;;  %v3995_v44 = vpack.c.bf16 %v831_v48, %v823_v45  ;;  %v886_v45 = vld [vmem:[#allocation6 + $0x11b0] sm:$0xff] }
 0x1d1   :  { %3962 = vmatpush1.bf16.msra.mxu1 %v3961_v63  ;;  %v775_v63 = vld [vmem:[#allocation6 + $0xe38] sm:$0xff] }
 0x1d2   :  { %3964 = vmatprep.subr.bf16.mxu1 %v3963_v5  ;;  %4062 = vmatpush1.bf16.msra.mxu0 %v4061_v10  ;;  %v4079_v5 = vpack.c.bf16 %v2043_v62, %v2040_v61  ;;  %v3983_v35 = vpack.c.bf16 %v783_v1, %v775_v63  ;;  %v2049_v10 = vld [vmem:[#allocation9 + $0x290] sm:$0xff]  ;;  %v830_v61 = vld [vmem:[#allocation6 + $0xff0] sm:$0xff]  ;;  %v2067_v1 = vld [vmem:[#allocation9 + $0x320] sm:$0xff] }
 0x1d3   :  { %4064 = vmatprep.subr.bf16.mxu0 %v4063_v14  ;;  %v964_v14 = vsub.s32 0, %v4921_v56  ;;  %v4083_v60 = vpack.c.bf16 %v2049_v10, %v2046_v9  ;;  %v2064_v63 = vld [vmem:[#allocation9 + $0x308] sm:$0xff]  ;;  %v863_v10 = vld [vmem:[#allocation6 + $0x10f8] sm:$0xff] }
 0x1d4   :  { %v846_v9 = vld [vmem:[#allocation6 + $0x1070] sm:$0xff] }
 0x1d5   :  { %3966 = vmatpush1.bf16.msra.mxu1 %v3965_v11  ;;  %v791_v11 = vld [vmem:[#allocation6 + $0xeb8] sm:$0xff] }
 0x1d6   :  { %3968 = vmatprep.subr.bf16.mxu1 %v3967_v18  ;;  %4066 = vmatpush1.bf16.msra.mxu0 %v4065_v23  ;;  %v968_v18 = vsub.s32 1, %v4921_v56  ;;  %v3987_v23 = vpack.c.bf16 %v799_v12, %v791_v11  ;;  %v2070_v11 = vld [vmem:[#allocation9 + $0x338] sm:$0xff]  ;;  %v2073_v12 = vld [vmem:[#allocation9 + $0x350] sm:$0xff] }
 0x1d7   :  { %4068 = vmatprep.subr.bf16.mxu0 %v4067_v26  ;;  %v2055_v26 = vld [vmem:[#allocation9 + $0x2c0] sm:$0xff] }
 0x1d8   :  { %v969_v30 = vrot.slane %v4982_v17, %v968_v18  ;;  %v4087_v34 = vpack.c.bf16 %v2055_v26, %v2052_v25  ;;  %v2076_v25 = vld [vmem:[#allocation9 + $0x368] sm:$0xff]  ;;  %v2079_v26 = vld [vmem:[#allocation9 + $0x380] sm:$0xff] }
 0x1d9   :  { %3970 = vmatpush1.bf16.msra.mxu1 %v3969_v24  ;;  %v798_v24 = vld [vmem:[#allocation6 + $0xef0] sm:$0xff] }
 0x1da   :  { %3972 = vmatprep.subr.bf16.mxu1 %v3971_v29  ;;  %4070 = vmatpush1.bf16.msra.mxu0 %v4069_v37  ;;  %v965_v29 = vrot.slane %v4982_v17, %v964_v14  ;;  %v3989_v32 = vpack.c.bf16 %v798_v24, %v790_v20  ;;  %v2051_v37 = vld [vmem:[#allocation9 + $0x2a0] sm:$0xff]  ;;  %v854_v20 = vld [vmem:[#allocation6 + $0x10b0] sm:$0xff]  ;;  %v4099_v24 = vpack.c.bf16 %v2073_v12, %v2070_v11 }
 0x1db   :  { %4072 = vmatprep.subr.bf16.mxu0 %v4071_v40  ;;  %v814_v40 = vld [vmem:[#allocation6 + $0xf70] sm:$0xff] }
 0x1dc   :  { %v2096_v11 = vld [vmem:[#allocation9 + $0x408] sm:$0xff] }
 0x1dd   :  { %3974 = vmatpush1.bf16.msra.mxu1 %v3973_v38  ;;  %v2054_v38 = vld [vmem:[#allocation9 + $0x2b8] sm:$0xff] }
 0x1de   :  { %3976 = vmatprep.subr.bf16.mxu1 %v3975_v43  ;;  %4074 = vmatpush1.bf16.msra.mxu0 %v4073_v46  ;;  %v2061_v43 = vld [vmem:[#allocation9 + $0x2f0] sm:$0xff]  ;;  %v4089_v46 = vpack.c.bf16 %v2054_v38, %v2051_v37  ;;  %v4007_v37 = vpack.c.bf16 %v879_v28, %v871_v27  ;;  %v878_v38 = vld [vmem:[#allocation6 + $0x1170] sm:$0xff]  ;;  %v2102_v27 = vld [vmem:[#allocation9 + $0x438] sm:$0xff] }
 0x1df   :  { %4076 = vmatprep.subr.bf16.mxu0 %v4075_v57  ;;  %v4091_v58 = vpack.c.bf16 %v2061_v43, %v2058_v42  ;;  %v895_v42 = vld [vmem:[#allocation6 + $0x11f8] sm:$0xff] }
 0x1e1   :  { %3978 = vmatpush1.bf16.msra.mxu1 %v3977_v54  ;;  %v3993_v54 = vpack.c.bf16 %v814_v40, %v806_v33  ;;  %v2075_v33 = vld [vmem:[#allocation9 + $0x360] sm:$0xff]  ;;  %v2085_v40 = vld [vmem:[#allocation9 + $0x3b0] sm:$0xff] }
 0x1e2   :  { %3980 = vmatprep.subr.bf16.mxu1 %v3979_v59  ;;  %4078 = vmatpush1.bf16.msra.mxu0 %v4077_v2  ;;  %v2060_v59 = vld [vmem:[#allocation9 + $0x2e8] sm:$0xff]  ;;  %v839_v2 = vld [vmem:[#allocation6 + $0x1038] sm:$0xff] }
 0x1e3   :  { %4080 = vmatprep.subr.bf16.mxu0 %v4079_v5  ;;  %v4093_v4 = vpack.c.bf16 %v2060_v59, %v2057_v52  ;;  %v4095_v5 = vpack.c.bf16 %v2067_v1, %v2064_v63  ;;  %v911_v52 = vld [vmem:[#allocation6 + $0x1278] sm:$0xff]  ;;  %v2087_v1 = vld [vmem:[#allocation9 + $0x3c0] sm:$0xff] }
 0x1e5   :  { %3982 = vmatpush1.bf16.msra.mxu1 %v3981_v3  ;;  %v847_v3 = vld [vmem:[#allocation6 + $0x1078] sm:$0xff] }
 0x1e6   :  { %3984 = vmatprep.subr.bf16.mxu1 %v3983_v35  ;;  %4082 = vmatpush1.bf16.msra.mxu0 %v4081_v15  ;;  %v3999_v35 = vpack.c.bf16 %v847_v3, %v839_v2  ;;  %v4097_v15 = vpack.c.bf16 %v2066_v7, %v2063_v6  ;;  %v2090_v2 = vld [vmem:[#allocation9 + $0x3d8] sm:$0xff]  ;;  %v919_v6 = vld [vmem:[#allocation6 + $0x12b8] sm:$0xff] }
 0x1e7   :  { %4084 = vmatprep.subr.bf16.mxu0 %v4083_v60  ;;  %v2069_v60 = vld [vmem:[#allocation9 + $0x330] sm:$0xff] }
 0x1e8   :  { %v1170_v41 = vpop.f32.mrb[0].mxu0  ;;  %v927_v7 = vld [vmem:[#allocation6 + $0x12f8] sm:$0xff] }
 0x1e9   :  { %3986 = vmatpush1.bf16.msra.mxu1 %v3985_v19  ;;  %v4471_v49 = vadd.f32 %v1170_v41, %v965_v29  ;;  %v1172_v50 = vpop.f32.mrb[1].mxu0  ;;  %v4001_v19 = vpack.c.bf16 %v846_v9, %v838_v8  ;;  %v4101_v29 = vpack.c.bf16 %v2072_v21, %v2069_v60  ;;  %v887_v41 = vld [vmem:[#allocation6 + $0x11b8] sm:$0xff]  ;;  %v918_v9 = vld [vmem:[#allocation6 + $0x12b0] sm:$0xff]  ;;  %v4019_v12 = vpack.c.bf16 %v927_v7, %v919_v6  ;;  %v1978_v7 = vld [vmem:[#allocation9 + $0x58] sm:$0xff] }
 0x1ea   :  { %3988 = vmatprep.subr.bf16.mxu1 %v3987_v23  ;;  %v4473_v51 = vadd.f32 %v1172_v50, %v969_v30  ;;  %4086 = vmatpush1.bf16.msra.mxu0 %v4085_v31  ;;  %v862_v23 = vld [vmem:[#allocation6 + $0x10f0] sm:$0xff]  ;;  %v935_v60 = vld [vmem:[#allocation6 + $0x1338] sm:$0xff] }
 0x1eb   :  { %v4992_v57 = vadd.f32 %v4471_v49, %v4974_v13  ;;  %4088 = vmatprep.subr.bf16.mxu0 %v4087_v34  ;;  %v3997_v13 = vpack.c.bf16 %v830_v61, %v822_v55  ;;  %v4005_v30 = vpack.c.bf16 %v862_v23, %v854_v20  ;;  %v870_v31 = vld [vmem:[#allocation6 + $0x1130] sm:$0xff]  ;;  %v2078_v34 = vld [vmem:[#allocation9 + $0x378] sm:$0xff]  ;;  %v2081_v49 = vld [vmem:[#allocation9 + $0x390] sm:$0xff] }
 0x1ec   :  { %v4995_v62 = vadd.f32 %v4473_v51, %v4976_v16  ;;  %v855_v16 = vld [vmem:[#allocation6 + $0x10b8] sm:$0xff]  ;;  %v4009_v43 = vpack.c.bf16 %v878_v38, %v870_v31  ;;  %v2084_v50 = vld [vmem:[#allocation9 + $0x3a8] sm:$0xff]  ;;  %v4011_v51 = vpack.c.bf16 %v895_v42, %v887_v41  ;;  %v2091_v55 = vld [vmem:[#allocation9 + $0x3e0] sm:$0xff] }
 0x1ed   :  { %3990 = vmatpush1.bf16.msra.mxu1 %v3989_v32  ;;  %v4003_v22 = vpack.c.bf16 %v863_v10, %v855_v16  ;;  %v4103_v32 = vpack.c.bf16 %v2079_v26, %v2076_v25  ;;  %v4109_v59 = vpack.c.bf16 %v2084_v50, %v2081_v49  ;;  %v902_v61 = vld [vmem:[#allocation6 + $0x1230] sm:$0xff]  ;;  %v2093_v10 = vld [vmem:[#allocation9 + $0x3f0] sm:$0xff]  ;;  %v2103_v20 = vld [vmem:[#allocation9 + $0x440] sm:$0xff] }
 0x1ee   :  { %3992 = vmatprep.subr.bf16.mxu1 %v3991_v39  ;;  %4090 = vmatpush1.bf16.msra.mxu0 %v4089_v46  ;;  %v2082_v39 = vld [vmem:[#allocation9 + $0x398] sm:$0xff]  ;;  %v894_v46 = vld [vmem:[#allocation6 + $0x11f0] sm:$0xff]  ;;  %v943_v21 = vld [vmem:[#allocation6 + $0x1378] sm:$0xff] }
 0x1ef   :  { %2432 = vmatprep.mubr.f32.mxu0 %v4995_v62  ;;  %4092 = vmatprep.subr.bf16.mxu0 %v4091_v58  ;;  %v4107_v48 = vpack.c.bf16 %v2085_v40, %v2082_v39  ;;  %v903_v58 = vld [vmem:[#allocation6 + $0x1238] sm:$0xff]  ;;  %v2099_v26 = vld [vmem:[#allocation9 + $0x420] sm:$0xff]  ;;  %v4023_v28 = vpack.c.bf16 %v943_v21, %v935_v60  ;;  %v950_v38 = vld [vmem:[#allocation6 + $0x13b0] sm:$0xff] }
 0x1f0   :  { %v4015_v3 = vpack.c.bf16 %v911_v52, %v903_v58  ;;  %v2109_v31 = vld [vmem:[#allocation9 + $0x470] sm:$0xff]  ;;  %v2108_v41 = vld [vmem:[#allocation9 + $0x468] sm:$0xff]  ;;  %v2126_v60 = vld [vmem:[#allocation9 + $0x4f8] sm:$0xff] }
 0x1f1   :  { %3994 = vmatpush1.bf16.msra.mxu1 %v3993_v54  ;;  %v2088_v54 = vld [vmem:[#allocation9 + $0x3c8] sm:$0xff]  ;;  %v2105_v40 = vld [vmem:[#allocation9 + $0x450] sm:$0xff] }
 0x1f2   :  { %3996 = vmatprep.subr.bf16.mxu1 %v3995_v44  ;;  %4094 = vmatpush1.bf16.msra.mxu0 %v4093_v4  ;;  %v4013_v44 = vpack.c.bf16 %v894_v46, %v886_v45  ;;  %v4111_v63 = vpack.c.bf16 %v2091_v55, %v2088_v54  ;;  %v910_v4 = vld [vmem:[#allocation6 + $0x1270] sm:$0xff]  ;;  %v2115_v45 = vld [vmem:[#allocation9 + $0x4a0] sm:$0xff]  ;;  %v4125_v50 = vpack.c.bf16 %v2108_v41, %v2105_v40  ;;  %v2114_v55 = vld [vmem:[#allocation9 + $0x498] sm:$0xff] }
 0x1f3   :  { %4096 = vmatprep.subr.bf16.mxu0 %v4095_v5  ;;  %v2097_v5 = vld [vmem:[#allocation9 + $0x410] sm:$0xff]  ;;  %v4017_v8 = vpack.c.bf16 %v910_v4, %v902_v61  ;;  %v2020_v49 = vld [vmem:[#allocation9 + $0x1a8] sm:$0xff]  ;;  %v2111_v54 = vld [vmem:[#allocation9 + $0x480] sm:$0xff] }
 0x1f4   :  { %v1969_v52 = vld [vmem:[#allocation9 + $0x10] sm:$0xff]  ;;  %v2026_v61 = vld [vmem:[#allocation9 + $0x1d8] sm:$0xff]  ;;  %v1975_v4 = vld [vmem:[#allocation9 + $0x40] sm:$0xff] }
 0x1f5   :  { %3998 = vmatpush1.bf16.msra.mxu1 %v3997_v13  ;;  %2433 = vmatmul.mubr.f32.vlgmr.msra.gmra.mrb[4].mxu0 %v4992_v57  ;;  %v2094_v13 = vld [vmem:[#allocation9 + $0x3f8] sm:$0xff] }
 0x1f6   :  { %4000 = vmatprep.subr.bf16.mxu1 %v3999_v35  ;;  %4098 = vmatpush1.bf16.msra.mxu0 %v4097_v15  ;;  %v4113_v35 = vpack.c.bf16 %v2090_v2, %v2087_v1  ;;  %v4115_v16 = vpack.c.bf16 %v2097_v5, %v2094_v13  ;;  %v926_v15 = vld [vmem:[#allocation6 + $0x12f0] sm:$0xff]  ;;  %v2121_v1 = vld [vmem:[#allocation9 + $0x4d0] sm:$0xff]  ;;  %v4129_v2 = vpack.c.bf16 %v2114_v55, %v2111_v54  ;;  %v2050_v54 = vld [vmem:[#allocation9 + $0x298] sm:$0xff] }
 0x1f7   :  { %4100 = vmatprep.subr.bf16.mxu0 %v4099_v24  ;;  %v4021_v23 = vpack.c.bf16 %v926_v15, %v918_v9  ;;  %v934_v24 = vld [vmem:[#allocation6 + $0x1330] sm:$0xff]  ;;  %v2117_v13 = vld [vmem:[#allocation9 + $0x4b0] sm:$0xff]  ;;  %v2127_v9 = vld [vmem:[#allocation9 + $0x500] sm:$0xff] }
 0x1f8   :  { %1808 = vmatmul.mubr.f32.vlgmr.msra.gmra.mrb[4].mxu1 %v4948_v47  ;;  %v4105_v47 = vpack.c.bf16 %v2078_v34, %v2075_v33  ;;  %v959_v33 = vld [vmem:[#allocation6 + $0x13f8] sm:$0xff]  ;;  %v4121_v34 = vpack.c.bf16 %v2102_v27, %v2099_v26  ;;  %v2120_v5 = vld [vmem:[#allocation9 + $0x4c8] sm:$0xff]  ;;  %v2038_v26 = vld [vmem:[#allocation9 + $0x238] sm:$0xff] }
 0x1f9   :  { %4002 = vmatpush1.bf16.msra.mxu1 %v4001_v19  ;;  %1878 = vmatprep.mubr.f32.mxu1 %v4752_v0  ;;  %v2100_v19 = vld [vmem:[#allocation9 + $0x428] sm:$0xff]  ;;  %v1981_v15 = vld [vmem:[#allocation9 + $0x70] sm:$0xff] }
 0x1fa   :  { %4004 = vmatprep.subr.bf16.mxu1 %v4003_v22  ;;  %4102 = vmatpush1.bf16.msra.mxu0 %v4101_v29  ;;  %v4117_v22 = vpack.c.bf16 %v2096_v11, %v2093_v10  ;;  %v4119_v25 = vpack.c.bf16 %v2103_v20, %v2100_v19  ;;  %v942_v29 = vld [vmem:[#allocation6 + $0x1370] sm:$0xff]  ;;  %v4133_v11 = vpack.c.bf16 %v2120_v5, %v2117_v13  ;;  %v2123_v20 = vld [vmem:[#allocation9 + $0x4e0] sm:$0xff] }
 0x1fb   :  { %4104 = vmatprep.subr.bf16.mxu0 %v4103_v32  ;;  %v951_v32 = vld [vmem:[#allocation6 + $0x13b8] sm:$0xff]  ;;  %v2032_v10 = vld [vmem:[#allocation9 + $0x208] sm:$0xff] }
 0x1fc   :  { %v4027_v42 = vpack.c.bf16 %v959_v33, %v951_v32  ;;  %v1990_v33 = vld [vmem:[#allocation9 + $0xb8] sm:$0xff]  ;;  %v2056_v13 = vld [vmem:[#allocation9 + $0x2c8] sm:$0xff] }
 0x1fd   :  { %4006 = vmatpush1.bf16.msra.mxu1 %v4005_v30  ;;  %v2106_v30 = vld [vmem:[#allocation9 + $0x458] sm:$0xff] }
 0x1fe   :  { %4008 = vmatprep.subr.bf16.mxu1 %v4007_v37  ;;  %4106 = vmatpush1.bf16.msra.mxu0 %v4105_v47  ;;  %v4025_v37 = vpack.c.bf16 %v942_v29, %v934_v24  ;;  %v4123_v39 = vpack.c.bf16 %v2109_v31, %v2106_v30  ;;  %v958_v47 = vld [vmem:[#allocation6 + $0x13f0] sm:$0xff]  ;;  %v2133_v24 = vld [vmem:[#allocation9 + $0x530] sm:$0xff] }
 0x1ff   :  { %4108 = vmatprep.subr.bf16.mxu0 %v4107_v48  ;;  %v2017_v48 = vld [vmem:[#allocation9 + $0x190] sm:$0xff]  ;;  %v2132_v31 = vld [vmem:[#allocation9 + $0x528] sm:$0xff] }
 0x200   :  { %v4287_v58 = vpack.c.bf16 %v2020_v49, %v2017_v48  ;;  %v2129_v30 = vld [vmem:[#allocation9 + $0x510] sm:$0xff]  ;;  %v1996_v49 = vld [vmem:[#allocation9 + $0xe8] sm:$0xff] }
 0x201   :  { %4010 = vmatpush1.bf16.msra.mxu1 %v4009_v43  ;;  %v2112_v43 = vld [vmem:[#allocation9 + $0x488] sm:$0xff]  ;;  %v4141_v40 = vpack.c.bf16 %v2132_v31, %v2129_v30 }
 0x202   :  { %4012 = vmatprep.subr.bf16.mxu1 %v4011_v51  ;;  %4110 = vmatpush1.bf16.msra.mxu0 %v4109_v59  ;;  %v4029_v51 = vpack.c.bf16 %v958_v47, %v950_v38  ;;  %v4127_v46 = vpack.c.bf16 %v2115_v45, %v2112_v43  ;;  %v1972_v59 = vld [vmem:[#allocation9 + $0x28] sm:$0xff]  ;;  %v2041_v38 = vld [vmem:[#allocation9 + $0x250] sm:$0xff]  ;;  %v2135_v43 = vld [vmem:[#allocation9 + $0x540] sm:$0xff] }
 0x203   :  { %4112 = vmatprep.subr.bf16.mxu0 %v4111_v63  ;;  %v2118_v63 = vld [vmem:[#allocation9 + $0x4b8] sm:$0xff] }
 0x204   :  { %v2138_v45 = vld [vmem:[#allocation9 + $0x558] sm:$0xff] }
 0x205   :  { %4014 = vmatpush1.bf16.msra.mxu1 %v4013_v44  ;;  %v2023_v44 = vld [vmem:[#allocation9 + $0x1c0] sm:$0xff]  ;;  %v4145_v55 = vpack.c.bf16 %v2138_v45, %v2135_v43  ;;  %v2125_v43 = vld [vmem:[#allocation9 + $0x4f0] sm:$0xff]  ;;  %v2128_v45 = vld [vmem:[#allocation9 + $0x508] sm:$0xff] }
 0x206   :  { %4016 = vmatprep.subr.bf16.mxu1 %v4015_v3  ;;  %4114 = vmatpush1.bf16.msra.mxu0 %v4113_v35  ;;  %v4289_v3 = vpack.c.bf16 %v1972_v59, %v1969_v52  ;;  %v4291_v6 = vpack.c.bf16 %v2026_v61, %v2023_v44  ;;  %v4131_v35 = vpack.c.bf16 %v2121_v1, %v2118_v63  ;;  %v1999_v52 = vld [vmem:[#allocation9 + $0x100] sm:$0xff]  ;;  %v2141_v44 = vld [vmem:[#allocation9 + $0x570] sm:$0xff]  ;;  %v2144_v61 = vld [vmem:[#allocation9 + $0x588] sm:$0xff] }
 0x207   :  { %4116 = vmatprep.subr.bf16.mxu0 %v4115_v16  ;;  %v2029_v16 = vld [vmem:[#allocation9 + $0x1f0] sm:$0xff]  ;;  %v2002_v1 = vld [vmem:[#allocation9 + $0x118] sm:$0xff]  ;;  %v4149_v5 = vpack.c.bf16 %v2144_v61, %v2141_v44  ;;  %v2140_v61 = vld [vmem:[#allocation9 + $0x568] sm:$0xff] }
 0x208   :  { %v4295_v21 = vpack.c.bf16 %v2032_v10, %v2029_v16  ;;  %v2008_v10 = vld [vmem:[#allocation9 + $0x148] sm:$0xff]  ;;  %v2137_v44 = vld [vmem:[#allocation9 + $0x550] sm:$0xff] }
 0x209   :  { %4018 = vmatpush1.bf16.msra.mxu1 %v4017_v8  ;;  %v2124_v8 = vld [vmem:[#allocation9 + $0x4e8] sm:$0xff] }
 0x20a   :  { %4020 = vmatprep.subr.bf16.mxu1 %v4019_v12  ;;  %4118 = vmatpush1.bf16.msra.mxu0 %v4117_v22  ;;  %v4293_v12 = vpack.c.bf16 %v1978_v7, %v1975_v4  ;;  %v4135_v19 = vpack.c.bf16 %v2127_v9, %v2124_v8  ;;  %v1984_v22 = vld [vmem:[#allocation9 + $0x88] sm:$0xff]  ;;  %v2053_v4 = vld [vmem:[#allocation9 + $0x2b0] sm:$0xff]  ;;  %v2147_v8 = vld [vmem:[#allocation9 + $0x5a0] sm:$0xff] }
 0x20b   :  { %4120 = vmatprep.subr.bf16.mxu0 %v4119_v25  ;;  %v2035_v25 = vld [vmem:[#allocation9 + $0x220] sm:$0xff]  ;;  %v4297_v27 = vpack.c.bf16 %v1984_v22, %v1981_v15  ;;  %v2005_v7 = vld [vmem:[#allocation9 + $0x130] sm:$0xff]  ;;  %v2150_v9 = vld [vmem:[#allocation9 + $0x5b8] sm:$0xff]  ;;  %v4311_v16 = vpack.c.bf16 %v2056_v13, %v2053_v4 }
 0x20c   :  { %v4299_v32 = vpack.c.bf16 %v2038_v26, %v2035_v25  ;;  %v2059_v15 = vld [vmem:[#allocation9 + $0x2e0] sm:$0xff]  ;;  %v2014_v26 = vld [vmem:[#allocation9 + $0x178] sm:$0xff] }
 0x20d   :  { %4022 = vmatpush1.bf16.msra.mxu1 %v4021_v23  ;;  %v2130_v23 = vld [vmem:[#allocation9 + $0x518] sm:$0xff]  ;;  %v2143_v4 = vld [vmem:[#allocation9 + $0x580] sm:$0xff] }
 0x20e   :  { %4024 = vmatprep.subr.bf16.mxu1 %v4023_v28  ;;  %4122 = vmatpush1.bf16.msra.mxu0 %v4121_v34  ;;  %v1987_v28 = vld [vmem:[#allocation9 + $0xa0] sm:$0xff]  ;;  %v4139_v29 = vpack.c.bf16 %v2133_v24, %v2130_v23  ;;  %v2136_v34 = vld [vmem:[#allocation9 + $0x548] sm:$0xff]  ;;  %v2153_v23 = vld [vmem:[#allocation9 + $0x5d0] sm:$0xff] }
 0x20f   :  { %4124 = vmatprep.subr.bf16.mxu0 %v4123_v39  ;;  %v2044_v39 = vld [vmem:[#allocation9 + $0x268] sm:$0xff]  ;;  %v4301_v41 = vpack.c.bf16 %v1990_v33, %v1987_v28  ;;  %v2113_v28 = vld [vmem:[#allocation9 + $0x490] sm:$0xff]  ;;  %v2146_v13 = vld [vmem:[#allocation9 + $0x598] sm:$0xff] }
 0x210   :  { %v4303_v48 = vpack.c.bf16 %v2044_v39, %v2041_v38  ;;  %v2156_v24 = vld [vmem:[#allocation9 + $0x5e8] sm:$0xff]  ;;  %v2119_v38 = vld [vmem:[#allocation9 + $0x4c0] sm:$0xff]  ;;  %v2122_v39 = vld [vmem:[#allocation9 + $0x4d8] sm:$0xff] }
 0x211   :  { %4026 = vmatpush1.bf16.msra.mxu1 %v4025_v37  ;;  %v2139_v37 = vld [vmem:[#allocation9 + $0x560] sm:$0xff]  ;;  %v4157_v30 = vpack.c.bf16 %v2156_v24, %v2153_v23  ;;  %v2162_v23 = vld [vmem:[#allocation9 + $0x618] sm:$0xff] }
 0x212   :  { %4028 = vmatprep.subr.bf16.mxu1 %v4027_v42  ;;  %4126 = vmatpush1.bf16.msra.mxu0 %v4125_v50  ;;  %v1993_v42 = vld [vmem:[#allocation9 + $0xd0] sm:$0xff]  ;;  %v4143_v47 = vpack.c.bf16 %v2139_v37, %v2136_v34  ;;  %v2142_v50 = vld [vmem:[#allocation9 + $0x578] sm:$0xff]  ;;  %v2068_v37 = vld [vmem:[#allocation9 + $0x328] sm:$0xff] }
 0x213   :  { %4128 = vmatprep.subr.bf16.mxu0 %v4127_v46  ;;  %v2047_v46 = vld [vmem:[#allocation9 + $0x280] sm:$0xff]  ;;  %v2065_v34 = vld [vmem:[#allocation9 + $0x310] sm:$0xff] }
 0x214   :  { %v4307_v63 = vpack.c.bf16 %v2050_v54, %v2047_v46  ;;  %v2131_v46 = vld [vmem:[#allocation9 + $0x520] sm:$0xff]  ;;  %v2134_v54 = vld [vmem:[#allocation9 + $0x538] sm:$0xff] }
 0x215   :  { %4030 = vmatpush1.bf16.msra.mxu1 %v4029_v51  ;;  %v2145_v51 = vld [vmem:[#allocation9 + $0x590] sm:$0xff] }
 0x216   :  { %4288 = vmatprep.subr.bf16.mxu1 %v4287_v58  ;;  %4130 = vmatpush1.bf16.msra.mxu0 %v4129_v2  ;;  %v4305_v58 = vpack.c.bf16 %v1996_v49, %v1993_v42  ;;  %v4147_v59 = vpack.c.bf16 %v2145_v51, %v2142_v50  ;;  %v2148_v2 = vld [vmem:[#allocation9 + $0x5a8] sm:$0xff]  ;;  %v2071_v42 = vld [vmem:[#allocation9 + $0x340] sm:$0xff]  ;;  %v4327_v49 = vpack.c.bf16 %v2128_v45, %v2125_v43  ;;  %v2077_v50 = vld [vmem:[#allocation9 + $0x370] sm:$0xff] }
 0x217   :  { %4132 = vmatprep.subr.bf16.mxu0 %v4131_v35  ;;  %v2080_v51 = vld [vmem:[#allocation9 + $0x388] sm:$0xff]  ;;  %v2171_v45 = vld [vmem:[#allocation9 + $0x660] sm:$0xff] }
 0x218   :  { %1879 = vmatmul.mubr.f32.vlgmr.msra.gmra.mrb[4].mxu1 %v4951_v53  ;;  %v4137_v53 = vpack.c.bf16 %v2126_v60, %v2123_v20  ;;  %v4153_v20 = vpack.c.bf16 %v2150_v9, %v2147_v8  ;;  %v4313_v60 = vpack.c.bf16 %v2008_v10, %v2005_v7  ;;  %v972_v7 = vsub.s32 2, %v4921_v56  ;;  %v2095_v8 = vld [vmem:[#allocation9 + $0x400] sm:$0xff]  ;;  %v2098_v9 = vld [vmem:[#allocation9 + $0x418] sm:$0xff]  ;;  %v2152_v10 = vld [vmem:[#allocation9 + $0x5c8] sm:$0xff] }
 0x219   :  { %4290 = vmatpush3.bf16.msra.mxu1 %v4289_v3  ;;  %2716 = vmatprep.mubr.f32.mxu1 %v4995_v62  ;;  %v2151_v3 = vld [vmem:[#allocation9 + $0x5c0] sm:$0xff] }
 0x21a   :  { %4292 = vmatprep.subr.bf16.mxu1 %v4291_v6  ;;  %4134 = vmatpush1.bf16.msra.mxu0 %v4133_v11  ;;  %v4309_v6 = vpack.c.bf16 %v2002_v1, %v1999_v52  ;;  %v4151_v35 = vpack.c.bf16 %v2151_v3, %v2148_v2  ;;  %v2154_v11 = vld [vmem:[#allocation9 + $0x5d8] sm:$0xff]  ;;  %v2083_v52 = vld [vmem:[#allocation9 + $0x3a0] sm:$0xff]  ;;  %v4335_v1 = vpack.c.bf16 %v2140_v61, %v2137_v44  ;;  %v2089_v2 = vld [vmem:[#allocation9 + $0x3d0] sm:$0xff] }
 0x21b   :  { %4136 = vmatprep.subr.bf16.mxu0 %v4135_v19  ;;  %v2062_v19 = vld [vmem:[#allocation9 + $0x2f8] sm:$0xff]  ;;  %v2092_v3 = vld [vmem:[#allocation9 + $0x3e8] sm:$0xff]  ;;  %v2177_v44 = vld [vmem:[#allocation9 + $0x690] sm:$0xff] }
 0x21c   :  { %v4315_v25 = vpack.c.bf16 %v2062_v19, %v2059_v15  ;;  %v2101_v15 = vld [vmem:[#allocation9 + $0x430] sm:$0xff]  ;;  %v2104_v19 = vld [vmem:[#allocation9 + $0x448] sm:$0xff] }
 0x21d   :  { %4294 = vmatpush3.bf16.msra.mxu1 %v4293_v12  ;;  %v2157_v12 = vld [vmem:[#allocation9 + $0x5f0] sm:$0xff]  ;;  %v2180_v61 = vld [vmem:[#allocation9 + $0x6a8] sm:$0xff] }
 0x21e   :  { %4296 = vmatprep.subr.bf16.mxu1 %v4295_v21  ;;  %4138 = vmatpush1.bf16.msra.mxu0 %v4137_v53  ;;  %v2011_v21 = vld [vmem:[#allocation9 + $0x160] sm:$0xff]  ;;  %v4155_v22 = vpack.c.bf16 %v2157_v12, %v2154_v11  ;;  %v2160_v53 = vld [vmem:[#allocation9 + $0x608] sm:$0xff]  ;;  %v4341_v12 = vpack.c.bf16 %v2098_v9, %v2095_v8  ;;  %v4173_v8 = vpack.c.bf16 %v2180_v61, %v2177_v44  ;;  %v2194_v61 = vld [vmem:[#allocation9 + $0x718] sm:$0xff] }
 0x21f   :  { %4140 = vmatprep.subr.bf16.mxu0 %v4139_v29  ;;  %v2116_v29 = vld [vmem:[#allocation9 + $0x4a8] sm:$0xff]  ;;  %v4317_v31 = vpack.c.bf16 %v2014_v26, %v2011_v21  ;;  %v2155_v21 = vld [vmem:[#allocation9 + $0x5e0] sm:$0xff]  ;;  %v2166_v26 = vld [vmem:[#allocation9 + $0x638] sm:$0xff] }
 0x220   :  { %v4319_v33 = vpack.c.bf16 %v2116_v29, %v2113_v28  ;;  %v4345_v29 = vpack.c.bf16 %v2104_v19, %v2101_v15  ;;  %v2183_v9 = vld [vmem:[#allocation9 + $0x6c0] sm:$0xff]  ;;  %v2173_v19 = vld [vmem:[#allocation9 + $0x670] sm:$0xff] }
 0x221   :  { %4298 = vmatpush3.bf16.msra.mxu1 %v4297_v27  ;;  %v2163_v27 = vld [vmem:[#allocation9 + $0x620] sm:$0xff] }
 0x222   :  { %4300 = vmatprep.subr.bf16.mxu1 %v4299_v32  ;;  %4142 = vmatpush1.bf16.msra.mxu0 %v4141_v40  ;;  %v4159_v32 = vpack.c.bf16 %v2163_v27, %v2160_v53  ;;  %v4321_v40 = vpack.c.bf16 %v2068_v37, %v2065_v34  ;;  %v2169_v53 = vld [vmem:[#allocation9 + $0x650] sm:$0xff]  ;;  %v2191_v44 = vld [vmem:[#allocation9 + $0x700] sm:$0xff] }
 0x223   :  { %4144 = vmatprep.subr.bf16.mxu0 %v4143_v47  ;;  %v2074_v47 = vld [vmem:[#allocation9 + $0x358] sm:$0xff]  ;;  %v4163_v34 = vpack.c.bf16 %v2169_v53, %v2166_v26  ;;  %v2165_v37 = vld [vmem:[#allocation9 + $0x630] sm:$0xff] }
 0x225   :  { %4302 = vmatpush3.bf16.msra.mxu1 %v4301_v41  ;;  %v4323_v41 = vpack.c.bf16 %v2122_v39, %v2119_v38  ;;  %v2168_v38 = vld [vmem:[#allocation9 + $0x648] sm:$0xff] }
 0x226   :  { %4304 = vmatprep.subr.bf16.mxu1 %v4303_v48  ;;  %4146 = vmatpush1.bf16.msra.mxu0 %v4145_v55  ;;  %v4325_v48 = vpack.c.bf16 %v2074_v47, %v2071_v42  ;;  %v4329_v55 = vpack.c.bf16 %v2080_v51, %v2077_v50  ;;  %v2172_v39 = vld [vmem:[#allocation9 + $0x668] sm:$0xff]  ;;  %v4165_v43 = vpack.c.bf16 %v2168_v38, %v2165_v37  ;;  %v2178_v50 = vld [vmem:[#allocation9 + $0x698] sm:$0xff]  ;;  %v2195_v38 = vld [vmem:[#allocation9 + $0x720] sm:$0xff] }
 0x227   :  { %4148 = vmatprep.subr.bf16.mxu0 %v4147_v59  ;;  %v2086_v59 = vld [vmem:[#allocation9 + $0x3b8] sm:$0xff]  ;;  %v2212_v42 = vld [vmem:[#allocation9 + $0x7a8] sm:$0xff] }
 0x229   :  { %4306 = vmatpush3.bf16.msra.mxu1 %v4305_v58  ;;  %v4331_v58 = vpack.c.bf16 %v2134_v54, %v2131_v46  ;;  %v2161_v46 = vld [vmem:[#allocation9 + $0x610] sm:$0xff]  ;;  %v2164_v54 = vld [vmem:[#allocation9 + $0x628] sm:$0xff] }
 0x22a   :  { %4308 = vmatprep.subr.bf16.mxu1 %v4307_v63  ;;  %4150 = vmatpush1.bf16.msra.mxu0 %v4149_v5  ;;  %v4333_v63 = vpack.c.bf16 %v2086_v59, %v2083_v52  ;;  %v4337_v5 = vpack.c.bf16 %v2092_v3, %v2089_v2  ;;  %v2218_v52 = vld [vmem:[#allocation9 + $0x7d8] sm:$0xff]  ;;  %v2184_v2 = vld [vmem:[#allocation9 + $0x6c8] sm:$0xff] }
 0x22b   :  { %4152 = vmatprep.subr.bf16.mxu0 %v4151_v35  ;;  %v4339_v35 = vpack.c.bf16 %v2146_v13, %v2143_v4  ;;  %v2167_v4 = vld [vmem:[#allocation9 + $0x640] sm:$0xff]  ;;  %v2170_v13 = vld [vmem:[#allocation9 + $0x658] sm:$0xff] }
 0x22d   :  { %4310 = vmatpush3.bf16.msra.mxu1 %v4309_v6  ;;  %v976_v6 = vsub.s32 3, %v4921_v56 }
 0x22e   :  { %4312 = vmatprep.subr.bf16.mxu1 %v4311_v16  ;;  %4154 = vmatpush1.bf16.msra.mxu0 %v4153_v20  ;;  %v2149_v16 = vld [vmem:[#allocation9 + $0x5b0] sm:$0xff]  ;;  %v973_v20 = vrot.slane %v4982_v17, %v972_v7 }
 0x22f   :  { %4156 = vmatprep.subr.bf16.mxu0 %v4155_v22  ;;  %v977_v11 = vrot.slane %v4982_v17, %v976_v6  ;;  %v2159_v22 = vld [vmem:[#allocation9 + $0x600] sm:$0xff]  ;;  %v2221_v6 = vld [vmem:[#allocation9 + $0x7f0] sm:$0xff] }
 0x231   :  { %4314 = vmatpush3.bf16.msra.mxu1 %v4313_v60  ;;  %v4343_v60 = vpack.c.bf16 %v2152_v10, %v2149_v16  ;;  %v2186_v16 = vld [vmem:[#allocation9 + $0x6d8] sm:$0xff]  ;;  %v4357_v10 = vpack.c.bf16 %v2170_v13, %v2167_v4  ;;  %v2207_v4 = vld [vmem:[#allocation9 + $0x780] sm:$0xff] }
 0x232   :  { %4316 = vmatprep.subr.bf16.mxu1 %v4315_v25  ;;  %4158 = vmatpush1.bf16.msra.mxu0 %v4157_v30  ;;  %v2158_v25 = vld [vmem:[#allocation9 + $0x5f8] sm:$0xff]  ;;  %v2107_v30 = vld [vmem:[#allocation9 + $0x460] sm:$0xff] }
 0x233   :  { %4160 = vmatprep.subr.bf16.mxu0 %v4159_v32  ;;  %v4161_v32 = vpack.c.bf16 %v2162_v23, %v2159_v22  ;;  %v4347_v17 = vpack.c.bf16 %v2158_v25, %v2155_v21  ;;  %v2227_v21 = vld [vmem:[#allocation9 + $0x820] sm:$0xff]  ;;  %v2230_v22 = vld [vmem:[#allocation9 + $0x838] sm:$0xff]  ;;  %v4177_v23 = vpack.c.bf16 %v2186_v16, %v2183_v9  ;;  %v2192_v25 = vld [vmem:[#allocation9 + $0x708] sm:$0xff] }
 0x234   :  { %v2210_v13 = vld [vmem:[#allocation9 + $0x798] sm:$0xff]  ;;  %v2197_v9 = vld [vmem:[#allocation9 + $0x730] sm:$0xff]  ;;  %v2200_v16 = vld [vmem:[#allocation9 + $0x748] sm:$0xff] }
 0x235   :  { %4318 = vmatpush3.bf16.msra.mxu1 %v4317_v31  ;;  %v2110_v31 = vld [vmem:[#allocation9 + $0x478] sm:$0xff] }
 0x236   :  { %4320 = vmatprep.subr.bf16.mxu1 %v4319_v33  ;;  %v4349_v47 = vpack.c.bf16 %v2110_v31, %v2107_v30  ;;  %v2179_v30 = vld [vmem:[#allocation9 + $0x6a0] sm:$0xff]  ;;  %v2182_v31 = vld [vmem:[#allocation9 + $0x6b8] sm:$0xff] }
 0x238   :  { %2717 = vmatmul.mubr.f32.vlgmr.msra.gmra.mrb[6].mxu1 %v4992_v57 }
 0x239   :  { %4322 = vmatpush3.bf16.msra.mxu1 %v4321_v40  ;;  %v2175_v40 = vld [vmem:[#allocation9 + $0x680] sm:$0xff] }
 0x23a   :  { %4324 = vmatprep.subr.bf16.mxu1 %v4323_v41  ;;  %v2209_v41 = vld [vmem:[#allocation9 + $0x790] sm:$0xff] }
 0x23b   :  { %v4351_v51 = vpack.c.bf16 %v2212_v42, %v2209_v41  ;;  %v2202_v42 = vld [vmem:[#allocation9 + $0x758] sm:$0xff] }
 0x23d   :  { %4326 = vmatpush3.bf16.msra.mxu1 %v4325_v48  ;;  %v2174_v48 = vld [vmem:[#allocation9 + $0x678] sm:$0xff] }
 0x23e   :  { %4328 = vmatprep.subr.bf16.mxu1 %v4327_v49  ;;  %v4167_v49 = vpack.c.bf16 %v2175_v40, %v2172_v39  ;;  %v4169_v59 = vpack.c.bf16 %v2174_v48, %v2171_v45  ;;  %v2198_v39 = vld [vmem:[#allocation9 + $0x738] sm:$0xff]  ;;  %v4365_v40 = vpack.c.bf16 %v2182_v31, %v2179_v30  ;;  %v2188_v45 = vld [vmem:[#allocation9 + $0x6e8] sm:$0xff]  ;;  %v2205_v48 = vld [vmem:[#allocation9 + $0x770] sm:$0xff] }
 0x241   :  { %4330 = vmatpush3.bf16.msra.mxu1 %v4329_v55  ;;  %v2181_v55 = vld [vmem:[#allocation9 + $0x6b0] sm:$0xff] }
 0x242   :  { %4332 = vmatprep.subr.bf16.mxu1 %v4331_v58  ;;  %v2215_v58 = vld [vmem:[#allocation9 + $0x7c0] sm:$0xff] }
 0x243   :  { %v4355_v3 = vpack.c.bf16 %v2218_v52, %v2215_v58  ;;  %v4187_v58 = vpack.c.bf16 %v2205_v48, %v2202_v42  ;;  %v2208_v52 = vld [vmem:[#allocation9 + $0x788] sm:$0xff] }
 0x244   :  { %v2228_v42 = vld [vmem:[#allocation9 + $0x828] sm:$0xff] }
 0x245   :  { %4334 = vmatpush3.bf16.msra.mxu1 %v4333_v63  ;;  %v4353_v63 = vpack.c.bf16 %v2164_v54, %v2161_v46  ;;  %v2201_v46 = vld [vmem:[#allocation9 + $0x750] sm:$0xff]  ;;  %v2204_v54 = vld [vmem:[#allocation9 + $0x768] sm:$0xff] }
 0x246   :  { %4336 = vmatprep.subr.bf16.mxu1 %v4335_v1  ;;  %v4171_v1 = vpack.c.bf16 %v2181_v55, %v2178_v50  ;;  %v2242_v50 = vld [vmem:[#allocation9 + $0x898] sm:$0xff] }
 0x249   :  { %4338 = vmatpush3.bf16.msra.mxu1 %v4337_v5  ;;  %v2187_v5 = vld [vmem:[#allocation9 + $0x6e0] sm:$0xff] }
 0x24a   :  { %4340 = vmatprep.subr.bf16.mxu1 %v4339_v35  ;;  %v2224_v35 = vld [vmem:[#allocation9 + $0x808] sm:$0xff] }
 0x24b   :  { %v1454_v24 = vpop.f32.mrb[2].mxu1  ;;  %v4359_v15 = vpack.c.bf16 %v2224_v35, %v2221_v6  ;;  %v2214_v35 = vld [vmem:[#allocation9 + $0x7b8] sm:$0xff] }
 0x24c   :  { %v1456_v27 = vpop.f32.mrb[3].mxu1  ;;  %v5012_v33 = vadd.f32 %v1454_v24, %v973_v20  ;;  %v2176_v20 = vld [vmem:[#allocation9 + $0x688] sm:$0xff]  ;;  %v2189_v24 = vld [vmem:[#allocation9 + $0x6f0] sm:$0xff] }
 0x24d   :  { %v5010_v28 = vadd.f32 %v1456_v27, %v977_v11  ;;  %4342 = vmatpush3.bf16.msra.mxu1 %v4341_v12  ;;  %v4175_v11 = vpack.c.bf16 %v2187_v5, %v2184_v2  ;;  %v2190_v12 = vld [vmem:[#allocation9 + $0x6f8] sm:$0xff]  ;;  %v4361_v26 = vpack.c.bf16 %v2176_v20, %v2173_v19  ;;  %v2196_v27 = vld [vmem:[#allocation9 + $0x728] sm:$0xff]  ;;  %v4181_v37 = vpack.c.bf16 %v2192_v25, %v2189_v24  ;;  %v2213_v19 = vld [vmem:[#allocation9 + $0x7b0] sm:$0xff] }
 0x24e   :  { %4344 = vmatprep.subr.bf16.mxu1 %v4343_v60  ;;  %v2193_v60 = vld [vmem:[#allocation9 + $0x710] sm:$0xff]  ;;  %v2248_v2 = vld [vmem:[#allocation9 + $0x8c8] sm:$0xff]  ;;  %v4373_v5 = vpack.c.bf16 %v2194_v61, %v2191_v44  ;;  %v2203_v24 = vld [vmem:[#allocation9 + $0x760] sm:$0xff] }
 0x24f   :  { %2503 = vmatprep.mubr.f32.mxu0 %v5010_v28  ;;  %2786 = vmatprep.mubr.f32.mxu1 %v5010_v28  ;;  %v4179_v53 = vpack.c.bf16 %v2193_v60, %v2190_v12  ;;  %v2254_v12 = vld [vmem:[#allocation9 + $0x8f8] sm:$0xff]  ;;  %v2216_v20 = vld [vmem:[#allocation9 + $0x7c8] sm:$0xff]  ;;  %v4377_v60 = vpack.c.bf16 %v2200_v16, %v2197_v9  ;;  %v2247_v44 = vld [vmem:[#allocation9 + $0x8c0] sm:$0xff] }
 0x250   :  { %2504 = vmatmul.mubr.f32.vlgmr.msra.gmra.mrb[4].mxu0 %v5012_v33  ;;  %v2206_v25 = vld [vmem:[#allocation9 + $0x778] sm:$0xff]  ;;  %v2252_v9 = vld [vmem:[#allocation9 + $0x8e8] sm:$0xff] }
 0x251   :  { %4346 = vmatpush3.bf16.msra.mxu1 %v4345_v29  ;;  %4162 = vmatpush1.bf16.msra.mxu0 %v4161_v32  ;;  %v4363_v29 = vpack.c.bf16 %v2230_v22, %v2227_v21  ;;  %v2199_v32 = vld [vmem:[#allocation9 + $0x740] sm:$0xff]  ;;  %v2220_v22 = vld [vmem:[#allocation9 + $0x7e8] sm:$0xff]  ;;  %v4381_v30 = vpack.c.bf16 %v2206_v25, %v2203_v24  ;;  %v5020_v16 = vld [vmem:[#allocation8] sm:$0xff] }
 0x252   :  { %4348 = vmatprep.subr.bf16.mxu1 %v4347_v17  ;;  %4164 = vmatprep.subr.bf16.mxu0 %v4163_v34  ;;  %v2233_v17 = vld [vmem:[#allocation9 + $0x850] sm:$0xff]  ;;  %v2236_v34 = vld [vmem:[#allocation9 + $0x868] sm:$0xff]  ;;  %v4183_v41 = vpack.c.bf16 %v2199_v32, %v2196_v27  ;;  %v2219_v32 = vld [vmem:[#allocation9 + $0x7e0] sm:$0xff] }
 0x253   :  { %v2308_v27 = vld [vmem:[#allocation9 + $0xaa8] sm:$0xff]  ;;  %v2311_v24 = vld [vmem:[#allocation9 + $0xac0] sm:$0xff]  ;;  %v2314_v25 = vld [vmem:[#allocation9 + $0xad8] sm:$0xff] }
 0x255   :  { %4350 = vmatpush3.bf16.msra.mxu1 %v4349_v47  ;;  %4166 = vmatpush1.bf16.msra.mxu0 %v4165_v43  ;;  %v4367_v47 = vpack.c.bf16 %v2236_v34, %v2233_v17  ;;  %v2185_v43 = vld [vmem:[#allocation9 + $0x6d0] sm:$0xff]  ;;  %v2222_v17 = vld [vmem:[#allocation9 + $0x7f8] sm:$0xff] }
 0x256   :  { %4168 = vmatprep.subr.bf16.mxu0 %v4167_v49  ;;  %4352 = vmatprep.subr.bf16.mxu1 %v4351_v51  ;;  %v2239_v49 = vld [vmem:[#allocation9 + $0x880] sm:$0xff]  ;;  %v4185_v51 = vpack.c.bf16 %v2198_v39, %v2195_v38  ;;  %v4369_v55 = vpack.c.bf16 %v2188_v45, %v2185_v43  ;;  %v2229_v38 = vld [vmem:[#allocation9 + $0x830] sm:$0xff]  ;;  %v4201_v39 = vpack.c.bf16 %v2222_v17, %v2219_v32 }
 0x257   :  { %v2235_v43 = vld [vmem:[#allocation9 + $0x860] sm:$0xff] }
 0x258   :  { %2787 = vmatmul.mubr.f32.vlgmr.msra.gmra.mrb[8].mxu1 %v5012_v33 }
 0x259   :  { %4170 = vmatpush1.bf16.msra.mxu0 %v4169_v59  ;;  %4354 = vmatpush3.bf16.msra.mxu1 %v4353_v63  ;;  %v4371_v59 = vpack.c.bf16 %v2242_v50, %v2239_v49  ;;  %v2211_v63 = vld [vmem:[#allocation9 + $0x7a0] sm:$0xff]  ;;  %v2234_v50 = vld [vmem:[#allocation9 + $0x858] sm:$0xff] }
 0x25a   :  { %4172 = vmatprep.subr.bf16.mxu0 %v4171_v1  ;;  %4356 = vmatprep.subr.bf16.mxu1 %v4355_v3  ;;  %v2245_v1 = vld [vmem:[#allocation9 + $0x8b0] sm:$0xff]  ;;  %v4189_v3 = vpack.c.bf16 %v2204_v54, %v2201_v46  ;;  %v4191_v6 = vpack.c.bf16 %v2211_v63, %v2208_v52  ;;  %v2231_v49 = vld [vmem:[#allocation9 + $0x840] sm:$0xff]  ;;  %v2240_v52 = vld [vmem:[#allocation9 + $0x888] sm:$0xff] }
 0x25b   :  { %v2241_v46 = vld [vmem:[#allocation9 + $0x890] sm:$0xff]  ;;  %v4209_v54 = vpack.c.bf16 %v2234_v50, %v2231_v49  ;;  %v2267_v50 = vld [vmem:[#allocation9 + $0x960] sm:$0xff] }
 0x25d   :  { %4174 = vmatpush1.bf16.msra.mxu0 %v4173_v8  ;;  %4358 = vmatpush3.bf16.msra.mxu1 %v4357_v10  ;;  %v4375_v8 = vpack.c.bf16 %v2248_v2, %v2245_v1  ;;  %v2217_v10 = vld [vmem:[#allocation9 + $0x7d0] sm:$0xff]  ;;  %v2243_v1 = vld [vmem:[#allocation9 + $0x8a0] sm:$0xff]  ;;  %v2246_v2 = vld [vmem:[#allocation9 + $0x8b8] sm:$0xff] }
 0x25e   :  { %4176 = vmatprep.subr.bf16.mxu0 %v4175_v11  ;;  %4360 = vmatprep.subr.bf16.mxu1 %v4359_v15  ;;  %v2251_v11 = vld [vmem:[#allocation9 + $0x8e0] sm:$0xff]  ;;  %v4193_v15 = vpack.c.bf16 %v2210_v13, %v2207_v4  ;;  %v4195_v21 = vpack.c.bf16 %v2217_v10, %v2214_v35  ;;  %v2253_v4 = vld [vmem:[#allocation9 + $0x8f0] sm:$0xff]  ;;  %v984_v13 = vsub.s32 5, %v4921_v56 }
 0x260   :  { %v985_v10 = vrot.slane %v5020_v16, %v984_v13  ;;  %v2278_v13 = vld [vmem:[#allocation9 + $0x9b8] sm:$0xff] }
 0x261   :  { %4178 = vmatpush1.bf16.msra.mxu0 %v4177_v23  ;;  %4362 = vmatpush3.bf16.msra.mxu1 %v4361_v26  ;;  %v4379_v23 = vpack.c.bf16 %v2254_v12, %v2251_v11  ;;  %v2223_v26 = vld [vmem:[#allocation9 + $0x800] sm:$0xff]  ;;  %v2256_v11 = vld [vmem:[#allocation9 + $0x908] sm:$0xff] }
 0x262   :  { %4180 = vmatprep.subr.bf16.mxu0 %v4179_v53  ;;  %4364 = vmatprep.subr.bf16.mxu1 %v4363_v29  ;;  %v2305_v53 = vld [vmem:[#allocation9 + $0xa90] sm:$0xff]  ;;  %v4197_v29 = vpack.c.bf16 %v2216_v20, %v2213_v19  ;;  %v4199_v31 = vpack.c.bf16 %v2223_v26, %v2220_v22  ;;  %v2259_v12 = vld [vmem:[#allocation9 + $0x920] sm:$0xff] }
 0x263   :  { %v4383_v34 = vpack.c.bf16 %v2308_v27, %v2305_v53  ;;  %v2255_v20 = vld [vmem:[#allocation9 + $0x900] sm:$0xff]  ;;  %v4223_v53 = vpack.c.bf16 %v2259_v12, %v2256_v11  ;;  %v2262_v27 = vld [vmem:[#allocation9 + $0x938] sm:$0xff] }
 0x265   :  { %4182 = vmatpush1.bf16.msra.mxu0 %v4181_v37  ;;  %4366 = vmatpush3.bf16.msra.mxu1 %v4365_v40  ;;  %v2226_v37 = vld [vmem:[#allocation9 + $0x818] sm:$0xff] }
 0x266   :  { %4184 = vmatprep.subr.bf16.mxu0 %v4183_v41  ;;  %4368 = vmatprep.subr.bf16.mxu1 %v4367_v47  ;;  %v4203_v40 = vpack.c.bf16 %v2229_v38, %v2226_v37  ;;  %v2225_v41 = vld [vmem:[#allocation9 + $0x810] sm:$0xff]  ;;  %v2232_v47 = vld [vmem:[#allocation9 + $0x848] sm:$0xff]  ;;  %v4387_v37 = vpack.c.bf16 %v2314_v25, %v2311_v24  ;;  %v2263_v38 = vld [vmem:[#allocation9 + $0x940] sm:$0xff] }
 0x267   :  { %v4205_v45 = vpack.c.bf16 %v2228_v42, %v2225_v41  ;;  %v4207_v48 = vpack.c.bf16 %v2235_v43, %v2232_v47  ;;  %v2264_v41 = vld [vmem:[#allocation9 + $0x948] sm:$0xff]  ;;  %v2317_v42 = vld [vmem:[#allocation9 + $0xaf0] sm:$0xff]  ;;  %v2338_v24 = vld [vmem:[#allocation9 + $0xb98] sm:$0xff] }
 0x268   :  { %v2320_v47 = vld [vmem:[#allocation9 + $0xb08] sm:$0xff]  ;;  %v2286_v25 = vld [vmem:[#allocation9 + $0x9f8] sm:$0xff] }
 0x269   :  { %4186 = vmatpush1.bf16.msra.mxu0 %v4185_v51  ;;  %4370 = vmatpush3.bf16.msra.mxu1 %v4369_v55  ;;  %v2238_v51 = vld [vmem:[#allocation9 + $0x878] sm:$0xff]  ;;  %v2268_v43 = vld [vmem:[#allocation9 + $0x968] sm:$0xff] }
 0x26a   :  { %4188 = vmatprep.subr.bf16.mxu0 %v4187_v58  ;;  %4372 = vmatprep.subr.bf16.mxu1 %v4371_v59  ;;  %v4211_v55 = vpack.c.bf16 %v2241_v46, %v2238_v51  ;;  %v2237_v58 = vld [vmem:[#allocation9 + $0x870] sm:$0xff]  ;;  %v2244_v59 = vld [vmem:[#allocation9 + $0x8a8] sm:$0xff]  ;;  %v4391_v51 = vpack.c.bf16 %v2320_v47, %v2317_v42  ;;  %v2295_v42 = vld [vmem:[#allocation9 + $0xa40] sm:$0xff] }
 0x26b   :  { %v4213_v61 = vpack.c.bf16 %v2240_v52, %v2237_v58  ;;  %v4215_v63 = vpack.c.bf16 %v2247_v44, %v2244_v59  ;;  %v2269_v46 = vld [vmem:[#allocation9 + $0x970] sm:$0xff]  ;;  %v2270_v58 = vld [vmem:[#allocation9 + $0x978] sm:$0xff]  ;;  %v2323_v52 = vld [vmem:[#allocation9 + $0xb20] sm:$0xff] }
 0x26c   :  { %v2326_v59 = vld [vmem:[#allocation9 + $0xb38] sm:$0xff] }
 0x26d   :  { %4190 = vmatpush1.bf16.msra.mxu0 %v4189_v3  ;;  %4374 = vmatpush3.bf16.msra.mxu1 %v4373_v5  ;;  %v2250_v3 = vld [vmem:[#allocation9 + $0x8d8] sm:$0xff]  ;;  %v4217_v5 = vpack.c.bf16 %v2246_v2, %v2243_v1  ;;  %v4233_v1 = vpack.c.bf16 %v2270_v58, %v2267_v50  ;;  %v2273_v2 = vld [vmem:[#allocation9 + $0x990] sm:$0xff]  ;;  %v2296_v50 = vld [vmem:[#allocation9 + $0xa48] sm:$0xff] }
 0x26e   :  { %4192 = vmatprep.subr.bf16.mxu0 %v4191_v6  ;;  %4376 = vmatprep.subr.bf16.mxu1 %v4375_v8  ;;  %v980_v6 = vsub.s32 4, %v4921_v56  ;;  %v4219_v35 = vpack.c.bf16 %v2253_v4, %v2250_v3  ;;  %v2249_v8 = vld [vmem:[#allocation9 + $0x8d0] sm:$0xff]  ;;  %v2274_v44 = vld [vmem:[#allocation9 + $0x998] sm:$0xff]  ;;  %v4395_v3 = vpack.c.bf16 %v2326_v59, %v2323_v52  ;;  %v2275_v4 = vld [vmem:[#allocation9 + $0x9a0] sm:$0xff] }
 0x26f   :  { %v4221_v19 = vpack.c.bf16 %v2252_v9, %v2249_v8  ;;  %v2332_v8 = vld [vmem:[#allocation9 + $0xb68] sm:$0xff]  ;;  %v4397_v11 = vpack.c.bf16 %v2278_v13, %v2275_v4  ;;  %v2298_v58 = vld [vmem:[#allocation9 + $0xa58] sm:$0xff]  ;;  %v2301_v52 = vld [vmem:[#allocation9 + $0xa70] sm:$0xff] }
 0x270   :  { %v2280_v9 = vld [vmem:[#allocation9 + $0x9c8] sm:$0xff] }
 0x271   :  { %4194 = vmatpush1.bf16.msra.mxu0 %v4193_v15  ;;  %4378 = vmatpush3.bf16.msra.mxu1 %v4377_v60  ;;  %v981_v15 = vrot.slane %v5020_v16, %v980_v6  ;;  %v2257_v60 = vld [vmem:[#allocation9 + $0x910] sm:$0xff]  ;;  %v2276_v6 = vld [vmem:[#allocation9 + $0x9a8] sm:$0xff] }
 0x272   :  { %4196 = vmatprep.subr.bf16.mxu0 %v4195_v21  ;;  %4380 = vmatprep.subr.bf16.mxu1 %v4379_v23  ;;  %v2260_v21 = vld [vmem:[#allocation9 + $0x928] sm:$0xff]  ;;  %v2258_v23 = vld [vmem:[#allocation9 + $0x918] sm:$0xff]  ;;  %v4237_v12 = vpack.c.bf16 %v2276_v6, %v2273_v2  ;;  %v4251_v2 = vpack.c.bf16 %v2301_v52, %v2298_v58  ;;  %v2339_v58 = vld [vmem:[#allocation9 + $0xba0] sm:$0xff] }
 0x273   :  { %v4225_v17 = vpack.c.bf16 %v2258_v23, %v2255_v20  ;;  %v2281_v20 = vld [vmem:[#allocation9 + $0x9d0] sm:$0xff]  ;;  %v2335_v23 = vld [vmem:[#allocation9 + $0xb80] sm:$0xff]  ;;  %v2300_v4 = vld [vmem:[#allocation9 + $0xa68] sm:$0xff] }
 0x274   :  { %v2304_v13 = vld [vmem:[#allocation9 + $0xa88] sm:$0xff]  ;;  %v2342_v52 = vld [vmem:[#allocation9 + $0xbb8] sm:$0xff] }
 0x275   :  { %4198 = vmatpush1.bf16.msra.mxu0 %v4197_v29  ;;  %4382 = vmatpush3.bf16.msra.mxu1 %v4381_v30  ;;  %v2265_v29 = vld [vmem:[#allocation9 + $0x950] sm:$0xff] }
 0x276   :  { %4200 = vmatprep.subr.bf16.mxu0 %v4199_v31  ;;  %4384 = vmatprep.subr.bf16.mxu1 %v4383_v34  ;;  %v4385_v31 = vpack.c.bf16 %v2260_v21, %v2257_v60  ;;  %v2261_v34 = vld [vmem:[#allocation9 + $0x930] sm:$0xff]  ;;  %v2284_v60 = vld [vmem:[#allocation9 + $0x9e8] sm:$0xff] }
 0x277   :  { %v4229_v49 = vpack.c.bf16 %v2264_v41, %v2261_v34  ;;  %v2290_v34 = vld [vmem:[#allocation9 + $0xa18] sm:$0xff]  ;;  %v2292_v41 = vld [vmem:[#allocation9 + $0xa28] sm:$0xff] }
 0x279   :  { %4202 = vmatpush1.bf16.msra.mxu0 %v4201_v39  ;;  %v2266_v39 = vld [vmem:[#allocation9 + $0x958] sm:$0xff] }
 0x27a   :  { %4204 = vmatprep.subr.bf16.mxu0 %v4203_v40  ;;  %v4227_v40 = vpack.c.bf16 %v2265_v29, %v2262_v27  ;;  %v2285_v29 = vld [vmem:[#allocation9 + $0x9f0] sm:$0xff] }
 0x27d   :  { %4206 = vmatpush1.bf16.msra.mxu0 %v4205_v45  ;;  %v2271_v45 = vld [vmem:[#allocation9 + $0x980] sm:$0xff] }
 0x27e   :  { %4208 = vmatprep.subr.bf16.mxu0 %v4207_v48  ;;  %v4389_v48 = vpack.c.bf16 %v2266_v39, %v2263_v38  ;;  %v2288_v38 = vld [vmem:[#allocation9 + $0xa08] sm:$0xff]  ;;  %v2341_v39 = vld [vmem:[#allocation9 + $0xbb0] sm:$0xff] }
 0x281   :  { %4210 = vmatpush1.bf16.msra.mxu0 %v4209_v54  ;;  %v2272_v54 = vld [vmem:[#allocation9 + $0x988] sm:$0xff] }
 0x282   :  { %4212 = vmatprep.subr.bf16.mxu0 %v4211_v55  ;;  %v4231_v55 = vpack.c.bf16 %v2271_v45, %v2268_v43  ;;  %v4245_v43 = vpack.c.bf16 %v2288_v38, %v2285_v29  ;;  %v2291_v45 = vld [vmem:[#allocation9 + $0xa20] sm:$0xff] }
 0x283   :  { %v2331_v38 = vld [vmem:[#allocation9 + $0xb60] sm:$0xff] }
 0x285   :  { %4214 = vmatpush1.bf16.msra.mxu0 %v4213_v61  ;;  %v2277_v61 = vld [vmem:[#allocation9 + $0x9b0] sm:$0xff] }
 0x286   :  { %4216 = vmatprep.subr.bf16.mxu0 %v4215_v63  ;;  %v4393_v63 = vpack.c.bf16 %v2272_v54, %v2269_v46  ;;  %v2294_v46 = vld [vmem:[#allocation9 + $0xa38] sm:$0xff]  ;;  %v2347_v54 = vld [vmem:[#allocation9 + $0xbe0] sm:$0xff] }
 0x288   :  { %v1667_v22 = vpop.f32.mrb[2].mxu0 }
 0x289   :  { %4218 = vmatpush1.bf16.msra.mxu0 %v4217_v5  ;;  %v1669_v26 = vpop.f32.mrb[3].mxu0  ;;  %v5026_v32 = vadd.f32 %v1667_v22, %v981_v15  ;;  %v4235_v5 = vpack.c.bf16 %v2277_v61, %v2274_v44  ;;  %v2279_v15 = vld [vmem:[#allocation9 + $0x9c0] sm:$0xff]  ;;  %v2282_v22 = vld [vmem:[#allocation9 + $0x9d8] sm:$0xff]  ;;  %v4249_v44 = vpack.c.bf16 %v2294_v46, %v2291_v45 }
 0x28a   :  { %4220 = vmatprep.subr.bf16.mxu0 %v4219_v35  ;;  %v5024_v30 = vadd.f32 %v1669_v26, %v985_v10  ;;  %v2329_v35 = vld [vmem:[#allocation9 + $0xb50] sm:$0xff]  ;;  %v2283_v10 = vld [vmem:[#allocation9 + $0x9e0] sm:$0xff]  ;;  %v4241_v27 = vpack.c.bf16 %v2282_v22, %v2279_v15 }
 0x28b   :  { %v4239_v21 = vpack.c.bf16 %v2283_v10, %v2280_v9  ;;  %v2289_v26 = vld [vmem:[#allocation9 + $0xa10] sm:$0xff]  ;;  %v2303_v9 = vld [vmem:[#allocation9 + $0xa80] sm:$0xff]  ;;  %v2306_v10 = vld [vmem:[#allocation9 + $0xa98] sm:$0xff] }
 0x28c   :  { %2574 = vmatprep.mubr.f32.mxu0 %v5024_v30  ;;  %2856 = vmatprep.mubr.f32.mxu1 %v5024_v30  ;;  %v4257_v15 = vpack.c.bf16 %v2306_v10, %v2303_v9  ;;  %v2319_v22 = vld [vmem:[#allocation9 + $0xb00] sm:$0xff]  ;;  %v1888_v9 = vmul.f32 %v5010_v28, %v5010_v28 }
 0x28d   :  { %4222 = vmatpush1.bf16.msra.mxu0 %v4221_v19  ;;  %2857 = vmatmul.mubr.f32.vlgmr.msra.gmra.mrb[10].mxu1 %v5026_v32  ;;  %v4399_v19 = vpack.c.bf16 %v2332_v8, %v2329_v35  ;;  %v2343_v46 = vld [vmem:[#allocation9 + $0xbc0] sm:$0xff] }
 0x28e   :  { %4224 = vmatprep.subr.bf16.mxu0 %v4223_v53  ;;  %4386 = vmatpush3.bf16.msra.mxu1 %v4385_v31  ;;  %v4401_v53 = vpack.c.bf16 %v2284_v60, %v2281_v20  ;;  %v4403_v31 = vpack.c.bf16 %v2338_v24, %v2335_v23  ;;  %v2309_v20 = vld [vmem:[#allocation9 + $0xab0] sm:$0xff]  ;;  %v2312_v60 = vld [vmem:[#allocation9 + $0xac8] sm:$0xff] }
 0x28f   :  { %4388 = vmatprep.subr.bf16.mxu1 %v4387_v37  ;;  %v4243_v37 = vpack.c.bf16 %v2289_v26, %v2286_v25  ;;  %v4261_v23 = vpack.c.bf16 %v2312_v60, %v2309_v20  ;;  %v2315_v25 = vld [vmem:[#allocation9 + $0xae0] sm:$0xff]  ;;  %v2318_v26 = vld [vmem:[#allocation9 + $0xaf8] sm:$0xff]  ;;  %v1899_v20 = vsel %vm1893_vm4, %v1888_v9, 0.0  ;;  %v2960_v9 = vld [vmem:[#allocation12 + $0xc8] sm:$0xff] }
 0x290   :  { %2575 = vmatmul.mubr.f32.vlgmr.msra.gmra.mrb[4].mxu0 %v5026_v32  ;;  %v4265_v29 = vpack.c.bf16 %v2318_v26, %v2315_v25 }
 0x291   :  { %4226 = vmatpush1.bf16.msra.mxu0 %v4225_v17  ;;  %v2287_v17 = vld [vmem:[#allocation9 + $0xa00] sm:$0xff] }
 0x292   :  { %4228 = vmatprep.subr.bf16.mxu0 %v4227_v40  ;;  %4390 = vmatpush3.bf16.msra.mxu1 %v4389_v48  ;;  %v2344_v40 = vld [vmem:[#allocation9 + $0xbc8] sm:$0xff]  ;;  %v4405_v47 = vpack.c.bf16 %v2290_v34, %v2287_v17  ;;  %v2321_v17 = vld [vmem:[#allocation9 + $0xb10] sm:$0xff] }
 0x293   :  { %4392 = vmatprep.subr.bf16.mxu1 %v4391_v51  ;;  %v4407_v48 = vpack.c.bf16 %v2344_v40, %v2341_v39  ;;  %v4247_v51 = vpack.c.bf16 %v2295_v42, %v2292_v41  ;;  %v2324_v34 = vld [vmem:[#allocation9 + $0xb28] sm:$0xff]  ;;  %v2327_v41 = vld [vmem:[#allocation9 + $0xb40] sm:$0xff]  ;;  %v2330_v42 = vld [vmem:[#allocation9 + $0xb58] sm:$0xff] }
 0x294   :  { %v4269_v39 = vpack.c.bf16 %v2324_v34, %v2321_v17  ;;  %v4273_v45 = vpack.c.bf16 %v2330_v42, %v2327_v41 }
 0x295   :  { %4230 = vmatpush1.bf16.msra.mxu0 %v4229_v49  ;;  %v2293_v49 = vld [vmem:[#allocation9 + $0xa30] sm:$0xff] }
 0x296   :  { %4232 = vmatprep.subr.bf16.mxu0 %v4231_v55  ;;  %4394 = vmatpush3.bf16.msra.mxu1 %v4393_v63  ;;  %v2350_v55 = vld [vmem:[#allocation9 + $0xbf8] sm:$0xff]  ;;  %v4409_v59 = vpack.c.bf16 %v2296_v50, %v2293_v49  ;;  %v2299_v63 = vld [vmem:[#allocation9 + $0xa60] sm:$0xff]  ;;  %v2333_v49 = vld [vmem:[#allocation9 + $0xb70] sm:$0xff] }
 0x297   :  { %4396 = vmatprep.subr.bf16.mxu1 %v4395_v3  ;;  %v4411_v61 = vpack.c.bf16 %v2350_v55, %v2347_v54  ;;  %v2297_v3 = vld [vmem:[#allocation9 + $0xa50] sm:$0xff]  ;;  %v2336_v50 = vld [vmem:[#allocation9 + $0xb88] sm:$0xff] }
 0x298   :  { %v4253_v35 = vpack.c.bf16 %v2300_v4, %v2297_v3  ;;  %v4277_v54 = vpack.c.bf16 %v2336_v50, %v2333_v49  ;;  %v1885_v4 = vmul.f32 %v4992_v57, %v4992_v57  ;;  %v2936_v50 = vld [vmem:[#allocation12 + $0x8] sm:$0xff] }
 0x299   :  { %4234 = vmatpush1.bf16.msra.mxu0 %v4233_v1  ;;  %v2302_v1 = vld [vmem:[#allocation9 + $0xa78] sm:$0xff] }
 0x29a   :  { %4236 = vmatprep.subr.bf16.mxu0 %v4235_v5  ;;  %4398 = vmatpush3.bf16.msra.mxu1 %v4397_v11  ;;  %v2307_v5 = vld [vmem:[#allocation9 + $0xaa0] sm:$0xff]  ;;  %v4413_v6 = vpack.c.bf16 %v2302_v1, %v2299_v63  ;;  %v2310_v11 = vld [vmem:[#allocation9 + $0xab8] sm:$0xff]  ;;  %v2345_v1 = vld [vmem:[#allocation9 + $0xbd0] sm:$0xff] }
 0x29b   :  { %4400 = vmatprep.subr.bf16.mxu1 %v4399_v19  ;;  %v4255_v8 = vpack.c.bf16 %v2307_v5, %v2304_v13  ;;  %v1886_v13 = vmul.f32 %v4995_v62, %v4995_v62  ;;  %v1887_v5 = vmul.f32 %v5012_v33, %v5012_v33 }
 0x29d   :  { %4238 = vmatpush1.bf16.msra.mxu0 %v4237_v12  ;;  %v2313_v12 = vld [vmem:[#allocation9 + $0xad0] sm:$0xff] }
 0x29e   :  { %4240 = vmatprep.subr.bf16.mxu0 %v4239_v21  ;;  %4402 = vmatpush3.bf16.msra.mxu1 %v4401_v53  ;;  %v4259_v19 = vpack.c.bf16 %v2313_v12, %v2310_v11  ;;  %v2316_v21 = vld [vmem:[#allocation9 + $0xae8] sm:$0xff]  ;;  %v2322_v53 = vld [vmem:[#allocation9 + $0xb18] sm:$0xff]  ;;  %v1889_v11 = vmul.f32 %v5026_v32, %v5026_v32  ;;  %v988_v12 = vsub.s32 6, %v4921_v56 }
 0x29f   :  { %4404 = vmatprep.subr.bf16.mxu1 %v4403_v31  ;;  %v4263_v24 = vpack.c.bf16 %v2319_v22, %v2316_v21  ;;  %v1890_v21 = vmul.f32 %v5024_v30, %v5024_v30 }
 0x2a0   :  { %v989_v60 = vrot.slane %v5020_v16, %v988_v12  ;;  %v1901_v22 = vsel %vm1893_vm4, %v1889_v11, 0.0  ;;  %v2943_v12 = vld [vmem:[#allocation12 + $0x40] sm:$0xff] }
 0x2a1   :  { %4242 = vmatpush1.bf16.msra.mxu0 %v4241_v27  ;;  %v2325_v27 = vld [vmem:[#allocation9 + $0xb30] sm:$0xff] }
 0x2a2   :  { %4244 = vmatprep.subr.bf16.mxu0 %v4243_v37  ;;  %4406 = vmatpush3.bf16.msra.mxu1 %v4405_v47  ;;  %v4267_v31 = vpack.c.bf16 %v2325_v27, %v2322_v53  ;;  %v2328_v37 = vld [vmem:[#allocation9 + $0xb48] sm:$0xff]  ;;  %v2334_v47 = vld [vmem:[#allocation9 + $0xb78] sm:$0xff] }
 0x2a3   :  { %4408 = vmatprep.subr.bf16.mxu1 %v4407_v48  ;;  %v4271_v40 = vpack.c.bf16 %v2331_v38, %v2328_v37 }
 0x2a5   :  { %4246 = vmatpush1.bf16.msra.mxu0 %v4245_v43  ;;  %v2337_v43 = vld [vmem:[#allocation9 + $0xb90] sm:$0xff] }
 0x2a6   :  { %4248 = vmatprep.subr.bf16.mxu0 %v4247_v51  ;;  %4410 = vmatpush3.bf16.msra.mxu1 %v4409_v59  ;;  %v4275_v48 = vpack.c.bf16 %v2337_v43, %v2334_v47  ;;  %v2340_v51 = vld [vmem:[#allocation9 + $0xba8] sm:$0xff]  ;;  %v2346_v59 = vld [vmem:[#allocation9 + $0xbd8] sm:$0xff] }
 0x2a7   :  { %4412 = vmatprep.subr.bf16.mxu1 %v4411_v61  ;;  %v4279_v55 = vpack.c.bf16 %v2343_v46, %v2340_v51  ;;  %v4281_v61 = vpack.c.bf16 %v2342_v52, %v2339_v58  ;;  %v2951_v43 = vld [vmem:[#allocation12 + $0x80] sm:$0xff]  ;;  %v2953_v51 = vld [vmem:[#allocation12 + $0x90] sm:$0xff]  ;;  %v2954_v46 = vld [vmem:[#allocation12 + $0x98] sm:$0xff] }
 0x2a8   :  { %v2937_v58 = vld [vmem:[#allocation12 + $0x10] sm:$0xff]  ;;  %v2938_v52 = vld [vmem:[#allocation12 + $0x18] sm:$0xff] }
 0x2a9   :  { %4250 = vmatpush1.bf16.msra.mxu0 %v4249_v44  ;;  %v2349_v44 = vld [vmem:[#allocation9 + $0xbf0] sm:$0xff] }
 0x2aa   :  { %4252 = vmatprep.subr.bf16.mxu0 %v4251_v2  ;;  %4414 = vmatpush3.bf16.msra.mxu1 %v4413_v6  ;;  %v4283_v63 = vpack.c.bf16 %v2349_v44, %v2346_v59  ;;  %v2348_v2 = vld [vmem:[#allocation9 + $0xbe8] sm:$0xff]  ;;  %v1894_v6 = vsel %vm1893_vm4, %v1885_v4, 0.0  ;;  %v2958_v4 = vld [vmem:[#allocation12 + $0xb8] sm:$0xff] }
 0x2ab   :  { %v4285_v3 = vpack.c.bf16 %v2348_v2, %v2345_v1  ;;  %v2955_v59 = vld [vmem:[#allocation12 + $0xa0] sm:$0xff]  ;;  %v2956_v44 = vld [vmem:[#allocation12 + $0xa8] sm:$0xff] }
 0x2ac   :  { %v2939_v1 = vld [vmem:[#allocation12 + $0x20] sm:$0xff]  ;;  %v2940_v2 = vld [vmem:[#allocation12 + $0x28] sm:$0xff] }
 0x2ad   :  { %4254 = vmatpush1.bf16.msra.mxu0 %v4253_v35  ;;  %v1895_v35 = vsel %vm1893_vm4, %v1886_v13, 0.0  ;;  %v4425_v13 = vpack.c.bf16 %v2940_v2, %v2939_v1 }
 0x2ae   :  { %4256 = vmatprep.subr.bf16.mxu0 %v4255_v8  ;;  %v1897_v8 = vsel %vm1893_vm4, %v1887_v5, 0.0  ;;  %v1896_v10 = vadd.f32 %v1895_v35, %v1894_v6  ;;  %v2941_v6 = vld [vmem:[#allocation12 + $0x30] sm:$0xff]  ;;  %v2942_v35 = vld [vmem:[#allocation12 + $0x38] sm:$0xff] }
 0x2b1   :  { %4258 = vmatpush1.bf16.msra.mxu0 %v4257_v15  ;;  %v992_v15 = vsub.s32 7, %v4921_v56 }
 0x2b2   :  { %4260 = vmatprep.subr.bf16.mxu0 %v4259_v19  ;;  %v1898_v19 = vadd.f32 %v1897_v8, %v1896_v10  ;;  %v2959_v8 = vld [vmem:[#allocation12 + $0xc0] sm:$0xff]  ;;  %v4429_v10 = vpack.c.bf16 %v2942_v35, %v2941_v6 }
 0x2b3   :  { %v4431_v11 = vpack.c.bf16 %v2960_v9, %v2959_v8 }
 0x2b5   :  { %4262 = vmatpush1.bf16.msra.mxu0 %v4261_v23  ;;  %v993_v23 = vrot.slane %v5020_v16, %v992_v15  ;;  %v2944_v15 = vld [vmem:[#allocation12 + $0x48] sm:$0xff] }
 0x2b6   :  { %4264 = vmatprep.subr.bf16.mxu0 %v4263_v24  ;;  %v1900_v24 = vadd.f32 %v1899_v20, %v1898_v19  ;;  %v2961_v19 = vld [vmem:[#allocation12 + $0xd0] sm:$0xff]  ;;  %v2962_v20 = vld [vmem:[#allocation12 + $0xd8] sm:$0xff] }
 0x2b8   :  { %v1902_v26 = vadd.f32 %v1901_v22, %v1900_v24  ;;  %v2945_v22 = vld [vmem:[#allocation12 + $0x50] sm:$0xff]  ;;  %v2963_v24 = vld [vmem:[#allocation12 + $0xe0] sm:$0xff] }
 0x2b9   :  { %4266 = vmatpush1.bf16.msra.mxu0 %v4265_v29  ;;  %v1903_v29 = vsel %vm1893_vm4, %v1890_v21, 0.0  ;;  %v4435_v21 = vpack.c.bf16 %v2962_v20, %v2961_v19  ;;  %v2967_v19 = vld [vmem:[#allocation12 + $0x100] sm:$0xff]  ;;  %v2968_v20 = vld [vmem:[#allocation12 + $0x108] sm:$0xff] }
 0x2ba   :  { %4268 = vmatprep.subr.bf16.mxu0 %v4267_v31  ;;  %v1904_v34 = vadd.f32 %v1903_v29, %v1902_v26  ;;  %v2947_v29 = vld [vmem:[#allocation12 + $0x60] sm:$0xff] }
 0x2bd   :  { %4270 = vmatpush1.bf16.msra.mxu0 %v4269_v39 }
 0x2be   :  { %4272 = vmatprep.subr.bf16.mxu0 %v4271_v40 }
 0x2c1   :  { %4274 = vmatpush1.bf16.msra.mxu0 %v4273_v45  ;;  %v2952_v45 = vld [vmem:[#allocation12 + $0x88] sm:$0xff] }
 0x2c2   :  { %4276 = vmatprep.subr.bf16.mxu0 %v4275_v48  ;;  %v2935_v48 = vld [vmem:[#allocation12] sm:$0xff]  ;;  %v4415_v49 = vpack.c.bf16 %v2952_v45, %v2951_v43  ;;  %v2965_v43 = vld [vmem:[#allocation12 + $0xf0] sm:$0xff]  ;;  %v2966_v45 = vld [vmem:[#allocation12 + $0xf8] sm:$0xff] }
 0x2c4   :  { %4416 = vmatprep.subr.bf16.mxu1 %v4415_v49  ;;  %v2949_v49 = vld [vmem:[#allocation12 + $0x70] sm:$0xff] }
 0x2c5   :  { %4278 = vmatpush1.bf16.msra.mxu0 %v4277_v54  ;;  %v4417_v54 = vpack.c.bf16 %v2936_v50, %v2935_v48  ;;  %v4443_v48 = vpack.c.bf16 %v2966_v45, %v2965_v43  ;;  %v2950_v50 = vld [vmem:[#allocation12 + $0x78] sm:$0xff]  ;;  %v2981_v45 = vld [vmem:[#allocation12 + $0x170] sm:$0xff] }
 0x2c6   :  { %4280 = vmatprep.subr.bf16.mxu0 %v4279_v55  ;;  %v4419_v55 = vpack.c.bf16 %v2954_v46, %v2953_v51  ;;  %v4445_v51 = vpack.c.bf16 %v2950_v50, %v2949_v49  ;;  %v4754_v46 = vmov 0.0|0.0  }
 0x2c9   :  { %4282 = vmatpush1.bf16.msra.mxu0 %v4281_v61  ;;  %v4421_v61 = vpack.c.bf16 %v2938_v52, %v2937_v58 }
 0x2ca   :  { %4284 = vmatprep.subr.bf16.mxu0 %v4283_v63  ;;  %v4423_v63 = vpack.c.bf16 %v2956_v44, %v2955_v59 }
 0x2cd   :  { %4286 = vmatpush1.bf16.msra.mxu0 %v4285_v3  ;;  %v2957_v3 = vld [vmem:[#allocation12 + $0xb0] sm:$0xff] }
 0x2ce   :  { %v4427_v5 = vpack.c.bf16 %v2958_v4, %v2957_v3 }
 0x2eb   :  { %v1880_v25 = vpop.f32.mrb[4].mxu1 }
 0x2ec   :  { %v5053_v53 = vadd.f32 %v1880_v25, %v989_v60  ;;  %v1882_v27 = vpop.f32.mrb[5].mxu1  ;;  %v4433_v60 = vpack.c.bf16 %v2944_v15, %v2943_v12  ;;  %v2964_v25 = vld [vmem:[#allocation12 + $0xe8] sm:$0xff] }
 0x2ed   :  { %v5056_v31 = vadd.f32 %v1882_v27, %v993_v23  ;;  %v2946_v23 = vld [vmem:[#allocation12 + $0x58] sm:$0xff]  ;;  %v4439_v27 = vpack.c.bf16 %v2964_v25, %v2963_v24  ;;  %v2969_v25 = vld [vmem:[#allocation12 + $0x110] sm:$0xff] }
 0x2ee   :  { %v1891_v17 = vmul.f32 %v5053_v53, %v5053_v53  ;;  %v4437_v26 = vpack.c.bf16 %v2946_v23, %v2945_v22  ;;  %v4448_v23 = vpack.c.bf16 %v2968_v20, %v2967_v19 }
 0x2ef   :  { %2645 = vmatprep.mubr.f32.mxu0 %v5056_v31  ;;  %2926 = vmatprep.mubr.f32.mxu1 %v5056_v31  ;;  %v1892_v16 = vmul.f32 %v5056_v31, %v5056_v31 }
 0x2f0   :  { %2646 = vmatmul.mubr.f32.vlgmr.msra.gmra.mrb[4].mxu0 %v5053_v53  ;;  %2927 = vmatmul.mubr.f32.vlgmr.msra.gmra.mrb[12].mxu1 %v5053_v53  ;;  %v1905_v37 = vsel %vm1893_vm4, %v1891_v17, 0.0  ;;  %v2948_v17 = vld [vmem:[#allocation12 + $0x68] sm:$0xff] }
 0x2f1   :  { %v1906_v38 = vadd.f32 %v1905_v37, %v1904_v34  ;;  %v1907_v39 = vsel %vm1893_vm4, %v1892_v16, 0.0  ;;  %4418 = vmatpush3.bf16.msra.mxu1 %v4417_v54  ;;  %v2351_v16 = vld [vmem:[#allocation11] sm:$0x7]  ;;  %v4441_v34 = vpack.c.bf16 %v2948_v17, %v2947_v29  ;;  %v2973_v29 = vld [vmem:[#allocation12 + $0x130] sm:$0xff] }
 0x2f2   :  { %4420 = vmatprep.subr.bf16.mxu1 %v4419_v55  ;;  %v2364_v37 = vrot.slane %v2351_v16, %v972_v7  ;;  %v2974_v17 = vld [vmem:[#allocation12 + $0x138] sm:$0xff] }
 0x2f3   :  { %v1908_v40 = vadd.f32 %v1907_v39, %v1906_v38 }
 0x2f5   :  { %1909 = vadd.xlane.f32.xlu0 %v1908_v40  ;;  %4422 = vmatpush3.bf16.msra.mxu1 %v4421_v61 }
 0x2f6   :  { %4424 = vmatprep.subr.bf16.mxu1 %v4423_v63 }
 0x2f9   :  { %4426 = vmatpush3.bf16.msra.mxu1 %v4425_v13 }
 0x2fa   :  { %4428 = vmatprep.subr.bf16.mxu1 %v4427_v5 }
 0x2fd   :  { %4430 = vmatpush3.bf16.msra.mxu1 %v4429_v10 }
 0x2fe   :  { %4432 = vmatprep.subr.bf16.mxu1 %v4431_v11 }
 0x301   :  { %4434 = vmatpush3.bf16.msra.mxu1 %v4433_v60 }
 0x302   :  { %4436 = vmatprep.subr.bf16.mxu1 %v4435_v21 }
 0x305   :  { %4438 = vmatpush3.bf16.msra.mxu1 %v4437_v26  ;;  %v2970_v26 = vld [vmem:[#allocation12 + $0x118] sm:$0xff] }
 0x306   :  { %4440 = vmatprep.subr.bf16.mxu1 %v4439_v27  ;;  %v4451_v56 = vpack.c.bf16 %v2970_v26, %v2969_v25 }
 0x309   :  { %4442 = vmatpush3.bf16.msra.mxu1 %v4441_v34  ;;  %v2975_v34 = vld [vmem:[#allocation12 + $0x140] sm:$0xff] }
 0x30a   :  { %4444 = vmatprep.subr.bf16.mxu1 %v4443_v48  ;;  %v2982_v48 = vld [vmem:[#allocation12 + $0x178] sm:$0xff] }
 0x30b   :  { %v3196_v41 = vpop.f32.mrb[6].mxu1  ;;  %v4469_v49 = vpack.c.bf16 %v2982_v48, %v2981_v45 }
 0x30c   :  { %v3197_v42 = vpop.f32.mrb[7].mxu1 }
 0x30d   :  { %v3198_v47 = vadd.f32 %v3197_v42, %v3196_v41  ;;  %4446 = vmatpush3.bf16.msra.mxu1 %v4445_v51 }
 0x30e   :  { %4447 = vmatprep.subr.bf16.mxu1 %v4754_v46 }
 0x30f   :  { %v2719_v40 = vadd.f32 %v3198_v47, %v2364_v37  ;;  %v2976_v37 = vld [vmem:[#allocation12 + $0x148] sm:$0xff] }
 0x32b   :  { %v3231_v38 = vpop.f32.mrb[8].mxu1 }
 0x32c   :  { %v3232_v39 = vpop.f32.mrb[9].mxu1 }
 0x32d   :  { %v3233_v41 = vadd.f32 %v3232_v39, %v3231_v38  ;;  %v4460_v38 = vpack.c.bf16 %v2976_v37, %v2975_v34  ;;  %v2978_v39 = vld [vmem:[#allocation12 + $0x158] sm:$0xff] }
 0x32f   :  { %v2789_v42 = vadd.f32 %v3233_v41, %v2719_v40  ;;  %v2979_v41 = vld [vmem:[#allocation12 + $0x160] sm:$0xff] }
 0x360   :  { %v3266_v54 = vpop.f32.mrb[10].mxu1 }
 0x361   :  { %v3267_v55 = vpop.f32.mrb[11].mxu1 }
 0x362   :  { %v3268_v7 = vadd.f32 %v3267_v55, %v3266_v54 }
 0x364   :  { %v2859_v58 = vadd.f32 %v3268_v7, %v2789_v42  ;;  %v2980_v42 = vld [vmem:[#allocation12 + $0x168] sm:$0xff] }
 0x365   :  { %v4466_v43 = vpack.c.bf16 %v2980_v42, %v2979_v41 }
 0x382   :  { %v1910_v52 = vpop.xlane.xlu0 %1909 }
 0x383   :  { %4524 = vrsqrt.f32 %v1910_v52 }
 0x38d   :  { %v4525_v47 = vpop.eup %4524 }
 0x38e   :  { %v1912_v59 = vmin.f32 %v4525_v47, 1e+08 }
 0x390   :  { %v1913_v44 = vmul.f32 %v4992_v57, %v1912_v59  ;;  %v1914_v61 = vmul.f32 %v4995_v62, %v1912_v59  ;;  %v1915_v63 = vmul.f32 %v5012_v33, %v1912_v59  ;;  %v1916_v1 = vmul.f32 %v5010_v28, %v1912_v59 }
 0x391   :  { %v1917_v2 = vmul.f32 %v5026_v32, %v1912_v59  ;;  %v1918_v3 = vmul.f32 %v5024_v30, %v1912_v59  ;;  %v1919_v4 = vmul.f32 %v5053_v53, %v1912_v59  ;;  %v1920_v13 = vmul.f32 %v5056_v31, %v1912_v59 }
 0x392   :  { %v1929_v5 = vcombine.low %v1913_v44, %v1914_v61  ;;  %v1930_v6 = vcombine.low %v1915_v63, %v1916_v1  ;;  %v2356_v30 = vrot.slane %v2351_v16, %v964_v14  ;;  %v2360_v53 = vrot.slane %v2351_v16, %v968_v18  ;;  %v2971_v14 = vld [vmem:[#allocation12 + $0x120] sm:$0xff]  ;;  %v2972_v18 = vld [vmem:[#allocation12 + $0x128] sm:$0xff] }
 0x393   :  { %v1946_v35 = vcombine.low %v1917_v2, %v1918_v3  ;;  %v1947_v8 = vcombine.low %v1919_v4, %v1920_v13  ;;  %v4454_v27 = vpack.c.bf16 %v2972_v18, %v2971_v14  ;;  %v4457_v16 = vpack.c.bf16 %v2974_v17, %v2973_v29 }
 0x394   :  { %v1937_v57 = vrot.slane %v1929_v5, %v4924_v36  ;;  %v1944_v62 = vrot.slane %v1930_v6, %v4924_v36 }
 0x395   :  { %v1954_v33 = vrot.slane %v1946_v35, %v4924_v36  ;;  %v1961_v28 = vrot.slane %v1947_v8, %v4924_v36 }
 0x396   :  { %v1945_v9 = vcombine.low %v1937_v57, %v1944_v62 }
 0x397   :  { %v1962_v32 = vcombine.low %v1954_v33, %v1961_v28 }
 0x398   :  { %1965 = vst [vmem:[#allocation16] sm:$0xff] %v1945_v9 }
 0x399   :  { %1966 = vst [vmem:[#allocation16 + $0x8] sm:$0xff] %v1962_v32 }
 0x3c3   :  { %v2647_v31 = vpop.f32.mrb[4].mxu0  ;;  %v3301_v10 = vpop.f32.mrb[12].mxu1 }
 0x3c4   :  { %v4481_v11 = vadd.f32 %v2647_v31, %v2356_v30  ;;  %v2649_v12 = vpop.f32.mrb[5].mxu0  ;;  %v3302_v15 = vpop.f32.mrb[13].mxu1 }
 0x3c5   :  { %v4482_v60 = vadd.f32 %v2649_v12, %v2360_v53  ;;  %v3303_v21 = vadd.f32 %v3302_v15, %v3301_v10 }
 0x3c6   :  { %v2932_v24 = vmax.f32 %v4481_v11, 0.0 }
 0x3c7   :  { %v2933_v36 = vmax.f32 %v4482_v60, 0.0  ;;  %v2929_v22 = vadd.f32 %v3303_v21, %v2859_v58 }
 0x3c9   :  { %3054 = vmatprep.mubr.f32.mxu1 %v2933_v36  ;;  %v2934_v50 = vmax.f32 %v2929_v22, 0.0 }
 0x3ca   :  { %3055 = vmatmul.mubr.f32.vlgmr.msra.gmra.mrb[14].mxu1 %v2932_v24 }
 0x3cb   :  { %4449 = vmatpush3.bf16.msra.mxu1 %v4448_v23  ;;  %3388 = vmatprep.mubr.msk.f32.mxu1 %vm4755_vm5, %v4752_v0  ;;  %v2977_v0 = vld [vmem:[#allocation12 + $0x150] sm:$0xff] }
 0x3cc   :  { %4450 = vmatprep.subr.bf16.mxu1 %v4754_v46  ;;  %v4463_v40 = vpack.c.bf16 %v2978_v39, %v2977_v0 }
 0x3cf   :  { %4452 = vmatpush3.bf16.msra.mxu1 %v4451_v56 }
 0x3d0   :  { %4453 = vmatprep.subr.bf16.mxu1 %v4754_v46 }
 0x3d3   :  { %4455 = vmatpush3.bf16.msra.mxu1 %v4454_v27 }
 0x3d4   :  { %4456 = vmatprep.subr.bf16.mxu1 %v4754_v46 }
 0x3d7   :  { %4458 = vmatpush3.bf16.msra.mxu1 %v4457_v16 }
 0x3d8   :  { %4459 = vmatprep.subr.bf16.mxu1 %v4754_v46 }
 0x3db   :  { %4461 = vmatpush3.bf16.msra.mxu1 %v4460_v38 }
 0x3dc   :  { %4462 = vmatprep.subr.bf16.mxu1 %v4754_v46 }
 0x3df   :  { %4464 = vmatpush3.bf16.msra.mxu1 %v4463_v40 }
 0x3e0   :  { %4465 = vmatprep.subr.bf16.mxu1 %v4754_v46 }
 0x3e3   :  { %4467 = vmatpush3.bf16.msra.mxu1 %v4466_v43 }
 0x3e4   :  { %4468 = vmatprep.subr.bf16.mxu1 %v4754_v46 }
 0x3e7   :  { %4470 = vmatpush3.bf16.msra.mxu1 %v4469_v49 }
 0x3ea   :  { %3389 = vmatmul.mubr.f32.vlgmr.msra.gmra.mrb[16].mxu1 %v2934_v50 }
 0x3eb   :  { %4692 = shalt.err (!%p4689_p4)
}
 0x3ec   :  { %s4693_s25 = scalar_lea.hbm %s5127_s8, 256 }
 0x3ed   :  { %p4694_p5 = scmp.ne.s32.totalorder %s5127_s8, %s4693_s25  ;;  %p4697_p6 = scmp.lt.u32.totalorder %s4693_s25, %s5127_s8 }
 0x3ef   :  { %p4699_p7 = pnand %p4697_p6, %p4694_p5 }
 0x3f1   :  { %4702 = shalt.err (!%p4699_p7)
}
 0x3f2   :  { %3150 = dma.vmem_to_hbm [thread:$0]  %s3148_s22, 256, %s5127_s8, [#allocation17]   ;;  %v3163_v55 = vld [vmem:[#allocation14] ss:$0 sm:$0xff] }
 0x3f3   :  { %s4757_s9 = smov [#allocation15]  }
 0x3f4   :  { %s3137_s5 = sshll.u32 %s4757_s9, 4  ;;  %s3138_s5 = int_to_ptr.vmem [resolvable:$true] %s3137_s5 }
 0x3f5   :  { %s4703_s2 = scalar_lea.vmem %s3138_s5, 32  ;;  %p4708_p9 = scmp.lt.s32.totalorder %s3138_s5, %s3138_s5 }
 0x3f6   :  { %p4704_p8 = scmp.ne.s32.totalorder %s3138_s5, %s4703_s2  ;;  %p4709_p10 = scmp.lt.s32.totalorder %s4703_s2, %s4703_s2 }
 0x3f8   :  { %p4710_p11 = por %p4709_p10, %p4708_p9 }
 0x3fa   :  { %p4711_p12 = pnand %p4710_p11, %p4704_p8 }
 0x49d   :  { %v3336_v51 = vpop.f32.mrb[14].mxu1 }
 0x49e   :  { %v3337_v46 = vpop.f32.mrb[15].mxu1 }
 0x49f   :  { %v3338_v54 = vadd.f32 %v3337_v46, %v3336_v51 }
 0x4a1   :  { %v3057_v7 = vadd.f32 %v3338_v54, %v3163_v55 }
 0x4bd   :  { %v3126_v58 = vpop.f32.mrb[16].mxu1 }
 0x4be   :  { %v3127_v52 = vadd.f32 %v3126_v58, %v3057_v7  ;;  %v3390_v47 = vpop.f32.mrb[17].mxu1 }
 0x4c0   :  { %3130 = vst [vmem:[#allocation15] sm:$0x3] %v3127_v52 }
 0x4c1   :  { %4714 = shalt.err (!%p4711_p12)
}
 0x4c2   :  { %s4715_s11 = scalar_lea.hbm %s5126_s7, 32 }
 0x4c3   :  { %p4716_p13 = scmp.ne.s32.totalorder %s5126_s7, %s4715_s11  ;;  %p4719_p0 = scmp.lt.u32.totalorder %s4715_s11, %s5126_s7 }
 0x4c5   :  { %p4721_p1 = pnand %p4719_p0, %p4716_p13 }
 0x4c7   :  { %4724 = shalt.err (!%p4721_p1)
}
 0x4c8   :  { %3140 = dma.vmem_to_hbm [thread:$0]  %s3138_s5, 32, %s5126_s7, [#allocation5]  }
 0x4c9   :  { %4733 = dma.done.wait [#allocation5], 32  }
 0x4ca   :  { %4734 = vsyncadd [#allocation5], 4294967264 }
 0x4cb   :  { %4735 = dma.done.wait [#allocation17], 256  }
 0x4cc   :  { %4736 = vsyncadd [#allocation17], 4294967040 }
 0x4cd   :  { %3157 = vsyncpa [#allocation4], 1 }
 0x4ce   :  { %3158 = vsyncpa [#allocation7], 1 }
 0x4cf   :  { %3159 = vsyncpa [#allocation10], 1 }
 0x4d0   :  { %3160 = vsyncpa [#allocation13], 1 }
 0x4d1   :  { %3161 = vsyncpa [#allocation5], 1 }
 0x4d2   :  { %3162 = vsyncpa [#allocation17], 1 }

</bundles_post_ra>
